<compile_context>
chip_gen: v6e
topology: v6e:2x2x1
jax: 0.10.0
libtpu: 0.0.40
codegen_flags: <defaults>
</compile_context>

<pallas_src>
import functools

import jax
import jax.numpy as jnp
from jax.experimental import pallas as pl
from jax.experimental.pallas import tpu as pltpu


def _sigmoid(z):
    # tanh-form sigmoid: executes on the (otherwise idle) EUP transcendental unit.
    return 0.5 * (jnp.tanh(0.5 * z) + 1.0)


def cbam_kernel(x_ref, w1_ref, w2t_ref, wtap_ref, o_ref, maps_ref,
                *, W, HW, C, K, pad, base):
    NB = x_ref.shape[0]
    hid = w1_ref.shape[0]
    R = 2 * NB                          # stacked sublane rows: [avg maps | max maps]
    Wt = maps_ref.shape[1]
    margin_r = Wt - base - HW

    x = x_ref[...].astype(jnp.float32)                        # (NB, C, HW)

    # ---------------- channel attention (VPU / XLU only, no MXU) ------------
    avg = jnp.sum(x, axis=2, keepdims=True) * (1.0 / HW)      # (NB, C, 1)
    mx = jnp.max(x, axis=2, keepdims=True)                    # (NB, C, 1)

    def fc(v):                                                # (NB,C,1) -> (NB,C,1)
        out = None
        for j in range(hid):                                  # hid = C // reduction (tiny)
            h = jnp.maximum(
                jnp.sum(v * w1_ref[j:j + 1], axis=1, keepdims=True), 0.0)  # (NB,1,1)
            term = h * w2t_ref[j:j + 1]                       # (NB, C, 1)
            out = term if out is None else out + term
        return out

    ca = _sigmoid(fc(avg) + fc(mx))                           # (NB, C, 1)
    x1 = x * ca                                               # (NB, C, HW)
    # Park x*ca in the output block so no full-block temporary stays live
    # across the spatial-attention section; we finish with o_ref *= sa.
    o_ref[...] = x1.astype(o_ref.dtype)

    # ---------------- spatial pools, packed onto sublanes --------------------
    avg_s = jnp.sum(x1, axis=1) * (1.0 / C)                   # (NB, HW)
    max_s = jnp.max(x1, axis=1)                               # (NB, HW)

    # Zero only the margins; the center [base, base+HW) is fully overwritten.
    maps_ref[:, pl.ds(0, base)] = jnp.zeros((R, base), jnp.float32)
    maps_ref[:, pl.ds(base + HW, margin_r)] = jnp.zeros((R, margin_r), jnp.float32)
    maps_ref[pl.ds(0, NB), pl.ds(base, HW)] = avg_s
    maps_ref[pl.ds(NB, NB), pl.ds(base, HW)] = max_s

    # ---------------- KxK "same" conv via shifted flat windows ---------------
    # Flat shift = (dh-pad)*W + (dw-pad).  Out-of-range rows read the zero
    # margins; column overflow is removed by one mask per dw (not per tap).
    col = jax.lax.broadcasted_iota(jnp.int32, (1, HW), 1) % W
    acc = jnp.zeros((R, HW), jnp.float32)
    for dw in range(K):
        dc = dw - pad
        part = jnp.zeros((R, HW), jnp.float32)
        for dh in range(K):
            start = base + (dh - pad) * W + dc                # static lane offset
            win = maps_ref[:, pl.ds(start, HW)]               # (R, HW)
            wv = wtap_ref[dh * K + dw]                        # (R, 1): per-row tap weight
            part = part + wv * win
        if dc < 0:
            part = jnp.where(col >= -dc, part, 0.0)
        elif dc > 0:
            part = jnp.where(col < (W - dc), part, 0.0)
        acc = acc + part
    # TODO(synk): for very large H*W, chunk this 49-tap accumulation over the
    # lane axis so acc/part stay in vregs instead of spilling to VMEM.

    conv = acc[:NB] + acc[NB:]                                # avg part + max part, (NB, HW)
    sa = _sigmoid(conv)                                       # (NB, HW)

    o_ref[...] = (o_ref[...] * sa[:, None, :]).astype(o_ref.dtype)


def _round_up(v, m):
    return ((v + m - 1) // m) * m


def _vmem_capacity_bytes():
    try:
        info = pltpu.get_tpu_info()
        cap = getattr(info, "vmem_capacity_bytes", None)
        if cap:
            return int(cap)
    except Exception:
        pass
    return 64 * 1024 * 1024            # conservative default (v7x per-core VMEM)


def _pick_block_b(B, C, HW, vmem_cap):
    """Largest divisor of B that (a) keeps ~6 block-sized live buffers within a
    ~50% VMEM budget and (b) leaves a grid >= 2 so both v7x TensorCores get
    work when possible."""
    per_batch = C * HW * 4
    budget = max(int(vmem_cap * 0.5), 4 * 1024 * 1024)
    cap = max(1, budget // (6 * per_batch))
    cap = min(cap, 8)
    divisors = [d for d in range(1, B + 1) if B % d == 0 and d <= cap]
    multi = [d for d in divisors if B // d >= 2]
    if multi:
        return max(multi)
    return max(divisors) if divisors else 1


@functools.partial(jax.jit, static_argnames=("K", "NB", "vmem_limit"))
def _cbam_impl(x, w1, w2, k_spatial, *, K, NB, vmem_limit):
    B, C, H, W = x.shape
    pad = (K - 1) // 2
    hid = w1.shape[0]
    HW = H * W
    base = _round_up(pad * W + pad, 128)      # lane-aligned zero margin each side
    Wt = 2 * base + HW

    # NCHW -> (B, C, H*W): a contiguity-preserving (free) reshape, no HBM pass.
    x2d = x.reshape(B, C, HW)
    w1_3 = w1.astype(jnp.float32)[:, :, None]                 # (hid, C, 1)
    w2t_3 = w2.T.astype(jnp.float32)[:, :, None]              # (hid, C, 1)
    # Per-row tap weights for the stacked [avg | max] rows: (K*K, 2*NB, 1).
    ks = k_spatial.astype(jnp.float32).reshape(2, K * K)
    wtap = jnp.repeat(ks, NB, axis=0).T[:, :, None]

    kernel = functools.partial(cbam_kernel, W=W, HW=HW, C=C, K=K, pad=pad,
                               base=base)

    out2d = pl.pallas_call(
        kernel,
        out_shape=jax.ShapeDtypeStruct((B, C, HW), x.dtype),
        grid=(B // NB,),
        in_specs=[
            pl.BlockSpec((NB, C, HW), lambda b: (b, 0, 0)),
            pl.BlockSpec((hid, C, 1), lambda b: (0, 0, 0)),
            pl.BlockSpec((hid, C, 1), lambda b: (0, 0, 0)),
            pl.BlockSpec((K * K, 2 * NB, 1), lambda b: (0, 0, 0)),
        ],
        out_specs=pl.BlockSpec((NB, C, HW), lambda b: (b, 0, 0)),
        scratch_shapes=[pltpu.VMEM((2 * NB, Wt), jnp.float32)],
        compiler_params=pltpu.CompilerParams(
            dimension_semantics=("parallel",),
            vmem_limit_bytes=vmem_limit,
        ),
    )(x2d, w1_3, w2t_3, wtap)

    return out2d.reshape(B, C, H, W)


def cbam_pallas(x, w1, w2, k_spatial, kernel_size=7, block_b=None):
    """CBAM forward.  x: (B, C, H, W) NCHW, same as the PyTorch module.
    I/O dtype follows x.dtype; compute is f32 in-kernel."""
    B, C, H, W = x.shape
    HW = H * W
    vmem_cap = _vmem_capacity_bytes()
    NB = block_b if block_b is not None else _pick_block_b(B, C, HW, vmem_cap)
    assert B % NB == 0, f"block_b={NB} must divide batch={B}"

    pad = (kernel_size - 1) // 2
    base = _round_up(pad * W + pad, 128)
    block_bytes = NB * C * HW * 4
    scratch_bytes = 2 * NB * (2 * base + HW) * 4
    needed = 6 * block_bytes + scratch_bytes + (2 << 20)
    vmem_limit = int(min(int(vmem_cap * 0.9), max(needed, 32 * 1024 * 1024)))

    return _cbam_impl(x, w1, w2, k_spatial, K=kernel_size, NB=NB,
                      vmem_limit=vmem_limit)


def cbam_reference(x, w1, w2, k_spatial):
    """Pure-JAX reference matching the PyTorch module semantics."""
    avg = jnp.mean(x, axis=(2, 3))                      # (B, C)
    mx = jnp.max(x, axis=(2, 3))                        # (B, C)

    def fc(v):
        h = jnp.maximum(v @ w1.T, 0.0)                  # (B, hid)
        return h @ w2.T                                 # (B, C)

    ca = jax.nn.sigmoid(fc(avg) + fc(mx))[:, :, None, None]
    x1 = x * ca
    avg_s = jnp.mean(x1, axis=1, keepdims=True)
    max_s = jnp.max(x1, axis=1, keepdims=True)
    cat = jnp.concatenate([avg_s, max_s], axis=1)       # (B, 2, H, W)
    p = (k_spatial.shape[-1] - 1) // 2
    conv = jax.lax.conv_general_dilated(
        cat, k_spatial[None],                           # (1, 2, k, k) OIHW
        window_strides=(1, 1), padding=((p, p), (p, p)),
        dimension_numbers=("NCHW", "OIHW", "NCHW"),
    )
    sa = jax.nn.sigmoid(conv)
    return x1 * sa


if __name__ == "__main__":
    # Module-consistent small shapes: in_channels=32, reduction=16 -> hidden=2.
    B, C, H, W = 4, 32, 16, 16
    reduction, kernel_size = 16, 7
    hid = C // reduction

    key = jax.random.PRNGKey(0)
    kx, k1, k2, k3, kx2 = jax.random.split(key, 5)
    x = jax.random.normal(kx, (B, C, H, W), dtype=jnp.float32)
    # Deterministic synthetic parameters (no checkpoint loading).
    w1 = 0.1 * jax.random.normal(k1, (hid, C), dtype=jnp.float32)      # Conv2d(C, C//r, 1)
    w2 = 0.1 * jax.random.normal(k2, (C, hid), dtype=jnp.float32)      # Conv2d(C//r, C, 1)
    k_spatial = 0.1 * jax.random.normal(k3, (2, kernel_size, kernel_size),
                                        dtype=jnp.float32)             # Conv2d(2, 1, 7)

    out = jax.block_until_ready(cbam_pallas(x, w1, w2, k_spatial,
                                            kernel_size=kernel_size))
    ref = jax.block_until_ready(cbam_reference(x, w1, w2, k_spatial))
    assert out.shape == (B, C, H, W)
    assert jnp.allclose(out, ref, atol=1e-4, rtol=1e-4), (
        float(jnp.max(jnp.abs(out - ref)))
    )

    # Non-lane-aligned spatial size (H*W = 144) exercises the masked-store path
    # (no wrapper padding / slicing any more).
    x2 = jax.random.normal(kx2, (B, C, 12, 12), dtype=jnp.float32)
    out2 = jax.block_until_ready(cbam_pallas(x2, w1, w2, k_spatial,
                                             kernel_size=kernel_size))
    ref2 = jax.block_until_ready(cbam_reference(x2, w1, w2, k_spatial))
    assert jnp.allclose(out2, ref2, atol=1e-4, rtol=1e-4), (
        float(jnp.max(jnp.abs(out2 - ref2)))
    )

    print("KERNEL_OK")
</pallas_src>

<mosaic_0001>
module attributes {stable_mosaic.version = 11 : i64} {
  func.func @cbam_kernel(%arg0: i32, %arg1: memref<2x32x256xf32, #tpu.memory_space<vmem>>, %arg2: memref<2x32x1xf32, #tpu.memory_space<vmem>>, %arg3: memref<2x32x1xf32, #tpu.memory_space<vmem>>, %arg4: memref<49x4x1xf32, #tpu.memory_space<vmem>>, %arg5: memref<2x32x256xf32, #tpu.memory_space<vmem>>, %arg6: memref<4x512xf32, #tpu.memory_space<vmem>>) attributes {dimension_semantics = [#tpu.dimension_semantics<parallel>], iteration_bounds = array<i64: 2>, scalar_prefetch = 0 : i64, scratch_operands = 1 : i64, tpu.core_type = #tpu.core_type<tc>, window_params = [{transform_indices = @transform_0, window_bounds = array<i64: 2, 32, 256>}, {pipeline_mode = #tpu.pipeline_mode<synchronous>, transform_indices = @transform_1, window_bounds = array<i64: 2, 32, 1>}, {pipeline_mode = #tpu.pipeline_mode<synchronous>, transform_indices = @transform_2, window_bounds = array<i64: 2, 32, 1>}, {pipeline_mode = #tpu.pipeline_mode<synchronous>, transform_indices = @transform_3, window_bounds = array<i64: 49, 4, 1>}, {transform_indices = @transform_4, window_bounds = array<i64: 2, 32, 256>}]} {
    %c0 = arith.constant 0 : index
    %c0_0 = arith.constant 0 : index
    %c0_1 = arith.constant 0 : index
    %0 = vector.load %arg1[%c0, %c0_0, %c0_1] : memref<2x32x256xf32, #tpu.memory_space<vmem>>, vector<2x32x256xf32>
    %cst = arith.constant dense<0.000000e+00> : vector<2x32xf32>
    %1 = vector.multi_reduction <add>, %0, %cst [2] : vector<2x32x256xf32> to vector<2x32xf32>
    %2 = vector.shape_cast %1 : vector<2x32xf32> to vector<2x32x1xf32>
    %cst_2 = arith.constant 3.906250e-03 : f32
    %3 = vector.broadcast %cst_2 : f32 to vector<2x32x1xf32>
    %4 = arith.mulf %2, %3 : vector<2x32x1xf32>
    %cst_3 = arith.constant dense<0xFF800000> : vector<2x32xf32>
    %5 = vector.multi_reduction <maximumf>, %0, %cst_3 [2] : vector<2x32x256xf32> to vector<2x32xf32>
    %6 = vector.shape_cast %5 : vector<2x32xf32> to vector<2x32x1xf32>
    %c0_4 = arith.constant 0 : index
    %c0_5 = arith.constant 0 : index
    %c0_6 = arith.constant 0 : index
    %7 = vector.load %arg2[%c0_4, %c0_5, %c0_6] : memref<2x32x1xf32, #tpu.memory_space<vmem>>, vector<1x32x1xf32>
    %8 = vector.broadcast %7 : vector<1x32x1xf32> to vector<2x32x1xf32>
    %9 = arith.mulf %4, %8 : vector<2x32x1xf32>
    %cst_7 = arith.constant dense<0.000000e+00> : vector<2x1xf32>
    %10 = vector.multi_reduction <add>, %9, %cst_7 [1] : vector<2x32x1xf32> to vector<2x1xf32>
    %11 = vector.shape_cast %10 : vector<2x1xf32> to vector<2x1x1xf32>
    %cst_8 = arith.constant 0.000000e+00 : f32
    %12 = vector.broadcast %cst_8 : f32 to vector<2x1x1xf32>
    %13 = arith.maximumf %11, %12 : vector<2x1x1xf32>
    %c0_9 = arith.constant 0 : index
    %c0_10 = arith.constant 0 : index
    %c0_11 = arith.constant 0 : index
    %14 = vector.load %arg3[%c0_9, %c0_10, %c0_11] : memref<2x32x1xf32, #tpu.memory_space<vmem>>, vector<1x32x1xf32>
    %15 = vector.broadcast %13 : vector<2x1x1xf32> to vector<2x32x1xf32>
    %16 = vector.broadcast %14 : vector<1x32x1xf32> to vector<2x32x1xf32>
    %17 = arith.mulf %15, %16 : vector<2x32x1xf32>
    %c1 = arith.constant 1 : index
    %c0_12 = arith.constant 0 : index
    %c0_13 = arith.constant 0 : index
    %18 = vector.load %arg2[%c1, %c0_12, %c0_13] : memref<2x32x1xf32, #tpu.memory_space<vmem>>, vector<1x32x1xf32>
    %19 = vector.broadcast %18 : vector<1x32x1xf32> to vector<2x32x1xf32>
    %20 = arith.mulf %4, %19 : vector<2x32x1xf32>
    %cst_14 = arith.constant dense<0.000000e+00> : vector<2x1xf32>
    %21 = vector.multi_reduction <add>, %20, %cst_14 [1] : vector<2x32x1xf32> to vector<2x1xf32>
    %22 = vector.shape_cast %21 : vector<2x1xf32> to vector<2x1x1xf32>
    %cst_15 = arith.constant 0.000000e+00 : f32
    %23 = vector.broadcast %cst_15 : f32 to vector<2x1x1xf32>
    %24 = arith.maximumf %22, %23 : vector<2x1x1xf32>
    %c1_16 = arith.constant 1 : index
    %c0_17 = arith.constant 0 : index
    %c0_18 = arith.constant 0 : index
    %25 = vector.load %arg3[%c1_16, %c0_17, %c0_18] : memref<2x32x1xf32, #tpu.memory_space<vmem>>, vector<1x32x1xf32>
    %26 = vector.broadcast %24 : vector<2x1x1xf32> to vector<2x32x1xf32>
    %27 = vector.broadcast %25 : vector<1x32x1xf32> to vector<2x32x1xf32>
    %28 = arith.mulf %26, %27 : vector<2x32x1xf32>
    %29 = arith.addf %17, %28 : vector<2x32x1xf32>
    %c0_19 = arith.constant 0 : index
    %c0_20 = arith.constant 0 : index
    %c0_21 = arith.constant 0 : index
    %30 = vector.load %arg2[%c0_19, %c0_20, %c0_21] : memref<2x32x1xf32, #tpu.memory_space<vmem>>, vector<1x32x1xf32>
    %31 = vector.broadcast %30 : vector<1x32x1xf32> to vector<2x32x1xf32>
    %32 = arith.mulf %6, %31 : vector<2x32x1xf32>
    %cst_22 = arith.constant dense<0.000000e+00> : vector<2x1xf32>
    %33 = vector.multi_reduction <add>, %32, %cst_22 [1] : vector<2x32x1xf32> to vector<2x1xf32>
    %34 = vector.shape_cast %33 : vector<2x1xf32> to vector<2x1x1xf32>
    %cst_23 = arith.constant 0.000000e+00 : f32
    %35 = vector.broadcast %cst_23 : f32 to vector<2x1x1xf32>
    %36 = arith.maximumf %34, %35 : vector<2x1x1xf32>
    %c0_24 = arith.constant 0 : index
    %c0_25 = arith.constant 0 : index
    %c0_26 = arith.constant 0 : index
    %37 = vector.load %arg3[%c0_24, %c0_25, %c0_26] : memref<2x32x1xf32, #tpu.memory_space<vmem>>, vector<1x32x1xf32>
    %38 = vector.broadcast %36 : vector<2x1x1xf32> to vector<2x32x1xf32>
    %39 = vector.broadcast %37 : vector<1x32x1xf32> to vector<2x32x1xf32>
    %40 = arith.mulf %38, %39 : vector<2x32x1xf32>
    %c1_27 = arith.constant 1 : index
    %c0_28 = arith.constant 0 : index
    %c0_29 = arith.constant 0 : index
    %41 = vector.load %arg2[%c1_27, %c0_28, %c0_29] : memref<2x32x1xf32, #tpu.memory_space<vmem>>, vector<1x32x1xf32>
    %42 = vector.broadcast %41 : vector<1x32x1xf32> to vector<2x32x1xf32>
    %43 = arith.mulf %6, %42 : vector<2x32x1xf32>
    %cst_30 = arith.constant dense<0.000000e+00> : vector<2x1xf32>
    %44 = vector.multi_reduction <add>, %43, %cst_30 [1] : vector<2x32x1xf32> to vector<2x1xf32>
    %45 = vector.shape_cast %44 : vector<2x1xf32> to vector<2x1x1xf32>
    %cst_31 = arith.constant 0.000000e+00 : f32
    %46 = vector.broadcast %cst_31 : f32 to vector<2x1x1xf32>
    %47 = arith.maximumf %45, %46 : vector<2x1x1xf32>
    %c1_32 = arith.constant 1 : index
    %c0_33 = arith.constant 0 : index
    %c0_34 = arith.constant 0 : index
    %48 = vector.load %arg3[%c1_32, %c0_33, %c0_34] : memref<2x32x1xf32, #tpu.memory_space<vmem>>, vector<1x32x1xf32>
    %49 = vector.broadcast %47 : vector<2x1x1xf32> to vector<2x32x1xf32>
    %50 = vector.broadcast %48 : vector<1x32x1xf32> to vector<2x32x1xf32>
    %51 = arith.mulf %49, %50 : vector<2x32x1xf32>
    %52 = arith.addf %40, %51 : vector<2x32x1xf32>
    %53 = arith.addf %29, %52 : vector<2x32x1xf32>
    %cst_35 = arith.constant 5.000000e-01 : f32
    %54 = vector.broadcast %cst_35 : f32 to vector<2x32x1xf32>
    %55 = arith.mulf %54, %53 : vector<2x32x1xf32>
    %56 = math.tanh %55 : vector<2x32x1xf32>
    %cst_36 = arith.constant 1.000000e+00 : f32
    %57 = vector.broadcast %cst_36 : f32 to vector<2x32x1xf32>
    %58 = arith.addf %56, %57 : vector<2x32x1xf32>
    %cst_37 = arith.constant 5.000000e-01 : f32
    %59 = vector.broadcast %cst_37 : f32 to vector<2x32x1xf32>
    %60 = arith.mulf %59, %58 : vector<2x32x1xf32>
    %61 = vector.broadcast %60 : vector<2x32x1xf32> to vector<2x32x256xf32>
    %62 = arith.mulf %0, %61 : vector<2x32x256xf32>
    %c0_38 = arith.constant 0 : index
    %c0_39 = arith.constant 0 : index
    %c0_40 = arith.constant 0 : index
    %63 = vector.load %arg5[%c0_38, %c0_39, %c0_40] : memref<2x32x256xf32, #tpu.memory_space<vmem>>, vector<2x32x256xf32>
    tpu.vector_store %arg5[%c0_38, %c0_39, %c0_40], %62 {strides = array<i32>} : memref<2x32x256xf32, #tpu.memory_space<vmem>>, vector<2x32x256xf32>,
    %cst_41 = arith.constant dense<0.000000e+00> : vector<2x256xf32>
    %64 = vector.multi_reduction <add>, %62, %cst_41 [1] : vector<2x32x256xf32> to vector<2x256xf32>
    %cst_42 = arith.constant 3.125000e-02 : f32
    %65 = vector.broadcast %cst_42 : f32 to vector<2x256xf32>
    %66 = arith.mulf %64, %65 : vector<2x256xf32>
    %cst_43 = arith.constant dense<0xFF800000> : vector<2x256xf32>
    %67 = vector.multi_reduction <maximumf>, %62, %cst_43 [1] : vector<2x32x256xf32> to vector<2x256xf32>
    %cst_44 = arith.constant 0.000000e+00 : f32
    %68 = vector.broadcast %cst_44 : f32 to vector<4x128xf32>
    %c0_45 = arith.constant 0 : index
    %c0_46 = arith.constant 0 : index
    %69 = vector.load %arg6[%c0_45, %c0_46] : memref<4x512xf32, #tpu.memory_space<vmem>>, vector<4x128xf32>
    tpu.vector_store %arg6[%c0_45, %c0_46], %68 {strides = array<i32>} : memref<4x512xf32, #tpu.memory_space<vmem>>, vector<4x128xf32>,
    %cst_47 = arith.constant 0.000000e+00 : f32
    %70 = vector.broadcast %cst_47 : f32 to vector<4x128xf32>
    %c0_48 = arith.constant 0 : index
    %c384 = arith.constant 384 : index
    %71 = vector.load %arg6[%c0_48, %c384] : memref<4x512xf32, #tpu.memory_space<vmem>>, vector<4x128xf32>
    tpu.vector_store %arg6[%c0_48, %c384], %70 {strides = array<i32>} : memref<4x512xf32, #tpu.memory_space<vmem>>, vector<4x128xf32>,
    %c0_49 = arith.constant 0 : index
    %c128 = arith.constant 128 : index
    %72 = vector.load %arg6[%c0_49, %c128] : memref<4x512xf32, #tpu.memory_space<vmem>>, vector<2x256xf32>
    tpu.vector_store %arg6[%c0_49, %c128], %66 {strides = array<i32>} : memref<4x512xf32, #tpu.memory_space<vmem>>, vector<2x256xf32>,
    %c2 = arith.constant 2 : index
    %c128_50 = arith.constant 128 : index
    %73 = vector.load %arg6[%c2, %c128_50] : memref<4x512xf32, #tpu.memory_space<vmem>>, vector<2x256xf32>
    tpu.vector_store %arg6[%c2, %c128_50], %67 {strides = array<i32>} : memref<4x512xf32, #tpu.memory_space<vmem>>, vector<2x256xf32>,
    %74 = tpu.iota {dimensions = array<i32: 1>} : vector<1x256xi32>
    %c16_i32 = arith.constant 16 : i32
    %c0_i32 = arith.constant 0 : i32
    %75 = arith.cmpi eq, %c16_i32, %c0_i32 : i32
    %c1_i32 = arith.constant 1 : i32
    %76 = arith.select %75, %c1_i32, %c16_i32 : i32
    %77 = vector.broadcast %76 : i32 to vector<1x256xi32>
    %78 = arith.remsi %74, %77 : vector<1x256xi32>
    %c0_i32_51 = arith.constant 0 : i32
    %79 = vector.broadcast %c0_i32_51 : i32 to vector<1x256xi32>
    %80 = arith.cmpi ne, %78, %79 : vector<1x256xi32>
    %c0_i32_52 = arith.constant 0 : i32
    %81 = vector.broadcast %c0_i32_52 : i32 to vector<1x256xi32>
    %82 = arith.cmpi slt, %78, %81 : vector<1x256xi32>
    %c0_i32_53 = arith.constant 0 : i32
    %83 = arith.cmpi slt, %76, %c0_i32_53 : i32
    %84 = vector.broadcast %83 : i1 to vector<1x256xi1>
    %85 = vector.broadcast %84 : vector<1x256xi1> to vector<1x256xi1>
    %86 = arith.xori %82, %85 : vector<1x256xi1>
    %87 = arith.andi %86, %80 : vector<1x256xi1>
    %88 = vector.broadcast %76 : i32 to vector<1x256xi32>
    %89 = arith.addi %78, %88 : vector<1x256xi32>
    %90 = arith.select %87, %89, %78 : vector<1x256xi1>, vector<1x256xi32>
    %cst_54 = arith.constant 0.000000e+00 : f32
    %91 = vector.broadcast %cst_54 : f32 to vector<4x256xf32>
    %cst_55 = arith.constant 0.000000e+00 : f32
    %92 = vector.broadcast %cst_55 : f32 to vector<4x256xf32>
    %c0_56 = arith.constant 0 : index
    %c77 = arith.constant 77 : index
    %93 = vector.load %arg6[%c0_56, %c77] : memref<4x512xf32, #tpu.memory_space<vmem>>, vector<4x256xf32>
    %c0_57 = arith.constant 0 : index
    %c0_58 = arith.constant 0 : index
    %c0_59 = arith.constant 0 : index
    %94 = vector.load %arg4[%c0_57, %c0_58, %c0_59] : memref<49x4x1xf32, #tpu.memory_space<vmem>>, vector<1x4x1xf32>
    %95 = vector.shape_cast %94 : vector<1x4x1xf32> to vector<4x1xf32>
    %96 = vector.broadcast %95 : vector<4x1xf32> to vector<4x256xf32>
    %97 = arith.mulf %96, %93 : vector<4x256xf32>
    %98 = arith.addf %92, %97 : vector<4x256xf32>
    %c0_60 = arith.constant 0 : index
    %c93 = arith.constant 93 : index
    %99 = vector.load %arg6[%c0_60, %c93] : memref<4x512xf32, #tpu.memory_space<vmem>>, vector<4x256xf32>
    %c7 = arith.constant 7 : index
    %c0_61 = arith.constant 0 : index
    %c0_62 = arith.constant 0 : index
    %100 = vector.load %arg4[%c7, %c0_61, %c0_62] : memref<49x4x1xf32, #tpu.memory_space<vmem>>, vector<1x4x1xf32>
    %101 = vector.shape_cast %100 : vector<1x4x1xf32> to vector<4x1xf32>
    %102 = vector.broadcast %101 : vector<4x1xf32> to vector<4x256xf32>
    %103 = arith.mulf %102, %99 : vector<4x256xf32>
    %104 = arith.addf %98, %103 : vector<4x256xf32>
    %c0_63 = arith.constant 0 : index
    %c109 = arith.constant 109 : index
    %105 = vector.load %arg6[%c0_63, %c109] : memref<4x512xf32, #tpu.memory_space<vmem>>, vector<4x256xf32>
    %c14 = arith.constant 14 : index
    %c0_64 = arith.constant 0 : index
    %c0_65 = arith.constant 0 : index
    %106 = vector.load %arg4[%c14, %c0_64, %c0_65] : memref<49x4x1xf32, #tpu.memory_space<vmem>>, vector<1x4x1xf32>
    %107 = vector.shape_cast %106 : vector<1x4x1xf32> to vector<4x1xf32>
    %108 = vector.broadcast %107 : vector<4x1xf32> to vector<4x256xf32>
    %109 = arith.mulf %108, %105 : vector<4x256xf32>
    %110 = arith.addf %104, %109 : vector<4x256xf32>
    %c0_66 = arith.constant 0 : index
    %c125 = arith.constant 125 : index
    %111 = vector.load %arg6[%c0_66, %c125] : memref<4x512xf32, #tpu.memory_space<vmem>>, vector<4x256xf32>
    %c21 = arith.constant 21 : index
    %c0_67 = arith.constant 0 : index
    %c0_68 = arith.constant 0 : index
    %112 = vector.load %arg4[%c21, %c0_67, %c0_68] : memref<49x4x1xf32, #tpu.memory_space<vmem>>, vector<1x4x1xf32>
    %113 = vector.shape_cast %112 : vector<1x4x1xf32> to vector<4x1xf32>
    %114 = vector.broadcast %113 : vector<4x1xf32> to vector<4x256xf32>
    %115 = arith.mulf %114, %111 : vector<4x256xf32>
    %116 = arith.addf %110, %115 : vector<4x256xf32>
    %c0_69 = arith.constant 0 : index
    %c141 = arith.constant 141 : index
    %117 = vector.load %arg6[%c0_69, %c141] : memref<4x512xf32, #tpu.memory_space<vmem>>, vector<4x256xf32>
    %c28 = arith.constant 28 : index
    %c0_70 = arith.constant 0 : index
    %c0_71 = arith.constant 0 : index
    %118 = vector.load %arg4[%c28, %c0_70, %c0_71] : memref<49x4x1xf32, #tpu.memory_space<vmem>>, vector<1x4x1xf32>
    %119 = vector.shape_cast %118 : vector<1x4x1xf32> to vector<4x1xf32>
    %120 = vector.broadcast %119 : vector<4x1xf32> to vector<4x256xf32>
    %121 = arith.mulf %120, %117 : vector<4x256xf32>
    %122 = arith.addf %116, %121 : vector<4x256xf32>
    %c0_72 = arith.constant 0 : index
    %c157 = arith.constant 157 : index
    %123 = vector.load %arg6[%c0_72, %c157] : memref<4x512xf32, #tpu.memory_space<vmem>>, vector<4x256xf32>
    %c35 = arith.constant 35 : index
    %c0_73 = arith.constant 0 : index
    %c0_74 = arith.constant 0 : index
    %124 = vector.load %arg4[%c35, %c0_73, %c0_74] : memref<49x4x1xf32, #tpu.memory_space<vmem>>, vector<1x4x1xf32>
    %125 = vector.shape_cast %124 : vector<1x4x1xf32> to vector<4x1xf32>
    %126 = vector.broadcast %125 : vector<4x1xf32> to vector<4x256xf32>
    %127 = arith.mulf %126, %123 : vector<4x256xf32>
    %128 = arith.addf %122, %127 : vector<4x256xf32>
    %c0_75 = arith.constant 0 : index
    %c173 = arith.constant 173 : index
    %129 = vector.load %arg6[%c0_75, %c173] : memref<4x512xf32, #tpu.memory_space<vmem>>, vector<4x256xf32>
    %c42 = arith.constant 42 : index
    %c0_76 = arith.constant 0 : index
    %c0_77 = arith.constant 0 : index
    %130 = vector.load %arg4[%c42, %c0_76, %c0_77] : memref<49x4x1xf32, #tpu.memory_space<vmem>>, vector<1x4x1xf32>
    %131 = vector.shape_cast %130 : vector<1x4x1xf32> to vector<4x1xf32>
    %132 = vector.broadcast %131 : vector<4x1xf32> to vector<4x256xf32>
    %133 = arith.mulf %132, %129 : vector<4x256xf32>
    %134 = arith.addf %128, %133 : vector<4x256xf32>
    %c3_i32 = arith.constant 3 : i32
    %135 = vector.broadcast %c3_i32 : i32 to vector<1x256xi32>
    %136 = arith.cmpi sge, %90, %135 : vector<1x256xi32>
    %cst_78 = arith.constant 0.000000e+00 : f32
    %137 = vector.shape_cast %136 : vector<1x256xi1> to vector<1x256xi1>
    %138 = vector.broadcast %137 : vector<1x256xi1> to vector<4x256xi1>
    %139 = vector.broadcast %cst_78 : f32 to vector<4x256xf32>
    %140 = arith.select %138, %134, %139 : vector<4x256xi1>, vector<4x256xf32>
    %141 = arith.addf %91, %140 : vector<4x256xf32>
    %cst_79 = arith.constant 0.000000e+00 : f32
    %142 = vector.broadcast %cst_79 : f32 to vector<4x256xf32>
    %c0_80 = arith.constant 0 : index
    %c78 = arith.constant 78 : index
    %143 = vector.load %arg6[%c0_80, %c78] : memref<4x512xf32, #tpu.memory_space<vmem>>, vector<4x256xf32>
    %c1_81 = arith.constant 1 : index
    %c0_82 = arith.constant 0 : index
    %c0_83 = arith.constant 0 : index
    %144 = vector.load %arg4[%c1_81, %c0_82, %c0_83] : memref<49x4x1xf32, #tpu.memory_space<vmem>>, vector<1x4x1xf32>
    %145 = vector.shape_cast %144 : vector<1x4x1xf32> to vector<4x1xf32>
    %146 = vector.broadcast %145 : vector<4x1xf32> to vector<4x256xf32>
    %147 = arith.mulf %146, %143 : vector<4x256xf32>
    %148 = arith.addf %142, %147 : vector<4x256xf32>
    %c0_84 = arith.constant 0 : index
    %c94 = arith.constant 94 : index
    %149 = vector.load %arg6[%c0_84, %c94] : memref<4x512xf32, #tpu.memory_space<vmem>>, vector<4x256xf32>
    %c8 = arith.constant 8 : index
    %c0_85 = arith.constant 0 : index
    %c0_86 = arith.constant 0 : index
    %150 = vector.load %arg4[%c8, %c0_85, %c0_86] : memref<49x4x1xf32, #tpu.memory_space<vmem>>, vector<1x4x1xf32>
    %151 = vector.shape_cast %150 : vector<1x4x1xf32> to vector<4x1xf32>
    %152 = vector.broadcast %151 : vector<4x1xf32> to vector<4x256xf32>
    %153 = arith.mulf %152, %149 : vector<4x256xf32>
    %154 = arith.addf %148, %153 : vector<4x256xf32>
    %c0_87 = arith.constant 0 : index
    %c110 = arith.constant 110 : index
    %155 = vector.load %arg6[%c0_87, %c110] : memref<4x512xf32, #tpu.memory_space<vmem>>, vector<4x256xf32>
    %c15 = arith.constant 15 : index
    %c0_88 = arith.constant 0 : index
    %c0_89 = arith.constant 0 : index
    %156 = vector.load %arg4[%c15, %c0_88, %c0_89] : memref<49x4x1xf32, #tpu.memory_space<vmem>>, vector<1x4x1xf32>
    %157 = vector.shape_cast %156 : vector<1x4x1xf32> to vector<4x1xf32>
    %158 = vector.broadcast %157 : vector<4x1xf32> to vector<4x256xf32>
    %159 = arith.mulf %158, %155 : vector<4x256xf32>
    %160 = arith.addf %154, %159 : vector<4x256xf32>
    %c0_90 = arith.constant 0 : index
    %c126 = arith.constant 126 : index
    %161 = vector.load %arg6[%c0_90, %c126] : memref<4x512xf32, #tpu.memory_space<vmem>>, vector<4x256xf32>
    %c22 = arith.constant 22 : index
    %c0_91 = arith.constant 0 : index
    %c0_92 = arith.constant 0 : index
    %162 = vector.load %arg4[%c22, %c0_91, %c0_92] : memref<49x4x1xf32, #tpu.memory_space<vmem>>, vector<1x4x1xf32>
    %163 = vector.shape_cast %162 : vector<1x4x1xf32> to vector<4x1xf32>
    %164 = vector.broadcast %163 : vector<4x1xf32> to vector<4x256xf32>
    %165 = arith.mulf %164, %161 : vector<4x256xf32>
    %166 = arith.addf %160, %165 : vector<4x256xf32>
    %c0_93 = arith.constant 0 : index
    %c142 = arith.constant 142 : index
    %167 = vector.load %arg6[%c0_93, %c142] : memref<4x512xf32, #tpu.memory_space<vmem>>, vector<4x256xf32>
    %c29 = arith.constant 29 : index
    %c0_94 = arith.constant 0 : index
    %c0_95 = arith.constant 0 : index
    %168 = vector.load %arg4[%c29, %c0_94, %c0_95] : memref<49x4x1xf32, #tpu.memory_space<vmem>>, vector<1x4x1xf32>
    %169 = vector.shape_cast %168 : vector<1x4x1xf32> to vector<4x1xf32>
    %170 = vector.broadcast %169 : vector<4x1xf32> to vector<4x256xf32>
    %171 = arith.mulf %170, %167 : vector<4x256xf32>
    %172 = arith.addf %166, %171 : vector<4x256xf32>
    %c0_96 = arith.constant 0 : index
    %c158 = arith.constant 158 : index
    %173 = vector.load %arg6[%c0_96, %c158] : memref<4x512xf32, #tpu.memory_space<vmem>>, vector<4x256xf32>
    %c36 = arith.constant 36 : index
    %c0_97 = arith.constant 0 : index
    %c0_98 = arith.constant 0 : index
    %174 = vector.load %arg4[%c36, %c0_97, %c0_98] : memref<49x4x1xf32, #tpu.memory_space<vmem>>, vector<1x4x1xf32>
    %175 = vector.shape_cast %174 : vector<1x4x1xf32> to vector<4x1xf32>
    %176 = vector.broadcast %175 : vector<4x1xf32> to vector<4x256xf32>
    %177 = arith.mulf %176, %173 : vector<4x256xf32>
    %178 = arith.addf %172, %177 : vector<4x256xf32>
    %c0_99 = arith.constant 0 : index
    %c174 = arith.constant 174 : index
    %179 = vector.load %arg6[%c0_99, %c174] : memref<4x512xf32, #tpu.memory_space<vmem>>, vector<4x256xf32>
    %c43 = arith.constant 43 : index
    %c0_100 = arith.constant 0 : index
    %c0_101 = arith.constant 0 : index
    %180 = vector.load %arg4[%c43, %c0_100, %c0_101] : memref<49x4x1xf32, #tpu.memory_space<vmem>>, vector<1x4x1xf32>
    %181 = vector.shape_cast %180 : vector<1x4x1xf32> to vector<4x1xf32>
    %182 = vector.broadcast %181 : vector<4x1xf32> to vector<4x256xf32>
    %183 = arith.mulf %182, %179 : vector<4x256xf32>
    %184 = arith.addf %178, %183 : vector<4x256xf32>
    %c2_i32 = arith.constant 2 : i32
    %185 = vector.broadcast %c2_i32 : i32 to vector<1x256xi32>
    %186 = arith.cmpi sge, %90, %185 : vector<1x256xi32>
    %cst_102 = arith.constant 0.000000e+00 : f32
    %187 = vector.shape_cast %186 : vector<1x256xi1> to vector<1x256xi1>
    %188 = vector.broadcast %187 : vector<1x256xi1> to vector<4x256xi1>
    %189 = vector.broadcast %cst_102 : f32 to vector<4x256xf32>
    %190 = arith.select %188, %184, %189 : vector<4x256xi1>, vector<4x256xf32>
    %191 = arith.addf %141, %190 : vector<4x256xf32>
    %cst_103 = arith.constant 0.000000e+00 : f32
    %192 = vector.broadcast %cst_103 : f32 to vector<4x256xf32>
    %c0_104 = arith.constant 0 : index
    %c79 = arith.constant 79 : index
    %193 = vector.load %arg6[%c0_104, %c79] : memref<4x512xf32, #tpu.memory_space<vmem>>, vector<4x256xf32>
    %c2_105 = arith.constant 2 : index
    %c0_106 = arith.constant 0 : index
    %c0_107 = arith.constant 0 : index
    %194 = vector.load %arg4[%c2_105, %c0_106, %c0_107] : memref<49x4x1xf32, #tpu.memory_space<vmem>>, vector<1x4x1xf32>
    %195 = vector.shape_cast %194 : vector<1x4x1xf32> to vector<4x1xf32>
    %196 = vector.broadcast %195 : vector<4x1xf32> to vector<4x256xf32>
    %197 = arith.mulf %196, %193 : vector<4x256xf32>
    %198 = arith.addf %192, %197 : vector<4x256xf32>
    %c0_108 = arith.constant 0 : index
    %c95 = arith.constant 95 : index
    %199 = vector.load %arg6[%c0_108, %c95] : memref<4x512xf32, #tpu.memory_space<vmem>>, vector<4x256xf32>
    %c9 = arith.constant 9 : index
    %c0_109 = arith.constant 0 : index
    %c0_110 = arith.constant 0 : index
    %200 = vector.load %arg4[%c9, %c0_109, %c0_110] : memref<49x4x1xf32, #tpu.memory_space<vmem>>, vector<1x4x1xf32>
    %201 = vector.shape_cast %200 : vector<1x4x1xf32> to vector<4x1xf32>
    %202 = vector.broadcast %201 : vector<4x1xf32> to vector<4x256xf32>
    %203 = arith.mulf %202, %199 : vector<4x256xf32>
    %204 = arith.addf %198, %203 : vector<4x256xf32>
    %c0_111 = arith.constant 0 : index
    %c111 = arith.constant 111 : index
    %205 = vector.load %arg6[%c0_111, %c111] : memref<4x512xf32, #tpu.memory_space<vmem>>, vector<4x256xf32>
    %c16 = arith.constant 16 : index
    %c0_112 = arith.constant 0 : index
    %c0_113 = arith.constant 0 : index
    %206 = vector.load %arg4[%c16, %c0_112, %c0_113] : memref<49x4x1xf32, #tpu.memory_space<vmem>>, vector<1x4x1xf32>
    %207 = vector.shape_cast %206 : vector<1x4x1xf32> to vector<4x1xf32>
    %208 = vector.broadcast %207 : vector<4x1xf32> to vector<4x256xf32>
    %209 = arith.mulf %208, %205 : vector<4x256xf32>
    %210 = arith.addf %204, %209 : vector<4x256xf32>
    %c0_114 = arith.constant 0 : index
    %c127 = arith.constant 127 : index
    %211 = vector.load %arg6[%c0_114, %c127] : memref<4x512xf32, #tpu.memory_space<vmem>>, vector<4x256xf32>
    %c23 = arith.constant 23 : index
    %c0_115 = arith.constant 0 : index
    %c0_116 = arith.constant 0 : index
    %212 = vector.load %arg4[%c23, %c0_115, %c0_116] : memref<49x4x1xf32, #tpu.memory_space<vmem>>, vector<1x4x1xf32>
    %213 = vector.shape_cast %212 : vector<1x4x1xf32> to vector<4x1xf32>
    %214 = vector.broadcast %213 : vector<4x1xf32> to vector<4x256xf32>
    %215 = arith.mulf %214, %211 : vector<4x256xf32>
    %216 = arith.addf %210, %215 : vector<4x256xf32>
    %c0_117 = arith.constant 0 : index
    %c143 = arith.constant 143 : index
    %217 = vector.load %arg6[%c0_117, %c143] : memref<4x512xf32, #tpu.memory_space<vmem>>, vector<4x256xf32>
    %c30 = arith.constant 30 : index
    %c0_118 = arith.constant 0 : index
    %c0_119 = arith.constant 0 : index
    %218 = vector.load %arg4[%c30, %c0_118, %c0_119] : memref<49x4x1xf32, #tpu.memory_space<vmem>>, vector<1x4x1xf32>
    %219 = vector.shape_cast %218 : vector<1x4x1xf32> to vector<4x1xf32>
    %220 = vector.broadcast %219 : vector<4x1xf32> to vector<4x256xf32>
    %221 = arith.mulf %220, %217 : vector<4x256xf32>
    %222 = arith.addf %216, %221 : vector<4x256xf32>
    %c0_120 = arith.constant 0 : index
    %c159 = arith.constant 159 : index
    %223 = vector.load %arg6[%c0_120, %c159] : memref<4x512xf32, #tpu.memory_space<vmem>>, vector<4x256xf32>
    %c37 = arith.constant 37 : index
    %c0_121 = arith.constant 0 : index
    %c0_122 = arith.constant 0 : index
    %224 = vector.load %arg4[%c37, %c0_121, %c0_122] : memref<49x4x1xf32, #tpu.memory_space<vmem>>, vector<1x4x1xf32>
    %225 = vector.shape_cast %224 : vector<1x4x1xf32> to vector<4x1xf32>
    %226 = vector.broadcast %225 : vector<4x1xf32> to vector<4x256xf32>
    %227 = arith.mulf %226, %223 : vector<4x256xf32>
    %228 = arith.addf %222, %227 : vector<4x256xf32>
    %c0_123 = arith.constant 0 : index
    %c175 = arith.constant 175 : index
    %229 = vector.load %arg6[%c0_123, %c175] : memref<4x512xf32, #tpu.memory_space<vmem>>, vector<4x256xf32>
    %c44 = arith.constant 44 : index
    %c0_124 = arith.constant 0 : index
    %c0_125 = arith.constant 0 : index
    %230 = vector.load %arg4[%c44, %c0_124, %c0_125] : memref<49x4x1xf32, #tpu.memory_space<vmem>>, vector<1x4x1xf32>
    %231 = vector.shape_cast %230 : vector<1x4x1xf32> to vector<4x1xf32>
    %232 = vector.broadcast %231 : vector<4x1xf32> to vector<4x256xf32>
    %233 = arith.mulf %232, %229 : vector<4x256xf32>
    %234 = arith.addf %228, %233 : vector<4x256xf32>
    %c1_i32_126 = arith.constant 1 : i32
    %235 = vector.broadcast %c1_i32_126 : i32 to vector<1x256xi32>
    %236 = arith.cmpi sge, %90, %235 : vector<1x256xi32>
    %cst_127 = arith.constant 0.000000e+00 : f32
    %237 = vector.shape_cast %236 : vector<1x256xi1> to vector<1x256xi1>
    %238 = vector.broadcast %237 : vector<1x256xi1> to vector<4x256xi1>
    %239 = vector.broadcast %cst_127 : f32 to vector<4x256xf32>
    %240 = arith.select %238, %234, %239 : vector<4x256xi1>, vector<4x256xf32>
    %241 = arith.addf %191, %240 : vector<4x256xf32>
    %cst_128 = arith.constant 0.000000e+00 : f32
    %242 = vector.broadcast %cst_128 : f32 to vector<4x256xf32>
    %c0_129 = arith.constant 0 : index
    %c80 = arith.constant 80 : index
    %243 = vector.load %arg6[%c0_129, %c80] : memref<4x512xf32, #tpu.memory_space<vmem>>, vector<4x256xf32>
    %c3 = arith.constant 3 : index
    %c0_130 = arith.constant 0 : index
    %c0_131 = arith.constant 0 : index
    %244 = vector.load %arg4[%c3, %c0_130, %c0_131] : memref<49x4x1xf32, #tpu.memory_space<vmem>>, vector<1x4x1xf32>
    %245 = vector.shape_cast %244 : vector<1x4x1xf32> to vector<4x1xf32>
    %246 = vector.broadcast %245 : vector<4x1xf32> to vector<4x256xf32>
    %247 = arith.mulf %246, %243 : vector<4x256xf32>
    %248 = arith.addf %242, %247 : vector<4x256xf32>
    %c0_132 = arith.constant 0 : index
    %c96 = arith.constant 96 : index
    %249 = vector.load %arg6[%c0_132, %c96] : memref<4x512xf32, #tpu.memory_space<vmem>>, vector<4x256xf32>
    %c10 = arith.constant 10 : index
    %c0_133 = arith.constant 0 : index
    %c0_134 = arith.constant 0 : index
    %250 = vector.load %arg4[%c10, %c0_133, %c0_134] : memref<49x4x1xf32, #tpu.memory_space<vmem>>, vector<1x4x1xf32>
    %251 = vector.shape_cast %250 : vector<1x4x1xf32> to vector<4x1xf32>
    %252 = vector.broadcast %251 : vector<4x1xf32> to vector<4x256xf32>
    %253 = arith.mulf %252, %249 : vector<4x256xf32>
    %254 = arith.addf %248, %253 : vector<4x256xf32>
    %c0_135 = arith.constant 0 : index
    %c112 = arith.constant 112 : index
    %255 = vector.load %arg6[%c0_135, %c112] : memref<4x512xf32, #tpu.memory_space<vmem>>, vector<4x256xf32>
    %c17 = arith.constant 17 : index
    %c0_136 = arith.constant 0 : index
    %c0_137 = arith.constant 0 : index
    %256 = vector.load %arg4[%c17, %c0_136, %c0_137] : memref<49x4x1xf32, #tpu.memory_space<vmem>>, vector<1x4x1xf32>
    %257 = vector.shape_cast %256 : vector<1x4x1xf32> to vector<4x1xf32>
    %258 = vector.broadcast %257 : vector<4x1xf32> to vector<4x256xf32>
    %259 = arith.mulf %258, %255 : vector<4x256xf32>
    %260 = arith.addf %254, %259 : vector<4x256xf32>
    %c0_138 = arith.constant 0 : index
    %c128_139 = arith.constant 128 : index
    %261 = vector.load %arg6[%c0_138, %c128_139] : memref<4x512xf32, #tpu.memory_space<vmem>>, vector<4x256xf32>
    %c24 = arith.constant 24 : index
    %c0_140 = arith.constant 0 : index
    %c0_141 = arith.constant 0 : index
    %262 = vector.load %arg4[%c24, %c0_140, %c0_141] : memref<49x4x1xf32, #tpu.memory_space<vmem>>, vector<1x4x1xf32>
    %263 = vector.shape_cast %262 : vector<1x4x1xf32> to vector<4x1xf32>
    %264 = vector.broadcast %263 : vector<4x1xf32> to vector<4x256xf32>
    %265 = arith.mulf %264, %261 : vector<4x256xf32>
    %266 = arith.addf %260, %265 : vector<4x256xf32>
    %c0_142 = arith.constant 0 : index
    %c144 = arith.constant 144 : index
    %267 = vector.load %arg6[%c0_142, %c144] : memref<4x512xf32, #tpu.memory_space<vmem>>, vector<4x256xf32>
    %c31 = arith.constant 31 : index
    %c0_143 = arith.constant 0 : index
    %c0_144 = arith.constant 0 : index
    %268 = vector.load %arg4[%c31, %c0_143, %c0_144] : memref<49x4x1xf32, #tpu.memory_space<vmem>>, vector<1x4x1xf32>
    %269 = vector.shape_cast %268 : vector<1x4x1xf32> to vector<4x1xf32>
    %270 = vector.broadcast %269 : vector<4x1xf32> to vector<4x256xf32>
    %271 = arith.mulf %270, %267 : vector<4x256xf32>
    %272 = arith.addf %266, %271 : vector<4x256xf32>
    %c0_145 = arith.constant 0 : index
    %c160 = arith.constant 160 : index
    %273 = vector.load %arg6[%c0_145, %c160] : memref<4x512xf32, #tpu.memory_space<vmem>>, vector<4x256xf32>
    %c38 = arith.constant 38 : index
    %c0_146 = arith.constant 0 : index
    %c0_147 = arith.constant 0 : index
    %274 = vector.load %arg4[%c38, %c0_146, %c0_147] : memref<49x4x1xf32, #tpu.memory_space<vmem>>, vector<1x4x1xf32>
    %275 = vector.shape_cast %274 : vector<1x4x1xf32> to vector<4x1xf32>
    %276 = vector.broadcast %275 : vector<4x1xf32> to vector<4x256xf32>
    %277 = arith.mulf %276, %273 : vector<4x256xf32>
    %278 = arith.addf %272, %277 : vector<4x256xf32>
    %c0_148 = arith.constant 0 : index
    %c176 = arith.constant 176 : index
    %279 = vector.load %arg6[%c0_148, %c176] : memref<4x512xf32, #tpu.memory_space<vmem>>, vector<4x256xf32>
    %c45 = arith.constant 45 : index
    %c0_149 = arith.constant 0 : index
    %c0_150 = arith.constant 0 : index
    %280 = vector.load %arg4[%c45, %c0_149, %c0_150] : memref<49x4x1xf32, #tpu.memory_space<vmem>>, vector<1x4x1xf32>
    %281 = vector.shape_cast %280 : vector<1x4x1xf32> to vector<4x1xf32>
    %282 = vector.broadcast %281 : vector<4x1xf32> to vector<4x256xf32>
    %283 = arith.mulf %282, %279 : vector<4x256xf32>
    %284 = arith.addf %278, %283 : vector<4x256xf32>
    %285 = arith.addf %241, %284 : vector<4x256xf32>
    %cst_151 = arith.constant 0.000000e+00 : f32
    %286 = vector.broadcast %cst_151 : f32 to vector<4x256xf32>
    %c0_152 = arith.constant 0 : index
    %c81 = arith.constant 81 : index
    %287 = vector.load %arg6[%c0_152, %c81] : memref<4x512xf32, #tpu.memory_space<vmem>>, vector<4x256xf32>
    %c4 = arith.constant 4 : index
    %c0_153 = arith.constant 0 : index
    %c0_154 = arith.constant 0 : index
    %288 = vector.load %arg4[%c4, %c0_153, %c0_154] : memref<49x4x1xf32, #tpu.memory_space<vmem>>, vector<1x4x1xf32>
    %289 = vector.shape_cast %288 : vector<1x4x1xf32> to vector<4x1xf32>
    %290 = vector.broadcast %289 : vector<4x1xf32> to vector<4x256xf32>
    %291 = arith.mulf %290, %287 : vector<4x256xf32>
    %292 = arith.addf %286, %291 : vector<4x256xf32>
    %c0_155 = arith.constant 0 : index
    %c97 = arith.constant 97 : index
    %293 = vector.load %arg6[%c0_155, %c97] : memref<4x512xf32, #tpu.memory_space<vmem>>, vector<4x256xf32>
    %c11 = arith.constant 11 : index
    %c0_156 = arith.constant 0 : index
    %c0_157 = arith.constant 0 : index
    %294 = vector.load %arg4[%c11, %c0_156, %c0_157] : memref<49x4x1xf32, #tpu.memory_space<vmem>>, vector<1x4x1xf32>
    %295 = vector.shape_cast %294 : vector<1x4x1xf32> to vector<4x1xf32>
    %296 = vector.broadcast %295 : vector<4x1xf32> to vector<4x256xf32>
    %297 = arith.mulf %296, %293 : vector<4x256xf32>
    %298 = arith.addf %292, %297 : vector<4x256xf32>
    %c0_158 = arith.constant 0 : index
    %c113 = arith.constant 113 : index
    %299 = vector.load %arg6[%c0_158, %c113] : memref<4x512xf32, #tpu.memory_space<vmem>>, vector<4x256xf32>
    %c18 = arith.constant 18 : index
    %c0_159 = arith.constant 0 : index
    %c0_160 = arith.constant 0 : index
    %300 = vector.load %arg4[%c18, %c0_159, %c0_160] : memref<49x4x1xf32, #tpu.memory_space<vmem>>, vector<1x4x1xf32>
    %301 = vector.shape_cast %300 : vector<1x4x1xf32> to vector<4x1xf32>
    %302 = vector.broadcast %301 : vector<4x1xf32> to vector<4x256xf32>
    %303 = arith.mulf %302, %299 : vector<4x256xf32>
    %304 = arith.addf %298, %303 : vector<4x256xf32>
    %c0_161 = arith.constant 0 : index
    %c129 = arith.constant 129 : index
    %305 = vector.load %arg6[%c0_161, %c129] : memref<4x512xf32, #tpu.memory_space<vmem>>, vector<4x256xf32>
    %c25 = arith.constant 25 : index
    %c0_162 = arith.constant 0 : index
    %c0_163 = arith.constant 0 : index
    %306 = vector.load %arg4[%c25, %c0_162, %c0_163] : memref<49x4x1xf32, #tpu.memory_space<vmem>>, vector<1x4x1xf32>
    %307 = vector.shape_cast %306 : vector<1x4x1xf32> to vector<4x1xf32>
    %308 = vector.broadcast %307 : vector<4x1xf32> to vector<4x256xf32>
    %309 = arith.mulf %308, %305 : vector<4x256xf32>
    %310 = arith.addf %304, %309 : vector<4x256xf32>
    %c0_164 = arith.constant 0 : index
    %c145 = arith.constant 145 : index
    %311 = vector.load %arg6[%c0_164, %c145] : memref<4x512xf32, #tpu.memory_space<vmem>>, vector<4x256xf32>
    %c32 = arith.constant 32 : index
    %c0_165 = arith.constant 0 : index
    %c0_166 = arith.constant 0 : index
    %312 = vector.load %arg4[%c32, %c0_165, %c0_166] : memref<49x4x1xf32, #tpu.memory_space<vmem>>, vector<1x4x1xf32>
    %313 = vector.shape_cast %312 : vector<1x4x1xf32> to vector<4x1xf32>
    %314 = vector.broadcast %313 : vector<4x1xf32> to vector<4x256xf32>
    %315 = arith.mulf %314, %311 : vector<4x256xf32>
    %316 = arith.addf %310, %315 : vector<4x256xf32>
    %c0_167 = arith.constant 0 : index
    %c161 = arith.constant 161 : index
    %317 = vector.load %arg6[%c0_167, %c161] : memref<4x512xf32, #tpu.memory_space<vmem>>, vector<4x256xf32>
    %c39 = arith.constant 39 : index
    %c0_168 = arith.constant 0 : index
    %c0_169 = arith.constant 0 : index
    %318 = vector.load %arg4[%c39, %c0_168, %c0_169] : memref<49x4x1xf32, #tpu.memory_space<vmem>>, vector<1x4x1xf32>
    %319 = vector.shape_cast %318 : vector<1x4x1xf32> to vector<4x1xf32>
    %320 = vector.broadcast %319 : vector<4x1xf32> to vector<4x256xf32>
    %321 = arith.mulf %320, %317 : vector<4x256xf32>
    %322 = arith.addf %316, %321 : vector<4x256xf32>
    %c0_170 = arith.constant 0 : index
    %c177 = arith.constant 177 : index
    %323 = vector.load %arg6[%c0_170, %c177] : memref<4x512xf32, #tpu.memory_space<vmem>>, vector<4x256xf32>
    %c46 = arith.constant 46 : index
    %c0_171 = arith.constant 0 : index
    %c0_172 = arith.constant 0 : index
    %324 = vector.load %arg4[%c46, %c0_171, %c0_172] : memref<49x4x1xf32, #tpu.memory_space<vmem>>, vector<1x4x1xf32>
    %325 = vector.shape_cast %324 : vector<1x4x1xf32> to vector<4x1xf32>
    %326 = vector.broadcast %325 : vector<4x1xf32> to vector<4x256xf32>
    %327 = arith.mulf %326, %323 : vector<4x256xf32>
    %328 = arith.addf %322, %327 : vector<4x256xf32>
    %c15_i32 = arith.constant 15 : i32
    %329 = vector.broadcast %c15_i32 : i32 to vector<1x256xi32>
    %330 = arith.cmpi slt, %90, %329 : vector<1x256xi32>
    %cst_173 = arith.constant 0.000000e+00 : f32
    %331 = vector.shape_cast %330 : vector<1x256xi1> to vector<1x256xi1>
    %332 = vector.broadcast %331 : vector<1x256xi1> to vector<4x256xi1>
    %333 = vector.broadcast %cst_173 : f32 to vector<4x256xf32>
    %334 = arith.select %332, %328, %333 : vector<4x256xi1>, vector<4x256xf32>
    %335 = arith.addf %285, %334 : vector<4x256xf32>
    %cst_174 = arith.constant 0.000000e+00 : f32
    %336 = vector.broadcast %cst_174 : f32 to vector<4x256xf32>
    %c0_175 = arith.constant 0 : index
    %c82 = arith.constant 82 : index
    %337 = vector.load %arg6[%c0_175, %c82] : memref<4x512xf32, #tpu.memory_space<vmem>>, vector<4x256xf32>
    %c5 = arith.constant 5 : index
    %c0_176 = arith.constant 0 : index
    %c0_177 = arith.constant 0 : index
    %338 = vector.load %arg4[%c5, %c0_176, %c0_177] : memref<49x4x1xf32, #tpu.memory_space<vmem>>, vector<1x4x1xf32>
    %339 = vector.shape_cast %338 : vector<1x4x1xf32> to vector<4x1xf32>
    %340 = vector.broadcast %339 : vector<4x1xf32> to vector<4x256xf32>
    %341 = arith.mulf %340, %337 : vector<4x256xf32>
    %342 = arith.addf %336, %341 : vector<4x256xf32>
    %c0_178 = arith.constant 0 : index
    %c98 = arith.constant 98 : index
    %343 = vector.load %arg6[%c0_178, %c98] : memref<4x512xf32, #tpu.memory_space<vmem>>, vector<4x256xf32>
    %c12 = arith.constant 12 : index
    %c0_179 = arith.constant 0 : index
    %c0_180 = arith.constant 0 : index
    %344 = vector.load %arg4[%c12, %c0_179, %c0_180] : memref<49x4x1xf32, #tpu.memory_space<vmem>>, vector<1x4x1xf32>
    %345 = vector.shape_cast %344 : vector<1x4x1xf32> to vector<4x1xf32>
    %346 = vector.broadcast %345 : vector<4x1xf32> to vector<4x256xf32>
    %347 = arith.mulf %346, %343 : vector<4x256xf32>
    %348 = arith.addf %342, %347 : vector<4x256xf32>
    %c0_181 = arith.constant 0 : index
    %c114 = arith.constant 114 : index
    %349 = vector.load %arg6[%c0_181, %c114] : memref<4x512xf32, #tpu.memory_space<vmem>>, vector<4x256xf32>
    %c19 = arith.constant 19 : index
    %c0_182 = arith.constant 0 : index
    %c0_183 = arith.constant 0 : index
    %350 = vector.load %arg4[%c19, %c0_182, %c0_183] : memref<49x4x1xf32, #tpu.memory_space<vmem>>, vector<1x4x1xf32>
    %351 = vector.shape_cast %350 : vector<1x4x1xf32> to vector<4x1xf32>
    %352 = vector.broadcast %351 : vector<4x1xf32> to vector<4x256xf32>
    %353 = arith.mulf %352, %349 : vector<4x256xf32>
    %354 = arith.addf %348, %353 : vector<4x256xf32>
    %c0_184 = arith.constant 0 : index
    %c130 = arith.constant 130 : index
    %355 = vector.load %arg6[%c0_184, %c130] : memref<4x512xf32, #tpu.memory_space<vmem>>, vector<4x256xf32>
    %c26 = arith.constant 26 : index
    %c0_185 = arith.constant 0 : index
    %c0_186 = arith.constant 0 : index
    %356 = vector.load %arg4[%c26, %c0_185, %c0_186] : memref<49x4x1xf32, #tpu.memory_space<vmem>>, vector<1x4x1xf32>
    %357 = vector.shape_cast %356 : vector<1x4x1xf32> to vector<4x1xf32>
    %358 = vector.broadcast %357 : vector<4x1xf32> to vector<4x256xf32>
    %359 = arith.mulf %358, %355 : vector<4x256xf32>
    %360 = arith.addf %354, %359 : vector<4x256xf32>
    %c0_187 = arith.constant 0 : index
    %c146 = arith.constant 146 : index
    %361 = vector.load %arg6[%c0_187, %c146] : memref<4x512xf32, #tpu.memory_space<vmem>>, vector<4x256xf32>
    %c33 = arith.constant 33 : index
    %c0_188 = arith.constant 0 : index
    %c0_189 = arith.constant 0 : index
    %362 = vector.load %arg4[%c33, %c0_188, %c0_189] : memref<49x4x1xf32, #tpu.memory_space<vmem>>, vector<1x4x1xf32>
    %363 = vector.shape_cast %362 : vector<1x4x1xf32> to vector<4x1xf32>
    %364 = vector.broadcast %363 : vector<4x1xf32> to vector<4x256xf32>
    %365 = arith.mulf %364, %361 : vector<4x256xf32>
    %366 = arith.addf %360, %365 : vector<4x256xf32>
    %c0_190 = arith.constant 0 : index
    %c162 = arith.constant 162 : index
    %367 = vector.load %arg6[%c0_190, %c162] : memref<4x512xf32, #tpu.memory_space<vmem>>, vector<4x256xf32>
    %c40 = arith.constant 40 : index
    %c0_191 = arith.constant 0 : index
    %c0_192 = arith.constant 0 : index
    %368 = vector.load %arg4[%c40, %c0_191, %c0_192] : memref<49x4x1xf32, #tpu.memory_space<vmem>>, vector<1x4x1xf32>
    %369 = vector.shape_cast %368 : vector<1x4x1xf32> to vector<4x1xf32>
    %370 = vector.broadcast %369 : vector<4x1xf32> to vector<4x256xf32>
    %371 = arith.mulf %370, %367 : vector<4x256xf32>
    %372 = arith.addf %366, %371 : vector<4x256xf32>
    %c0_193 = arith.constant 0 : index
    %c178 = arith.constant 178 : index
    %373 = vector.load %arg6[%c0_193, %c178] : memref<4x512xf32, #tpu.memory_space<vmem>>, vector<4x256xf32>
    %c47 = arith.constant 47 : index
    %c0_194 = arith.constant 0 : index
    %c0_195 = arith.constant 0 : index
    %374 = vector.load %arg4[%c47, %c0_194, %c0_195] : memref<49x4x1xf32, #tpu.memory_space<vmem>>, vector<1x4x1xf32>
    %375 = vector.shape_cast %374 : vector<1x4x1xf32> to vector<4x1xf32>
    %376 = vector.broadcast %375 : vector<4x1xf32> to vector<4x256xf32>
    %377 = arith.mulf %376, %373 : vector<4x256xf32>
    %378 = arith.addf %372, %377 : vector<4x256xf32>
    %c14_i32 = arith.constant 14 : i32
    %379 = vector.broadcast %c14_i32 : i32 to vector<1x256xi32>
    %380 = arith.cmpi slt, %90, %379 : vector<1x256xi32>
    %cst_196 = arith.constant 0.000000e+00 : f32
    %381 = vector.shape_cast %380 : vector<1x256xi1> to vector<1x256xi1>
    %382 = vector.broadcast %381 : vector<1x256xi1> to vector<4x256xi1>
    %383 = vector.broadcast %cst_196 : f32 to vector<4x256xf32>
    %384 = arith.select %382, %378, %383 : vector<4x256xi1>, vector<4x256xf32>
    %385 = arith.addf %335, %384 : vector<4x256xf32>
    %cst_197 = arith.constant 0.000000e+00 : f32
    %386 = vector.broadcast %cst_197 : f32 to vector<4x256xf32>
    %c0_198 = arith.constant 0 : index
    %c83 = arith.constant 83 : index
    %387 = vector.load %arg6[%c0_198, %c83] : memref<4x512xf32, #tpu.memory_space<vmem>>, vector<4x256xf32>
    %c6 = arith.constant 6 : index
    %c0_199 = arith.constant 0 : index
    %c0_200 = arith.constant 0 : index
    %388 = vector.load %arg4[%c6, %c0_199, %c0_200] : memref<49x4x1xf32, #tpu.memory_space<vmem>>, vector<1x4x1xf32>
    %389 = vector.shape_cast %388 : vector<1x4x1xf32> to vector<4x1xf32>
    %390 = vector.broadcast %389 : vector<4x1xf32> to vector<4x256xf32>
    %391 = arith.mulf %390, %387 : vector<4x256xf32>
    %392 = arith.addf %386, %391 : vector<4x256xf32>
    %c0_201 = arith.constant 0 : index
    %c99 = arith.constant 99 : index
    %393 = vector.load %arg6[%c0_201, %c99] : memref<4x512xf32, #tpu.memory_space<vmem>>, vector<4x256xf32>
    %c13 = arith.constant 13 : index
    %c0_202 = arith.constant 0 : index
    %c0_203 = arith.constant 0 : index
    %394 = vector.load %arg4[%c13, %c0_202, %c0_203] : memref<49x4x1xf32, #tpu.memory_space<vmem>>, vector<1x4x1xf32>
    %395 = vector.shape_cast %394 : vector<1x4x1xf32> to vector<4x1xf32>
    %396 = vector.broadcast %395 : vector<4x1xf32> to vector<4x256xf32>
    %397 = arith.mulf %396, %393 : vector<4x256xf32>
    %398 = arith.addf %392, %397 : vector<4x256xf32>
    %c0_204 = arith.constant 0 : index
    %c115 = arith.constant 115 : index
    %399 = vector.load %arg6[%c0_204, %c115] : memref<4x512xf32, #tpu.memory_space<vmem>>, vector<4x256xf32>
    %c20 = arith.constant 20 : index
    %c0_205 = arith.constant 0 : index
    %c0_206 = arith.constant 0 : index
    %400 = vector.load %arg4[%c20, %c0_205, %c0_206] : memref<49x4x1xf32, #tpu.memory_space<vmem>>, vector<1x4x1xf32>
    %401 = vector.shape_cast %400 : vector<1x4x1xf32> to vector<4x1xf32>
    %402 = vector.broadcast %401 : vector<4x1xf32> to vector<4x256xf32>
    %403 = arith.mulf %402, %399 : vector<4x256xf32>
    %404 = arith.addf %398, %403 : vector<4x256xf32>
    %c0_207 = arith.constant 0 : index
    %c131 = arith.constant 131 : index
    %405 = vector.load %arg6[%c0_207, %c131] : memref<4x512xf32, #tpu.memory_space<vmem>>, vector<4x256xf32>
    %c27 = arith.constant 27 : index
    %c0_208 = arith.constant 0 : index
    %c0_209 = arith.constant 0 : index
    %406 = vector.load %arg4[%c27, %c0_208, %c0_209] : memref<49x4x1xf32, #tpu.memory_space<vmem>>, vector<1x4x1xf32>
    %407 = vector.shape_cast %406 : vector<1x4x1xf32> to vector<4x1xf32>
    %408 = vector.broadcast %407 : vector<4x1xf32> to vector<4x256xf32>
    %409 = arith.mulf %408, %405 : vector<4x256xf32>
    %410 = arith.addf %404, %409 : vector<4x256xf32>
    %c0_210 = arith.constant 0 : index
    %c147 = arith.constant 147 : index
    %411 = vector.load %arg6[%c0_210, %c147] : memref<4x512xf32, #tpu.memory_space<vmem>>, vector<4x256xf32>
    %c34 = arith.constant 34 : index
    %c0_211 = arith.constant 0 : index
    %c0_212 = arith.constant 0 : index
    %412 = vector.load %arg4[%c34, %c0_211, %c0_212] : memref<49x4x1xf32, #tpu.memory_space<vmem>>, vector<1x4x1xf32>
    %413 = vector.shape_cast %412 : vector<1x4x1xf32> to vector<4x1xf32>
    %414 = vector.broadcast %413 : vector<4x1xf32> to vector<4x256xf32>
    %415 = arith.mulf %414, %411 : vector<4x256xf32>
    %416 = arith.addf %410, %415 : vector<4x256xf32>
    %c0_213 = arith.constant 0 : index
    %c163 = arith.constant 163 : index
    %417 = vector.load %arg6[%c0_213, %c163] : memref<4x512xf32, #tpu.memory_space<vmem>>, vector<4x256xf32>
    %c41 = arith.constant 41 : index
    %c0_214 = arith.constant 0 : index
    %c0_215 = arith.constant 0 : index
    %418 = vector.load %arg4[%c41, %c0_214, %c0_215] : memref<49x4x1xf32, #tpu.memory_space<vmem>>, vector<1x4x1xf32>
    %419 = vector.shape_cast %418 : vector<1x4x1xf32> to vector<4x1xf32>
    %420 = vector.broadcast %419 : vector<4x1xf32> to vector<4x256xf32>
    %421 = arith.mulf %420, %417 : vector<4x256xf32>
    %422 = arith.addf %416, %421 : vector<4x256xf32>
    %c0_216 = arith.constant 0 : index
    %c179 = arith.constant 179 : index
    %423 = vector.load %arg6[%c0_216, %c179] : memref<4x512xf32, #tpu.memory_space<vmem>>, vector<4x256xf32>
    %c48 = arith.constant 48 : index
    %c0_217 = arith.constant 0 : index
    %c0_218 = arith.constant 0 : index
    %424 = vector.load %arg4[%c48, %c0_217, %c0_218] : memref<49x4x1xf32, #tpu.memory_space<vmem>>, vector<1x4x1xf32>
    %425 = vector.shape_cast %424 : vector<1x4x1xf32> to vector<4x1xf32>
    %426 = vector.broadcast %425 : vector<4x1xf32> to vector<4x256xf32>
    %427 = arith.mulf %426, %423 : vector<4x256xf32>
    %428 = arith.addf %422, %427 : vector<4x256xf32>
    %c13_i32 = arith.constant 13 : i32
    %429 = vector.broadcast %c13_i32 : i32 to vector<1x256xi32>
    %430 = arith.cmpi slt, %90, %429 : vector<1x256xi32>
    %cst_219 = arith.constant 0.000000e+00 : f32
    %431 = vector.shape_cast %430 : vector<1x256xi1> to vector<1x256xi1>
    %432 = vector.broadcast %431 : vector<1x256xi1> to vector<4x256xi1>
    %433 = vector.broadcast %cst_219 : f32 to vector<4x256xf32>
    %434 = arith.select %432, %428, %433 : vector<4x256xi1>, vector<4x256xf32>
    %435 = arith.addf %385, %434 : vector<4x256xf32>
    %436 = vector.extract_strided_slice %435 {offsets = [0, 0], sizes = [2, 256], strides = [1, 1]} : vector<4x256xf32> to vector<2x256xf32>
    %437 = vector.extract_strided_slice %435 {offsets = [2, 0], sizes = [2, 256], strides = [1, 1]} : vector<4x256xf32> to vector<2x256xf32>
    %438 = arith.addf %436, %437 : vector<2x256xf32>
    %cst_220 = arith.constant 5.000000e-01 : f32
    %439 = vector.broadcast %cst_220 : f32 to vector<2x256xf32>
    %440 = arith.mulf %439, %438 : vector<2x256xf32>
    %441 = math.tanh %440 : vector<2x256xf32>
    %cst_221 = arith.constant 1.000000e+00 : f32
    %442 = vector.broadcast %cst_221 : f32 to vector<2x256xf32>
    %443 = arith.addf %441, %442 : vector<2x256xf32>
    %cst_222 = arith.constant 5.000000e-01 : f32
    %444 = vector.broadcast %cst_222 : f32 to vector<2x256xf32>
    %445 = arith.mulf %444, %443 : vector<2x256xf32>
    %c0_223 = arith.constant 0 : index
    %c0_224 = arith.constant 0 : index
    %c0_225 = arith.constant 0 : index
    %446 = vector.load %arg5[%c0_223, %c0_224, %c0_225] : memref<2x32x256xf32, #tpu.memory_space<vmem>>, vector<2x32x256xf32>
    %447 = vector.shape_cast %445 : vector<2x256xf32> to vector<2x1x256xf32>
    %448 = vector.broadcast %447 : vector<2x1x256xf32> to vector<2x32x256xf32>
    %449 = arith.mulf %446, %448 : vector<2x32x256xf32>
    %c0_226 = arith.constant 0 : index
    %c0_227 = arith.constant 0 : index
    %c0_228 = arith.constant 0 : index
    %450 = vector.load %arg5[%c0_226, %c0_227, %c0_228] : memref<2x32x256xf32, #tpu.memory_space<vmem>>, vector<2x32x256xf32>
    tpu.vector_store %arg5[%c0_226, %c0_227, %c0_228], %449 {strides = array<i32>} : memref<2x32x256xf32, #tpu.memory_space<vmem>>, vector<2x32x256xf32>,
    return
  }
  func.func @transform_0(%arg0: i32) -> (i32, i32, i32) {
    %c0_i32 = arith.constant 0 : i32
    %c0_i32_0 = arith.constant 0 : i32
    %c0_i32_1 = arith.constant 0 : i32
    return %arg0, %c0_i32, %c0_i32_0 : i32, i32, i32
  }
  func.func @transform_1(%arg0: i32) -> (i32, i32, i32) {
    %c0_i32 = arith.constant 0 : i32
    %c0_i32_0 = arith.constant 0 : i32
    %c0_i32_1 = arith.constant 0 : i32
    %c0_i32_2 = arith.constant 0 : i32
    return %c0_i32, %c0_i32_0, %c0_i32_1 : i32, i32, i32
  }
  func.func @transform_2(%arg0: i32) -> (i32, i32, i32) {
    %c0_i32 = arith.constant 0 : i32
    %c0_i32_0 = arith.constant 0 : i32
    %c0_i32_1 = arith.constant 0 : i32
    %c0_i32_2 = arith.constant 0 : i32
    return %c0_i32, %c0_i32_0, %c0_i32_1 : i32, i32, i32
  }
  func.func @transform_3(%arg0: i32) -> (i32, i32, i32) {
    %c0_i32 = arith.constant 0 : i32
    %c0_i32_0 = arith.constant 0 : i32
    %c0_i32_1 = arith.constant 0 : i32
    %c0_i32_2 = arith.constant 0 : i32
    return %c0_i32, %c0_i32_0, %c0_i32_1 : i32, i32, i32
  }
  func.func @transform_4(%arg0: i32) -> (i32, i32, i32) {
    %c0_i32 = arith.constant 0 : i32
    %c0_i32_0 = arith.constant 0 : i32
    %c0_i32_1 = arith.constant 0 : i32
    return %arg0, %c0_i32, %c0_i32_0 : i32, i32, i32
  }
}

</mosaic_0001>

<bundles_post_ra>
// kernel: _cbam_impl.1
= control target key start
LH: loop header
LB: loop body
LE: loop exit
PB: predicated region body
PF: predicated region fallthrough
CT: control target
= control target key end

     0   :  { %s2524_s15 = smov 0   ;;  %s3652_s0 = inlined_call_operand.vmem [shape: f32[4,32,256], index: 0, kind: input, shape index: {}]   ;;  %s3653_s1 = inlined_call_operand.vmem [shape: f32[2,32,1], index: 1, kind: input, shape index: {}]   ;;  %s3654_s2 = inlined_call_operand.vmem [shape: f32[2,32,1], index: 2, kind: input, shape index: {}]   ;;  %s3655_s3 = inlined_call_operand.vmem [shape: f32[49,4,1], index: 3, kind: input, shape index: {}]   ;;  %s3656_s4 = inlined_call_operand.vmem [shape: f32[4,32,256], index: 4, kind: output, shape index: {}]  }
   0x1 LB: > { %s2271_s16 = sadd.s32 4294967295, %s2446_s15   ;;  %p2275_p0 = scmp.ge.s32.totalorder %s2446_s15, 1  ;;  %s2446_s15 = sphi %s2524_s15, %s14_s15  }
   0x2   : > { %p164_p1 = scmp.lt.s32.totalorder %s2446_s15, 3 }
   0x4   : > { %p165_p2 = pnand %p2275_p0, %p164_p1 }
   0x6   : > { %168 = sbr.rel (%p165_p2) target bundleno = 882 (0x372), region = 36 }
   0xb   : > { %s2276_s17 = sshll.u32 %s2271_s16, 1  ;;  %v2448_v0 = vmov 0   ;;  %v2449_v1 = vmov 0.0   ;;  %v735_v34 = vld [vmem:[%s3655_s3] sm:$0xf]  ;;  %s2450_s28 = smov 115  }
   0xc   : > { %p193_p3 = scmp.lt.s32.totalorder %s2276_s17, 3  ;;  %2401 = vset.pattern.permute.xlu1 %v2448_v0  ;;  %2402 = vset.pattern.permute.xlu0 %v2448_v0  ;;  %678 = vst [vmem:[#allocation2 + $0xc] sm:$0xf] %v2449_v1  ;;  %677 = vst [vmem:[#allocation2] sm:$0xf] %v2449_v1  ;;  %s2451_s5 = smov 99  }
   0xd   : > { %v2290_v35 = vld [vmem:[%s3655_s3 + $0x1c] sm:$0xf]  ;;  %v2291_v37 = vld [vmem:[%s3655_s3 + $0x38] sm:$0xf]  ;;  %v2292_v39 = vld [vmem:[%s3655_s3 + $0x54] sm:$0xf] }
   0xe   : > { %s3765_s17 = smov (!%p193_p3, %s2276_s17), 3  ;;  %v2293_v41 = vld [vmem:[%s3655_s3 + $0x70] sm:$0xf]  ;;  %s2452_s8 = smov 83   ;;  %v2294_v43 = vld [vmem:[%s3655_s3 + $0x8c] sm:$0xf] }
   0xf   : > { %s2340_s18 = sshll.u32 %s3765_s17, 6  ;;  %s2453_s11 = smov 114   ;;  %v2295_v45 = vld [vmem:[%s3655_s3 + $0xa8] sm:$0xf]  ;;  %v2296_v47 = vld [vmem:[%s3655_s3 + $0x4] sm:$0xf] }
  0x10   : > { %s2540_s21 = scalar_lea.vmem %s3652_s0, %s2340_s18  ;;  %s2454_s14 = smov 98   ;;  %v2297_v49 = vld [vmem:[%s3655_s3 + $0x20] sm:$0xf]  ;;  %v2298_v51 = vld [vmem:[%s3655_s3 + $0x3c] sm:$0xf]  ;;  %vm290_vm0 = vcmask 7168  }
  0x11   : > { %v210_v2 = vld [vmem:[%s2540_s21 + $0x20] sm:$0xff]  ;;  %v211_v3 = vld [vmem:[%s2540_s21 + $0x28] sm:$0xff]  ;;  %v212_v7 = vld [vmem:[%s2540_s21 + $0x30] sm:$0xff]  ;;  %s2455_s20 = smov 82   ;;  %s2456_s24 = smov 113   ;;  %vm700_vm1 = vcmask 1043459  }
  0x12   : > { %v206_v4 = vld [vmem:[%s2540_s21] sm:$0xff]  ;;  %v228_v5 = vadd.f32 %v211_v3, %v210_v2  ;;  %v207_v6 = vld [vmem:[%s2540_s21 + $0x8] sm:$0xff]  ;;  %v213_v8 = vld [vmem:[%s2540_s21 + $0x38] sm:$0xff]  ;;  %v260_v29 = vmax.f32 %v210_v2, %v211_v3  ;;  %s3659_s27 = smov 97   ;;  %s3657_s6 = smov 81   ;;  %vm702_vm2 = vcmask 1047559  }
  0x13   : > { %v222_v9 = vadd.f32 %v207_v6, %v206_v4  ;;  %v2549_v10 = vld [vmem:[%s2540_s21 + $0x10] sm:$0xff]  ;;  %v2552_v11 = vld [vmem:[%s2540_s21 + $0x18] sm:$0xff]  ;;  %v231_v12 = vadd.f32 %v213_v8, %v212_v7  ;;  %v214_v16 = vld [vmem:[%s2540_s21 + $0x40] sm:$0xff]  ;;  %v254_v27 = vmax.f32 %v206_v4, %v207_v6  ;;  %v263_v28 = vmax.f32 %v212_v7, %v213_v8  ;;  %s2459_s12 = smov 112   ;;  %s2460_s13 = smov 96  }
  0x14   : > { %229 = vadd.xlane.f32.xlu1 %v228_v5  ;;  %v225_v13 = vadd.f32 %v2552_v11, %v2549_v10  ;;  %v216_v14 = vld [vmem:[%s2540_s21 + $0x50] sm:$0xff]  ;;  %v217_v15 = vld [vmem:[%s2540_s21 + $0x58] sm:$0xff]  ;;  %v215_v17 = vld [vmem:[%s2540_s21 + $0x48] sm:$0xff]  ;;  %v257_v26 = vmax.f32 %v2549_v10, %v2552_v11  ;;  %s2461_s16 = smov 80   ;;  %s2462_s19 = smov 127   ;;  %vm686_vm3 = vcmask 1041409  }
  0x15   : > { %223 = vadd.xlane.f32.xlu0 %v222_v9  ;;  %v237_v18 = vadd.f32 %v217_v15, %v216_v14  ;;  %v234_v19 = vadd.f32 %v215_v17, %v214_v16  ;;  %v220_v20 = vld [vmem:[%s2540_s21 + $0x70] sm:$0xff]  ;;  %v221_v21 = vld [vmem:[%s2540_s21 + $0x78] sm:$0xff]  ;;  %v218_v22 = vld [vmem:[%s2540_s21 + $0x60] sm:$0xff]  ;;  %v269_v30 = vmax.f32 %v216_v14, %v217_v15  ;;  %v266_v31 = vmax.f32 %v214_v16, %v215_v17  ;;  %s2463_s22 = smov 111   ;;  %s3678_s23 = smov 95  }
  0x16   : > { %v219_v23 = vld [vmem:[%s2540_s21 + $0x68] sm:$0xff]  ;;  %v243_v24 = vadd.f32 %v221_v21, %v220_v20  ;;  %v275_v32 = vmax.f32 %v220_v20, %v221_v21  ;;  %v2299_v53 = vld [vmem:[%s3655_s3 + $0x58] sm:$0xf]  ;;  %v2314_v54 = vld [vmem:[%s3655_s3 + $0x7c] sm:$0xf]  ;;  %s3679_s25 = smov 79   ;;  %s2992_s30 = scalar_lea.vmem %s3656_s4, %s2340_s18 }
  0x17   : > { %v240_v25 = vadd.f32 %v219_v23, %v218_v22  ;;  %v272_v33 = vmax.f32 %v218_v22, %v219_v23  ;;  %v841_v36 = vld [vmem:[#allocation2 + $0xc] sm:$0xf]  ;;  %v2300_v55 = vld [vmem:[%s3655_s3 + $0x74] sm:$0xf]  ;;  %v2315_v56 = vld [vmem:[%s3655_s3 + $0x98] sm:$0xf] }
  0x18   : > { %232 = vadd.xlane.f32.xlu1 %v231_v12  ;;  %v868_v38 = vld [vmem:[#allocation2 + $0xc] sm:$0xf]  ;;  %v2301_v57 = vld [vmem:[%s3655_s3 + $0x90] sm:$0xf]  ;;  %v2316_v58 = vld [vmem:[%s3655_s3 + $0xb4] sm:$0xf] }
  0x19   : > { %226 = vadd.xlane.f32.xlu0 %v225_v13  ;;  %v895_v40 = vld [vmem:[#allocation2 + $0xc] sm:$0xf]  ;;  %v2317_v60 = vld [vmem:[%s3655_s3 + $0x10] sm:$0xf]  ;;  %v2303_v61 = vld [vmem:[%s3655_s3 + $0x8] sm:$0xf] }
  0x1a   : > { %v1040_v42 = vld [vmem:[#allocation2 + $0xc] sm:$0xf]  ;;  %v2304_v63 = vld [vmem:[%s3655_s3 + $0x24] sm:$0xf]  ;;  %v2319_v0 = vld [vmem:[%s3655_s3 + $0x48] sm:$0xf] }
  0x1b   : > { %v1067_v44 = vld [vmem:[#allocation2 + $0xc] sm:$0xf]  ;;  %v2305_v1 = vld [vmem:[%s3655_s3 + $0x40] sm:$0xf]  ;;  %v2320_v2 = vld [vmem:[%s3655_s3 + $0x64] sm:$0xf] }
  0x1c   : > { %238 = vadd.xlane.f32.xlu1 %v237_v18  ;;  %v1094_v46 = vld [vmem:[#allocation2 + $0xc] sm:$0xf]  ;;  %v2306_v3 = vld [vmem:[%s3655_s3 + $0x5c] sm:$0xf]  ;;  %v2321_v4 = vld [vmem:[%s3655_s3 + $0x80] sm:$0xf] }
  0x1d   : > { %235 = vadd.xlane.f32.xlu0 %v234_v19  ;;  %v1238_v48 = vld [vmem:[#allocation2 + $0xc] sm:$0xf]  ;;  %v2307_v5 = vld [vmem:[%s3655_s3 + $0x78] sm:$0xf]  ;;  %v2322_v6 = vld [vmem:[%s3655_s3 + $0x9c] sm:$0xf] }
  0x1e   : > { %v1265_v50 = vld [vmem:[#allocation2 + $0xc] sm:$0xf]  ;;  %v2308_v7 = vld [vmem:[%s3655_s3 + $0x94] sm:$0xf]  ;;  %v2323_v8 = vld [vmem:[%s3655_s3 + $0xb8] sm:$0xf] }
  0x1f   : > { %v1292_v52 = vld [vmem:[#allocation2 + $0xc] sm:$0xf]  ;;  %v2309_v9 = vld [vmem:[%s3655_s3 + $0xb0] sm:$0xf]  ;;  %v2324_v12 = vld [vmem:[%s3655_s3 + $0x14] sm:$0xf] }
  0x20   : > { %244 = vadd.xlane.f32.xlu1 %v243_v24  ;;  %v2302_v59 = vld [vmem:[%s3655_s3 + $0xac] sm:$0xf]  ;;  %v2325_v14 = vld [vmem:[%s3655_s3 + $0x30] sm:$0xf]  ;;  %v2311_v15 = vld [vmem:[%s3655_s3 + $0x28] sm:$0xf] }
  0x21   : > { %241 = vadd.xlane.f32.xlu0 %v240_v25  ;;  %v2318_v62 = vld [vmem:[%s3655_s3 + $0x2c] sm:$0xf]  ;;  %v2312_v16 = vld [vmem:[%s3655_s3 + $0x44] sm:$0xf]  ;;  %v2313_v20 = vld [vmem:[%s3655_s3 + $0x60] sm:$0xf] }
  0x22   : > { %v2310_v13 = vld [vmem:[%s3655_s3 + $0xc] sm:$0xf]  ;;  %v2689_v21 = vld [vmem:[%s3653_s1 + $0x10] sm:$0xff]  ;;  %v2699_v23 = vld [vmem:[%s3653_s1] sm:$0xff]  ;;  %vm688_vm4 = vcmask 1045509   ;;  %s2466_s17 = smov 51  }
  0x23   : > { %v2694_v22 = vld [vmem:[%s3653_s1 + $0x30] sm:$0xff]  ;;  %v2704_v25 = vld [vmem:[%s3653_s1 + $0x20] sm:$0xff]  ;;  %s2467_s18 = smov 35   ;;  %s2469_s7 = smov 19   ;;  %vm750_vm5 = vcmask 416768   ;;  %vm777_vm6 = vcmask 285696  }
  0x24   : > { %258 = vmax.xlane.f32.xlu1 %v257_v26  ;;  %v2709_v26 = vld [vmem:[%s3653_s1 + $0x18] sm:$0xff]  ;;  %s2472_s9 = smov 15   ;;  %s2473_s10 = smov 50   ;;  %vm804_vm7 = vcmask 154624   ;;  %vm831_vm8 = vcmask 23552   ;;  %vm858_vm9 = vcmask 941056  }
  0x25   : > { %255 = vmax.xlane.f32.xlu0 %v254_v27  ;;  %v2714_v27 = vld [vmem:[%s3653_s1 + $0x38] sm:$0xff]  ;;  %s3680_s26 = smov 46   ;;  %s2475_s29 = smov 34   ;;  %vm885_vm10 = vcmask 809984   ;;  %vm912_vm11 = vcmask 678912   ;;  %vm949_vm12 = vcmask 408576  }
  0x26   : > { %vm976_vm13 = vcmask 277504   ;;  %vm1003_vm14 = vcmask 146432   ;;  %vm1030_vm15 = vcmask 15360  }
  0x28   : > { %264 = vmax.xlane.f32.xlu1 %v263_v28 }
  0x29   : > { %261 = vmax.xlane.f32.xlu0 %v260_v29 }
  0x2c   : > { %270 = vmax.xlane.f32.xlu1 %v269_v30 }
  0x2d   : > { %267 = vmax.xlane.f32.xlu0 %v266_v31 }
  0x30   : > { %276 = vmax.xlane.f32.xlu1 %v275_v32 }
  0x31   : > { %273 = vmax.xlane.f32.xlu0 %v272_v33  ;;  %v2722_v33 = vld [vmem:[%s3653_s1 + $0x8] sm:$0xff] }
  0x41   : > { %738 = vperm.xlu1 %2401, %v735_v34   ;;  %v2727_v34 = vld [vmem:[%s3653_s1 + $0x28] sm:$0xff] }
  0x45   : > { %765 = vperm.xlu1 %2401, %v2290_v35  }
  0x47   : > { %856 = vrot.lane.b32.xlu0 %v841_v36, %s2450_s28  ;;  %v1425_v36 = vld [vmem:[#allocation2 + $0xc] sm:$0xf] }
  0x49   : > { %792 = vperm.xlu1 %2401, %v2291_v37  }
  0x4b   : > { %883 = vrot.lane.b32.xlu0 %v868_v38, %s2451_s5 }
  0x4d   : > { %819 = vperm.xlu1 %2401, %v2292_v39  }
  0x4f   : > { %910 = vrot.lane.b32.xlu0 %v895_v40, %s2452_s8 }
  0x51   : > { %846 = vperm.xlu1 %2401, %v2293_v41  }
  0x53   : > { %1055 = vrot.lane.b32.xlu0 %v1040_v42, %s2453_s11 }
  0x55   : > { %873 = vperm.xlu1 %2401, %v2294_v43  }
  0x57   : > { %1082 = vrot.lane.b32.xlu0 %v1067_v44, %s2454_s14  ;;  %v1452_v44 = vld [vmem:[#allocation2 + $0xc] sm:$0xf] }
  0x59   : > { %900 = vperm.xlu1 %2401, %v2295_v45  }
  0x5b   : > { %1109 = vrot.lane.b32.xlu0 %v1094_v46, %s2455_s20 }
  0x5d   : > { %937 = vperm.xlu1 %2401, %v2296_v47  }
  0x5f   : > { %1253 = vrot.lane.b32.xlu0 %v1238_v48, %s2456_s24 }
  0x61   : > { %964 = vperm.xlu1 %2401, %v2297_v49  }
  0x63   : > { %1280 = vrot.lane.b32.xlu0 %v1265_v50, %s3659_s27  ;;  %s2470_s27 = smov 31  }
  0x65   : > { %991 = vperm.xlu1 %2401, %v2298_v51  }
  0x67   : > { %1307 = vrot.lane.b32.xlu0 %v1292_v52, %s3657_s6  ;;  %s2471_s6 = smov 3  }
  0x69   : > { %1018 = vperm.xlu1 %2401, %v2299_v53  }
  0x6b   : > { %1430 = vperm.xlu0 %2402, %v2314_v54  }
  0x6d   : > { %1045 = vperm.xlu1 %2401, %v2300_v55  }
  0x6f   : > { %1457 = vperm.xlu0 %2402, %v2315_v56  }
  0x71   : > { %1072 = vperm.xlu1 %2401, %v2301_v57  }
  0x73   : > { %1484 = vperm.xlu0 %2402, %v2316_v58  }
  0x75   : > { %1099 = vperm.xlu1 %2401, %v2302_v59  }
  0x77   : > { %1513 = vperm.xlu0 %2402, %v2317_v60  }
  0x79   : > { %1136 = vperm.xlu1 %2401, %v2303_v61  }
  0x7b   : > { %1540 = vperm.xlu0 %2402, %v2318_v62  }
  0x7d   : > { %1163 = vperm.xlu1 %2401, %v2304_v63  }
  0x7f   : > { %1567 = vperm.xlu0 %2402, %v2319_v0  }
  0x81   : > { %1190 = vperm.xlu1 %2401, %v2305_v1  }
  0x83   : > { %1594 = vperm.xlu0 %2402, %v2320_v2  }
  0x85   : > { %1217 = vperm.xlu1 %2401, %v2306_v3  }
  0x87   : > { %1621 = vperm.xlu0 %2402, %v2321_v4   ;;  %v1479_v4 = vld [vmem:[#allocation2 + $0xc] sm:$0xf] }
  0x89   : > { %1243 = vperm.xlu1 %2401, %v2307_v5  }
  0x8b   : > { %1648 = vperm.xlu0 %2402, %v2322_v6  }
  0x8d   : > { %1270 = vperm.xlu1 %2401, %v2308_v7  }
  0x8f   : > { %1675 = vperm.xlu0 %2402, %v2323_v8  }
  0x91   : > { %1297 = vperm.xlu1 %2401, %v2309_v9  }
  0x93   : > { %1712 = vperm.xlu0 %2402, %v2324_v12  }
  0x95   : > { %1334 = vperm.xlu1 %2401, %v2310_v13  }
  0x97   : > { %1739 = vperm.xlu0 %2402, %v2325_v14  }
  0x99   : > { %1361 = vperm.xlu1 %2401, %v2311_v15  }
  0x9d   : > { %v230_v17 = vpop.xlane.xlu1 %229  ;;  %1388 = vperm.xlu1 %2401, %v2312_v16  }
  0x9e   : > { %v248_v18 = vmul.f32 0.00390625, %v230_v17  ;;  %v224_v19 = vpop.xlane.xlu0 %223 }
  0x9f   : > { %v246_v24 = vmul.f32 0.00390625, %v224_v19 }
  0xa0   : > { %v284_v29 = vmul.f32 %v2689_v21, %v248_v18  ;;  %v338_v30 = vmul.f32 %v2694_v22, %v248_v18 }
  0xa1   : > { %v233_v28 = vpop.xlane.xlu1 %232  ;;  %1414 = vperm.xlu1 %2401, %v2313_v20   ;;  %v282_v31 = vmul.f32 %v2699_v23, %v246_v24  ;;  %v336_v37 = vmul.f32 %v2704_v25, %v246_v24 }
  0xa2   : > { %v249_v32 = vmul.f32 0.00390625, %v233_v28  ;;  %v227_v35 = vpop.xlane.xlu0 %226  ;;  %v294_v45 = vsel %vm290_vm0, %v284_v29, 0.0  ;;  %v347_v46 = vsel %vm290_vm0, %v338_v30, 0.0 }
  0xa3   : > { %v247_v38 = vmul.f32 0.00390625, %v227_v35  ;;  %v291_v47 = vsel %vm290_vm0, %v282_v31, 0.0  ;;  %v344_v50 = vsel %vm290_vm0, %v336_v37, 0.0  ;;  %v1589_v31 = vld [vmem:[#allocation2 + $0xc] sm:$0xf] }
  0xa4   : > { %v285_v39 = vmul.f32 %v2709_v26, %v249_v32  ;;  %v339_v40 = vmul.f32 %v2714_v27, %v249_v32 }
  0xa5   : > { %v283_v41 = vmul.f32 %v2722_v33, %v247_v38  ;;  %v337_v42 = vmul.f32 %v2727_v34, %v247_v38  ;;  %v239_v43 = vpop.xlane.xlu1 %238  ;;  %1440 = vrot.lane.b32.xlu1 %v1425_v36, %s2459_s12 }
  0xa6   : > { %v251_v48 = vmul.f32 0.00390625, %v239_v43  ;;  %v236_v49 = vpop.xlane.xlu0 %235  ;;  %v296_v58 = vsel %vm290_vm0, %v285_v39, 0.0  ;;  %v349_v59 = vsel %vm290_vm0, %v339_v40, 0.0 }
  0xa7   : > { %v292_v51 = vsel %vm290_vm0, %v283_v41, 0.0  ;;  %v345_v52 = vsel %vm290_vm0, %v337_v42, 0.0  ;;  %v250_v53 = vmul.f32 0.00390625, %v236_v49 }
  0xa8   : > { %v293_v54 = vadd.f32 %v292_v51, %v291_v47  ;;  %v346_v55 = vadd.f32 %v345_v52, %v344_v50  ;;  %v287_v56 = vmul.f32 %v2722_v33, %v251_v48  ;;  %v341_v57 = vmul.f32 %v2727_v34, %v251_v48  ;;  %v1616_v50 = vld [vmem:[#allocation2 + $0xc] sm:$0xf] }
  0xa9   : > { %v286_v60 = vmul.f32 %v2699_v23, %v250_v53  ;;  %v340_v61 = vmul.f32 %v2704_v25, %v250_v53  ;;  %v245_v62 = vpop.xlane.xlu1 %244  ;;  %1467 = vrot.lane.b32.xlu1 %v1452_v44, %s2460_s13 }
  0xaa   : > { %v295_v63 = vadd.f32 %v294_v45, %v293_v54  ;;  %v348_v0 = vadd.f32 %v347_v46, %v346_v55  ;;  %v305_v1 = vsel %vm290_vm0, %v287_v56, 0.0  ;;  %v358_v2 = vsel %vm290_vm0, %v341_v57, 0.0  ;;  %v242_v3 = vpop.xlane.xlu0 %241 }
  0xab   : > { %v304_v5 = vsel %vm290_vm0, %v286_v60, 0.0  ;;  %v357_v6 = vsel %vm290_vm0, %v340_v61, 0.0  ;;  %v253_v7 = vmul.f32 0.00390625, %v245_v62  ;;  %v252_v8 = vmul.f32 0.00390625, %v242_v3 }
  0xac   : > { %v297_v9 = vadd.f32 %v296_v58, %v295_v63  ;;  %v350_v12 = vadd.f32 %v349_v59, %v348_v0  ;;  %v306_v13 = vadd.f32 %v305_v1, %v304_v5  ;;  %v359_v14 = vadd.f32 %v358_v2, %v357_v6  ;;  %v1643_v2 = vld [vmem:[#allocation2 + $0xc] sm:$0xf] }
  0xad   : > { %v289_v15 = vmul.f32 %v2709_v26, %v253_v7  ;;  %v343_v16 = vmul.f32 %v2714_v27, %v253_v7  ;;  %v288_v17 = vmul.f32 %v2689_v21, %v252_v8  ;;  %v342_v18 = vmul.f32 %v2694_v22, %v252_v8  ;;  %v259_v19 = vpop.xlane.xlu1 %258  ;;  %1494 = vrot.lane.b32.xlu1 %v1479_v4, %s2461_s16 }
  0xae   : > { %v298_v20 = vrot.slane %v297_v9, 4  ;;  %v351_v24 = vrot.slane %v350_v12, 4  ;;  %v394_v28 = vmul.f32 %v2722_v33, %v259_v19  ;;  %v438_v29 = vmul.f32 %v2727_v34, %v259_v19  ;;  %v256_v30 = vpop.xlane.xlu0 %255 }
  0xaf   : > { %v309_v32 = vsel %vm290_vm0, %v289_v15, 0.0  ;;  %v362_v35 = vsel %vm290_vm0, %v343_v16, 0.0  ;;  %v307_v36 = vsel %vm290_vm0, %v288_v17, 0.0  ;;  %v360_v37 = vsel %vm290_vm0, %v342_v18, 0.0 }
  0xb0   : > { %v299_v38 = vadd.f32 %v298_v20, %v297_v9  ;;  %v352_v39 = vadd.f32 %v351_v24, %v350_v12  ;;  %v308_v40 = vadd.f32 %v307_v36, %v306_v13  ;;  %v361_v41 = vadd.f32 %v360_v37, %v359_v14  ;;  %v1670_v24 = vld [vmem:[#allocation2 + $0xc] sm:$0xf] }
  0xb1   : > { %v393_v42 = vmul.f32 %v2699_v23, %v256_v30  ;;  %v437_v43 = vmul.f32 %v2704_v25, %v256_v30  ;;  %v265_v44 = vpop.xlane.xlu1 %264  ;;  %1604 = vrot.lane.b32.xlu1 %v1589_v31, %s2462_s19  ;;  %v402_v51 = vsel %vm290_vm0, %v394_v28, 0.0  ;;  %v446_v52 = vsel %vm290_vm0, %v438_v29, 0.0 }
  0xb2   : > { %v300_v45 = vrot.slane %v299_v38, 2  ;;  %v353_v46 = vrot.slane %v352_v39, 2  ;;  %v310_v47 = vadd.f32 %v309_v32, %v308_v40  ;;  %v363_v48 = vadd.f32 %v362_v35, %v361_v41  ;;  %v262_v49 = vpop.xlane.xlu0 %261 }
  0xb3   : > { %v401_v57 = vsel %vm290_vm0, %v393_v42, 0.0  ;;  %v445_v58 = vsel %vm290_vm0, %v437_v43, 0.0  ;;  %v396_v59 = vmul.f32 %v2709_v26, %v265_v44  ;;  %v440_v60 = vmul.f32 %v2714_v27, %v265_v44 }
  0xb4   : > { %v301_v53 = vadd.f32 %v300_v45, %v299_v38  ;;  %v354_v54 = vadd.f32 %v353_v46, %v352_v39  ;;  %v311_v55 = vrot.slane %v310_v47, 4  ;;  %v364_v56 = vrot.slane %v363_v48, 4 }
  0xb5   : > { %v271_v61 = vpop.xlane.xlu1 %270  ;;  %1631 = vrot.lane.b32.xlu1 %v1616_v50, %s2463_s22  ;;  %v395_v3 = vmul.f32 %v2689_v21, %v262_v49  ;;  %v439_v4 = vmul.f32 %v2694_v22, %v262_v49  ;;  %v403_v12 = vadd.f32 %v402_v51, %v401_v57  ;;  %v447_v13 = vadd.f32 %v446_v52, %v445_v58  ;;  %v2814_v57 = vld [vmem:[%s3654_s2] sm:$0xff] }
  0xb6   : > { %v302_v62 = vrot.slane %v301_v53, 1  ;;  %v355_v63 = vrot.slane %v354_v54, 1  ;;  %v312_v0 = vadd.f32 %v311_v55, %v310_v47  ;;  %v365_v1 = vadd.f32 %v364_v56, %v363_v48  ;;  %v268_v5 = vpop.xlane.xlu0 %267 }
  0xb7   : > { %v398_v8 = vmul.f32 %v2722_v33, %v271_v61  ;;  %v442_v9 = vmul.f32 %v2727_v34, %v271_v61  ;;  %v404_v14 = vsel %vm290_vm0, %v395_v3, 0.0  ;;  %v448_v15 = vsel %vm290_vm0, %v439_v4, 0.0 }
  0xb8   : > { %v313_v6 = vrot.slane %v312_v0, 2  ;;  %v366_v7 = vrot.slane %v365_v1, 2  ;;  %v303_v17 = vadd.f32 %v302_v62, %v301_v53  ;;  %v356_v18 = vadd.f32 %v355_v63, %v354_v54  ;;  %v2819_v62 = vld [vmem:[%s3654_s2 + $0x20] sm:$0xff]  ;;  %v2824_v63 = vld [vmem:[%s3654_s2 + $0x10] sm:$0xff] }
  0xb9   : > { %v277_v16 = vpop.xlane.xlu1 %276  ;;  %1658 = vrot.lane.b32.xlu1 %v1643_v2, %s3678_s23  ;;  %v406_v19 = vsel %vm290_vm0, %v396_v59, 0.0  ;;  %v450_v20 = vsel %vm290_vm0, %v440_v60, 0.0  ;;  %v405_v33 = vadd.f32 %v404_v14, %v403_v12  ;;  %v449_v28 = vadd.f32 %v448_v15, %v447_v13 }
  0xba   : > { %v397_v34 = vmul.f32 %v2699_v23, %v268_v5  ;;  %v441_v29 = vmul.f32 %v2704_v25, %v268_v5  ;;  %v314_v30 = vadd.f32 %v313_v6, %v312_v0  ;;  %v367_v31 = vadd.f32 %v366_v7, %v365_v1  ;;  %v274_v40 = vpop.xlane.xlu0 %273  ;;  %v2829_v0 = vld [vmem:[%s3654_s2 + $0x30] sm:$0xff] }
  0xbb   : > { %v415_v32 = vsel %vm290_vm0, %v398_v8, 0.0  ;;  %v459_v35 = vsel %vm290_vm0, %v442_v9, 0.0  ;;  %v407_v36 = vadd.f32 %v406_v19, %v405_v33  ;;  %v451_v37 = vadd.f32 %v450_v20, %v449_v28 }
  0xbc   : > { %v414_v38 = vsel %vm290_vm0, %v397_v34, 0.0  ;;  %v458_v39 = vsel %vm290_vm0, %v441_v29, 0.0  ;;  %v317_v23 = vmax.f32 %v303_v17, 0.0  ;;  %v370_v25 = vmax.f32 %v356_v18, 0.0 }
  0xbd   : > { %v2788_v41 = vpop.permute.xlu1 %738  ;;  %1685 = vrot.lane.b32.xlu1 %v1670_v24, %s3679_s25  ;;  %v400_v42 = vmul.f32 %v2709_v26, %v277_v16  ;;  %v444_v43 = vmul.f32 %v2714_v27, %v277_v16  ;;  %v408_v44 = vrot.slane %v407_v36, 4  ;;  %v452_v45 = vrot.slane %v451_v37, 4  ;;  %v2800_v26 = vld [vmem:[%s3654_s2 + $0x8] sm:$0xff] }
  0xbe   : > { %v416_v46 = vadd.f32 %v415_v32, %v414_v38  ;;  %v460_v47 = vadd.f32 %v459_v35, %v458_v39  ;;  %v315_v48 = vrot.slane %v314_v30, 1  ;;  %v368_v49 = vrot.slane %v367_v31, 1  ;;  %v2805_v27 = vld [vmem:[%s3654_s2 + $0x28] sm:$0xff]  ;;  %v2853_v32 = vld [vmem:[%s3654_s2 + $0x38] sm:$0xff] }
  0xbf   : > { %v399_v50 = vmul.f32 %v2689_v21, %v274_v40  ;;  %v443_v51 = vmul.f32 %v2694_v22, %v274_v40  ;;  %v409_v52 = vadd.f32 %v408_v44, %v407_v36  ;;  %v453_v53 = vadd.f32 %v452_v45, %v451_v37 }
  0xc0   : > { %v419_v55 = vsel %vm290_vm0, %v400_v42, 0.0  ;;  %v463_v21 = vsel %vm290_vm0, %v444_v43, 0.0  ;;  %v316_v1 = vadd.f32 %v315_v48, %v314_v30  ;;  %v369_v2 = vadd.f32 %v368_v49, %v367_v31  ;;  %v2848_v31 = vld [vmem:[%s3654_s2 + $0x18] sm:$0xff] }
  0xc1   : > { %v2795_v54 = vpop.permute.xlu1 %765  ;;  %v417_v22 = vsel %vm290_vm0, %v399_v50, 0.0  ;;  %v461_v56 = vsel %vm290_vm0, %v443_v51, 0.0  ;;  %v410_v58 = vrot.slane %v409_v52, 2  ;;  %v454_v59 = vrot.slane %v453_v53, 2 }
  0xc2   : > { %v418_v60 = vadd.f32 %v417_v22, %v416_v46  ;;  %v462_v61 = vadd.f32 %v461_v56, %v460_v47  ;;  %v324_v3 = vmul.f32 %v2800_v26, %v317_v23  ;;  %v378_v4 = vmul.f32 %v2805_v27, %v370_v25 }
  0xc3   : > { %v411_v5 = vadd.f32 %v410_v58, %v409_v52  ;;  %v455_v6 = vadd.f32 %v454_v59, %v453_v53  ;;  %v323_v12 = vmul.f32 %v2814_v57, %v317_v23  ;;  %v377_v13 = vmul.f32 %v2819_v62, %v370_v25 }
  0xc4   : > { %v420_v7 = vadd.f32 %v419_v55, %v418_v60  ;;  %v464_v8 = vadd.f32 %v463_v21, %v462_v61  ;;  %v325_v14 = vmul.f32 %v2824_v63, %v317_v23  ;;  %v379_v15 = vmul.f32 %v2829_v0, %v370_v25 }
  0xc5   : > { %v2833_v9 = vpop.permute.xlu1 %792  ;;  %v412_v16 = vrot.slane %v411_v5, 1  ;;  %v456_v17 = vrot.slane %v455_v6, 1  ;;  %v2839_v20 = vmax.f32 %v316_v1, 0.0  ;;  %v2841_v24 = vmax.f32 %v369_v2, 0.0 }
  0xc6   : > { %v421_v18 = vrot.slane %v420_v7, 4  ;;  %v465_v19 = vrot.slane %v464_v8, 4  ;;  %v386_v35 = vadd.f32 %v378_v4, %v324_v3  ;;  %v385_v36 = vadd.f32 %v377_v13, %v323_v12 }
  0xc7   : > { %v413_v33 = vadd.f32 %v412_v16, %v411_v5  ;;  %v457_v28 = vadd.f32 %v456_v17, %v455_v6  ;;  %v387_v37 = vadd.f32 %v379_v15, %v325_v14  ;;  %v326_v43 = vmul.f32 %v2848_v31, %v317_v23 }
  0xc8   : > { %v422_v34 = vadd.f32 %v421_v18, %v420_v7  ;;  %v466_v29 = vadd.f32 %v465_v19, %v464_v8  ;;  %v380_v44 = vmul.f32 %v2853_v32, %v370_v25  ;;  %v327_v45 = vmul.f32 %v2814_v57, %v2839_v20 }
  0xc9   : > { %v2843_v30 = vpop.permute.xlu1 %819  ;;  %v427_v38 = vmax.f32 %v413_v33, 0.0  ;;  %v471_v39 = vmax.f32 %v457_v28, 0.0  ;;  %v381_v46 = vmul.f32 %v2819_v62, %v2841_v24  ;;  %v328_v5 = vmul.f32 %v2800_v26, %v2839_v20 }
  0xca   : > { %v423_v40 = vrot.slane %v422_v34, 2  ;;  %v467_v42 = vrot.slane %v466_v29, 2  ;;  %v388_v60 = vadd.f32 %v380_v44, %v326_v43  ;;  %v382_v12 = vmul.f32 %v2805_v27, %v2841_v24 }
  0xcb   : > { %v430_v50 = vmul.f32 %v427_v38, %v2800_v26  ;;  %v474_v51 = vmul.f32 %v2805_v27, %v471_v39  ;;  %v429_v52 = vmul.f32 %v427_v38, %v2814_v57  ;;  %v473_v23 = vmul.f32 %v2819_v62, %v471_v39 }
  0xcc   : > { %v424_v47 = vadd.f32 %v423_v40, %v422_v34  ;;  %v468_v48 = vadd.f32 %v467_v42, %v466_v29  ;;  %v431_v25 = vmul.f32 %v427_v38, %v2824_v63  ;;  %v475_v53 = vmul.f32 %v2829_v0, %v471_v39 }
  0xcd   : > { %v2861_v49 = vpop.permute.xlu1 %846  ;;  %v482_v22 = vadd.f32 %v474_v51, %v430_v50  ;;  %v432_v56 = vmul.f32 %v427_v38, %v2848_v31  ;;  %v481_v58 = vadd.f32 %v473_v23, %v429_v52  ;;  %v476_v61 = vmul.f32 %v2853_v32, %v471_v39 }
  0xce   : > { %v425_v55 = vrot.slane %v424_v47, 1  ;;  %v469_v21 = vrot.slane %v468_v48, 1  ;;  %v483_v59 = vadd.f32 %v475_v53, %v431_v25  ;;  %v389_v16 = vadd.f32 %v381_v46, %v327_v45 }
  0xcf   : > { %v490_v4 = vadd.f32 %v482_v22, %v386_v35  ;;  %v489_v6 = vadd.f32 %v481_v58, %v385_v36  ;;  %v484_v8 = vadd.f32 %v476_v61, %v432_v56  ;;  %v329_v33 = vmul.f32 %v2824_v63, %v2839_v20 }
  0xd0   : > { %v426_v1 = vadd.f32 %v425_v55, %v424_v47  ;;  %v470_v2 = vadd.f32 %v469_v21, %v468_v48  ;;  %v491_v7 = vadd.f32 %v483_v59, %v387_v37  ;;  %v383_v40 = vmul.f32 %v2829_v0, %v2841_v24 }
  0xd1   : > { %v2871_v3 = vpop.permute.xlu1 %873  ;;  %v498_v15 = vmul.f32 0.5, %v490_v4  ;;  %v497_v17 = vmul.f32 0.5, %v489_v6  ;;  %v492_v19 = vadd.f32 %v484_v8, %v388_v60  ;;  %v390_v43 = vadd.f32 %v382_v12, %v328_v5 }
  0xd2   : > { %v428_v13 = vmax.f32 %v426_v1, 0.0  ;;  %v472_v14 = vmax.f32 %v470_v2, 0.0  ;;  %v499_v18 = vmul.f32 0.5, %v491_v7  ;;  %v391_v47 = vadd.f32 %v383_v40, %v329_v33  ;;  %v2903_v2 = vpop.permute.xlu0 %856 }
  0xd3   : > { %2405 = vtanh.f32 %v498_v15  ;;  %v500_v36 = vmul.f32 0.5, %v492_v19  ;;  %v330_v48 = vmul.f32 %v2848_v31, %v2839_v20 }
  0xd4   : > { %v433_v34 = vmul.f32 %v428_v13, %v2814_v57  ;;  %v477_v29 = vmul.f32 %v2819_v62, %v472_v14  ;;  %v434_v35 = vmul.f32 %v428_v13, %v2800_v26  ;;  %2407 = vtanh.f32 %v497_v17 }
  0xd5   : > { %v2879_v28 = vpop.permute.xlu1 %900  ;;  %v478_v37 = vmul.f32 %v2805_v27, %v472_v14  ;;  %v435_v38 = vmul.f32 %v428_v13, %v2824_v63  ;;  %2409 = vtanh.f32 %v499_v18  ;;  %v479_v42 = vmul.f32 %v2829_v0, %v472_v14 }
  0xd6   : > { %v485_v39 = vadd.f32 %v477_v29, %v433_v34  ;;  %v436_v57 = vmul.f32 %v428_v13, %v2848_v31  ;;  %2411 = vtanh.f32 %v500_v36  ;;  %v480_v27 = vmul.f32 %v2853_v32, %v472_v14  ;;  %v2907_v13 = vpop.permute.xlu0 %883 }
  0xd7   : > { %v486_v44 = vadd.f32 %v478_v37, %v434_v35  ;;  %v487_v45 = vadd.f32 %v479_v42, %v435_v38  ;;  %v384_v0 = vmul.f32 %v2853_v32, %v2841_v24 }
  0xd8   : > { %v493_v26 = vadd.f32 %v485_v39, %v389_v16  ;;  %v488_v23 = vadd.f32 %v480_v27, %v436_v57 }
  0xd9   : > { %v2890_v62 = vpop.permute.xlu1 %937  ;;  %v494_v46 = vadd.f32 %v486_v44, %v390_v43  ;;  %v495_v52 = vadd.f32 %v487_v45, %v391_v47  ;;  %v392_v25 = vadd.f32 %v384_v0, %v330_v48 }
  0xda   : > { %v501_v63 = vmul.f32 0.5, %v493_v26  ;;  %v2911_v19 = vpop.permute.xlu0 %910 }
  0xdb   : > { %v502_v51 = vmul.f32 0.5, %v494_v46  ;;  %v503_v55 = vmul.f32 0.5, %v495_v52  ;;  %v496_v21 = vadd.f32 %v488_v23, %v392_v25 }
  0xdc   : > { %2413 = vtanh.f32 %v501_v63 }
  0xdd   : > { %v2897_v50 = vpop.permute.xlu1 %964  ;;  %2415 = vtanh.f32 %v502_v51  ;;  %v504_v32 = vmul.f32 0.5, %v496_v21 }
  0xde   : > { %2417 = vtanh.f32 %v503_v55  ;;  %v2915_v38 = vpop.permute.xlu0 %1055 }
  0xdf   : > { %2419 = vtanh.f32 %v504_v32 }
  0xe0   : > { %v2406_v22 = vpop.eup %2405 }
  0xe1   : > { %v2899_v53 = vpop.permute.xlu1 %991  ;;  %v2408_v56 = vpop.eup %2407  ;;  %v514_v58 = vadd.f32 1.0, %v2406_v22 }
  0xe2   : > { %v2410_v59 = vpop.eup %2409  ;;  %v513_v20 = vadd.f32 1.0, %v2408_v56  ;;  %v2919_v42 = vpop.permute.xlu0 %1082 }
  0xe3   : > { %v522_v31 = vmul.f32 0.5, %v514_v58  ;;  %v515_v24 = vadd.f32 1.0, %v2410_v59  ;;  %v2412_v61 = vpop.eup %2411 }
  0xe4   : > { %v521_v1 = vmul.f32 0.5, %v513_v20  ;;  %v516_v6 = vadd.f32 1.0, %v2412_v61 }
  0xe5   : > { %v2901_v60 = vpop.permute.xlu1 %1018  ;;  %536 = vperm.xlu1 %2401, %v522_v31   ;;  %v523_v4 = vmul.f32 0.5, %v515_v24 }
  0xe6   : > { %531 = vperm.xlu0 %2402, %v521_v1   ;;  %v524_v8 = vmul.f32 0.5, %v516_v6  ;;  %v2923_v44 = vpop.permute.xlu0 %1109 }
  0xe9   : > { %v2905_v5 = vpop.permute.xlu1 %1045  ;;  %v2414_v7 = vpop.eup %2413  ;;  %541 = vperm.xlu1 %2401, %v523_v4  }
  0xea   : > { %v517_v12 = vadd.f32 1.0, %v2414_v7  ;;  %v2416_v14 = vpop.eup %2415  ;;  %v2927_v26 = vpop.permute.xlu0 %1253 }
  0xeb   : > { %v518_v17 = vadd.f32 1.0, %v2416_v14  ;;  %v2418_v18 = vpop.eup %2417 }
  0xec   : > { %v525_v16 = vmul.f32 0.5, %v517_v12  ;;  %v519_v29 = vadd.f32 1.0, %v2418_v18  ;;  %v2420_v35 = vpop.eup %2419 }
  0xed   : > { %v2909_v15 = vpop.permute.xlu1 %1072  ;;  %546 = vperm.xlu1 %2401, %v524_v8   ;;  %v526_v34 = vmul.f32 0.5, %v518_v17  ;;  %v520_v37 = vadd.f32 1.0, %v2420_v35 }
  0xee   : > { %v527_v36 = vmul.f32 0.5, %v519_v29  ;;  %v2931_v27 = vpop.permute.xlu0 %1280  ;;  %v2425_v29 = vld [vmem:[%s2540_s21] sm:$0xff] }
  0xef   : > { %v528_v40 = vmul.f32 0.5, %v520_v37 }
  0xf1   : > { %551 = vperm.xlu1 %2401, %v525_v16   ;;  %v2913_v33 = vpop.permute.xlu1 %1099 }
  0xf2   : > { %v2935_v63 = vpop.permute.xlu0 %1307 }
  0xf3   : > { %3681 = vst [vmem:[#allocation3_spill] sm:$0xff] %v2935_v63 }
  0xf5   : > { %556 = vperm.xlu1 %2401, %v526_v34   ;;  %v2917_v39 = vpop.permute.xlu1 %1136 }
  0xf6   : > { %v2939_v48 = vpop.permute.xlu0 %1430 }
  0xf7   : > { %3682 = vst [vmem:[#allocation4_spill] sm:$0xff] %v2939_v48 }
  0xf9   : > { %561 = vperm.xlu1 %2401, %v527_v36   ;;  %v2921_v43 = vpop.permute.xlu1 %1163  ;;  %v2426_v36 = vld [vmem:[%s2540_s21 + $0x8] sm:$0xff] }
  0xfa   : > { %v2943_v51 = vpop.permute.xlu0 %1457 }
  0xfb   : > { %3684 = vst [vmem:[#allocation6_spill] sm:$0xff] %v2943_v51 }
  0xfd   : > { %566 = vperm.xlu1 %2401, %v528_v40   ;;  %v2925_v57 = vpop.permute.xlu1 %1190 }
  0xfe   : > { %v2947_v23 = vpop.permute.xlu0 %1484 }
  0xff   : > { %3686 = vst [vmem:[#allocation8_spill] sm:$0xff] %v2947_v23 }
 0x101   : > { %v2929_v45 = vpop.permute.xlu1 %1217 }
 0x102   : > { %v2951_v55 = vpop.permute.xlu0 %1513 }
 0x103   : > { %3688 = vst [vmem:[#allocation10_spill] sm:$0xff] %v2951_v55 }
 0x105   : > { %v2933_v46 = vpop.permute.xlu1 %1243 }
 0x106   : > { %v2955_v22 = vpop.permute.xlu0 %1540 }
 0x107   : > { %3690 = vst [vmem:[#allocation12_spill] sm:$0xff] %v2955_v22 }
 0x109   : > { %v2937_v47 = vpop.permute.xlu1 %1270 }
 0x10a   : > { %v2961_v59 = vpop.permute.xlu0 %1567 }
 0x10b   : > { %3693 = vst [vmem:[#allocation15_spill] sm:$0xff] %v2961_v59 }
 0x10d   : > { %v2941_v0 = vpop.permute.xlu1 %1297 }
 0x10e   : > { %3683 = vst [vmem:[#allocation5_spill] sm:$0xff] %v2941_v0  ;;  %v2965_v31 = vpop.permute.xlu0 %1594 }
 0x10f   : > { %3695 = vst [vmem:[#allocation17_spill] sm:$0xff] %v2965_v31 }
 0x111   : > { %v2945_v52 = vpop.permute.xlu1 %1334 }
 0x112   : > { %3685 = vst [vmem:[#allocation7_spill] sm:$0xff] %v2945_v52  ;;  %v2969_v32 = vpop.permute.xlu0 %1621 }
 0x113   : > { %3697 = vst [vmem:[#allocation19_spill] sm:$0xff] %v2969_v32 }
 0x115   : > { %v2949_v25 = vpop.permute.xlu1 %1361 }
 0x116   : > { %3687 = vst [vmem:[#allocation9_spill] sm:$0xff] %v2949_v25  ;;  %v2973_v1 = vpop.permute.xlu0 %1648 }
 0x117   : > { %3699 = vst [vmem:[#allocation21_spill] sm:$0xff] %v2973_v1  ;;  %v2430_v1 = vld [vmem:[%s2540_s21 + $0x38] sm:$0xff] }
 0x119   : > { %v2953_v21 = vpop.permute.xlu1 %1388 }
 0x11a   : > { %3689 = vst [vmem:[#allocation11_spill] sm:$0xff] %v2953_v21  ;;  %v2977_v6 = vpop.permute.xlu0 %1675 }
 0x11b   : > { %3701 = vst [vmem:[#allocation23_spill] sm:$0xff] %v2977_v6  ;;  %v2428_v6 = vld [vmem:[%s2540_s21 + $0x28] sm:$0xff] }
 0x11d   : > { %v2957_v56 = vpop.permute.xlu1 %1414 }
 0x11e   : > { %3691 = vst [vmem:[#allocation13_spill] sm:$0xff] %v2957_v56  ;;  %v2981_v8 = vpop.permute.xlu0 %1712 }
 0x11f   : > { %3703 = vst [vmem:[#allocation25_spill] sm:$0xff] %v2981_v8 }
 0x121   : > { %v2959_v58 = vpop.permute.xlu1 %1440 }
 0x122   : > { %3692 = vst [vmem:[#allocation14_spill] sm:$0xff] %v2959_v58  ;;  %v2985_v14 = vpop.permute.xlu0 %1739 }
 0x123   : > { %3705 = vst [vmem:[#allocation27_spill] sm:$0xff] %v2985_v14  ;;  %v2427_v14 = vld [vmem:[%s2540_s21 + $0x20] sm:$0xff] }
 0x125   : > { %v2963_v20 = vpop.permute.xlu1 %1467 }
 0x126   : > { %3694 = vst [vmem:[#allocation16_spill] sm:$0xff] %v2963_v20 }
 0x129   : > { %v2967_v24 = vpop.permute.xlu1 %1494 }
 0x12a   : > { %3696 = vst [vmem:[#allocation18_spill] sm:$0xff] %v2967_v24 }
 0x12d   : > { %v2971_v61 = vpop.permute.xlu1 %1604 }
 0x12e   : > { %3698 = vst [vmem:[#allocation20_spill] sm:$0xff] %v2971_v61 }
 0x131   : > { %v2975_v4 = vpop.permute.xlu1 %1631 }
 0x132   : > { %3700 = vst [vmem:[#allocation22_spill] sm:$0xff] %v2975_v4 }
 0x135   : > { %v2979_v7 = vpop.permute.xlu1 %1658 }
 0x136   : > { %3702 = vst [vmem:[#allocation24_spill] sm:$0xff] %v2979_v7 }
 0x139   : > { %v2983_v12 = vpop.permute.xlu1 %1685 }
 0x13a   : > { %3704 = vst [vmem:[#allocation26_spill] sm:$0xff] %v2983_v12 }
 0x160   : > { %v537_v16 = vpop.permute.xlu1 %536 }
 0x161   : > { %v571_v17 = vmul.f32 %v537_v16, %v2549_v10  ;;  %v572_v18 = vmul.f32 %v537_v16, %v2552_v11  ;;  %v532_v34 = vpop.permute.xlu0 %531 }
 0x162   : > { %v569_v35 = vmul.f32 %v2425_v29, %v532_v34  ;;  %v570_v37 = vmul.f32 %v2426_v36, %v532_v34  ;;  %v2429_v34 = vld [vmem:[%s2540_s21 + $0x30] sm:$0xff] }
 0x163   : > { %587 = vst [vmem:[%s2992_s30 + $0x10] sm:$0xff] %v571_v17  ;;  %588 = vst [vmem:[%s2992_s30 + $0x18] sm:$0xff] %v572_v18 }
 0x164   : > { %585 = vst [vmem:[%s2992_s30] sm:$0xff] %v569_v35  ;;  %586 = vst [vmem:[%s2992_s30 + $0x8] sm:$0xff] %v570_v37  ;;  %v542_v40 = vpop.permute.xlu1 %541  ;;  %v641_v11 = vmax.f32 %v569_v35, %v571_v17  ;;  %v650_v16 = vmax.f32 %v570_v37, %v572_v18  ;;  %v601_v12 = vadd.f32 %v571_v17, %v569_v35 }
 0x165   : > { %v573_v8 = vmul.f32 %v2427_v14, %v542_v40  ;;  %v574_v10 = vmul.f32 %v2428_v6, %v542_v40  ;;  %v610_v32 = vadd.f32 %v572_v18, %v570_v37 }
 0x167   : > { %589 = vst [vmem:[%s2992_s30 + $0x20] sm:$0xff] %v573_v8  ;;  %590 = vst [vmem:[%s2992_s30 + $0x28] sm:$0xff] %v574_v10  ;;  %v642_v4 = vmax.f32 %v641_v11, %v573_v8  ;;  %v651_v31 = vmax.f32 %v650_v16, %v574_v10  ;;  %v602_v14 = vadd.f32 %v601_v12, %v573_v8 }
 0x168   : > { %v547_v29 = vpop.permute.xlu1 %546  ;;  %v611_v6 = vadd.f32 %v610_v32, %v574_v10  ;;  %v2434_v10 = vld [vmem:[%s2540_s21 + $0x58] sm:$0xff] }
 0x169   : > { %v575_v36 = vmul.f32 %v2429_v34, %v547_v29  ;;  %v576_v7 = vmul.f32 %v2430_v1, %v547_v29  ;;  %v2431_v34 = vld [vmem:[%s2540_s21 + $0x40] sm:$0xff]  ;;  %v2432_v1 = vld [vmem:[%s2540_s21 + $0x48] sm:$0xff] }
 0x16b   : > { %591 = vst [vmem:[%s2992_s30 + $0x30] sm:$0xff] %v575_v36  ;;  %592 = vst [vmem:[%s2992_s30 + $0x38] sm:$0xff] %v576_v7  ;;  %v643_v40 = vmax.f32 %v642_v4, %v575_v36  ;;  %v652_v61 = vmax.f32 %v651_v31, %v576_v7  ;;  %v603_v17 = vadd.f32 %v602_v14, %v575_v36  ;;  %v2433_v31 = vld [vmem:[%s2540_s21 + $0x50] sm:$0xff] }
 0x16c   : > { %v552_v59 = vpop.permute.xlu1 %551  ;;  %v612_v35 = vadd.f32 %v611_v6, %v576_v7  ;;  %v2435_v6 = vld [vmem:[%s2540_s21 + $0x60] sm:$0xff] }
 0x16d   : > { %v577_v22 = vmul.f32 %v2431_v34, %v552_v59  ;;  %v578_v18 = vmul.f32 %v2432_v1, %v552_v59  ;;  %v644_v37 = vrot.slane %v643_v40, 4  ;;  %v653_v11 = vrot.slane %v652_v61, 4  ;;  %v2436_v1 = vld [vmem:[%s2540_s21 + $0x68] sm:$0xff] }
 0x16e   : > { %v604_v32 = vrot.slane %v603_v17, 4  ;;  %v613_v4 = vrot.slane %v612_v35, 4 }
 0x16f   : > { %593 = vst [vmem:[%s2992_s30 + $0x40] sm:$0xff] %v577_v22  ;;  %594 = vst [vmem:[%s2992_s30 + $0x48] sm:$0xff] %v578_v18  ;;  %v645_v7 = vmax.f32 %v643_v40, %v644_v37  ;;  %v654_v29 = vmax.f32 %v652_v61, %v653_v11 }
 0x170   : > { %v557_v8 = vpop.permute.xlu1 %556  ;;  %v605_v36 = vadd.f32 %v604_v32, %v603_v17  ;;  %v614_v14 = vadd.f32 %v613_v4, %v612_v35 }
 0x171   : > { %v579_v12 = vmul.f32 %v2433_v31, %v557_v8  ;;  %v580_v16 = vmul.f32 %v2434_v10, %v557_v8  ;;  %v646_v31 = vrot.slane %v645_v7, 2  ;;  %v655_v24 = vrot.slane %v654_v29, 2  ;;  %v2437_v8 = vld [vmem:[%s2540_s21 + $0x70] sm:$0xff] }
 0x172   : > { %v606_v11 = vrot.slane %v605_v36, 2  ;;  %v615_v4 = vrot.slane %v614_v14, 2 }
 0x173   : > { %595 = vst [vmem:[%s2992_s30 + $0x50] sm:$0xff] %v579_v12  ;;  %596 = vst [vmem:[%s2992_s30 + $0x58] sm:$0xff] %v580_v16  ;;  %v619_v23 = vadd.f32 %v579_v12, %v577_v22  ;;  %v659_v51 = vmax.f32 %v577_v22, %v579_v12  ;;  %v628_v40 = vadd.f32 %v580_v16, %v578_v18 }
 0x174   : > { %v562_v59 = vpop.permute.xlu1 %561  ;;  %v668_v61 = vmax.f32 %v578_v18, %v580_v16  ;;  %v647_v20 = vmax.f32 %v645_v7, %v646_v31  ;;  %v656_v48 = vmax.f32 %v654_v29, %v655_v24  ;;  %v607_v58 = vadd.f32 %v606_v11, %v605_v36 }
 0x175   : > { %v581_v34 = vmul.f32 %v2435_v6, %v562_v59  ;;  %v582_v55 = vmul.f32 %v2436_v1, %v562_v59  ;;  %v2438_v6 = vld [vmem:[%s2540_s21 + $0x78] sm:$0xff]  ;;  %s2468_s21 = smov 47  }
 0x177   : > { %597 = vst [vmem:[%s2992_s30 + $0x60] sm:$0xff] %v581_v34  ;;  %598 = vst [vmem:[%s2992_s30 + $0x68] sm:$0xff] %v582_v55  ;;  %v620_v17 = vadd.f32 %v619_v23, %v581_v34  ;;  %v660_v35 = vmax.f32 %v659_v51, %v581_v34  ;;  %v629_v10 = vadd.f32 %v628_v40, %v582_v55  ;;  %v648_v40 = vrot.slane %v647_v20, 1 }
 0x178   : > { %v567_v37 = vpop.permute.xlu1 %566  ;;  %v669_v59 = vmax.f32 %v668_v61, %v582_v55  ;;  %v616_v23 = vadd.f32 %v615_v4, %v614_v14  ;;  %v657_v55 = vrot.slane %v656_v48, 1 }
 0x179   : > { %v583_v32 = vmul.f32 %v2437_v8, %v567_v37  ;;  %v584_v22 = vmul.f32 %v2438_v6, %v567_v37 }
 0x17a   : > { %v617_v7 = vrot.slane %v616_v23, 1 }
 0x17b   : > { %599 = vst [vmem:[%s2992_s30 + $0x70] sm:$0xff] %v583_v32  ;;  %v621_v12 = vadd.f32 %v620_v17, %v583_v32  ;;  %v661_v1 = vmax.f32 %v660_v35, %v583_v32  ;;  %600 = vst [vmem:[%s2992_s30 + $0x78] sm:$0xff] %v584_v22  ;;  %v630_v18 = vadd.f32 %v629_v10, %v584_v22  ;;  %v608_v35 = vrot.slane %v607_v58, 1 }
 0x17c   : > { %v670_v16 = vmax.f32 %v669_v59, %v584_v22  ;;  %v649_v10 = vmax.f32 %v647_v20, %v648_v40  ;;  %v658_v59 = vmax.f32 %v656_v48, %v657_v55 }
 0x17d   : > { %v622_v56 = vrot.slane %v621_v12, 4  ;;  %v662_v21 = vrot.slane %v661_v1, 4  ;;  %v631_v51 = vrot.slane %v630_v18, 4 }
 0x17e   : > { %v671_v34 = vrot.slane %v670_v16, 4 }
 0x17f   : > { %v623_v8 = vadd.f32 %v622_v56, %v621_v12  ;;  %v663_v25 = vmax.f32 %v661_v1, %v662_v21  ;;  %v632_v61 = vadd.f32 %v631_v51, %v630_v18  ;;  %v609_v56 = vadd.f32 %v608_v35, %v607_v58 }
 0x180   : > { %v672_v37 = vmax.f32 %v670_v16, %v671_v34  ;;  %v618_v21 = vadd.f32 %v617_v7, %v616_v23  ;;  %v696_v16 = vcombine.low %v649_v10, %v658_v59 }
 0x181   : > { %v624_v6 = vrot.slane %v623_v8, 2  ;;  %v664_v17 = vrot.slane %v663_v25, 2  ;;  %v633_v24 = vrot.slane %v632_v61, 2  ;;  %v637_v0 = vmul.f32 0.03125, %v609_v56 }
 0x182   : > { %v673_v29 = vrot.slane %v672_v37, 2  ;;  %v638_v63 = vmul.f32 0.03125, %v618_v21  ;;  %v698_v48 = vrot.slane %v696_v16, 6 }
 0x183   : > { %v625_v31 = vadd.f32 %v624_v6, %v623_v8  ;;  %v665_v32 = vmax.f32 %v663_v25, %v664_v17  ;;  %v634_v36 = vadd.f32 %v633_v24, %v632_v61 }
 0x184   : > { %v674_v14 = vmax.f32 %v672_v37, %v673_v29  ;;  %v683_v58 = vcombine.low %v637_v0, %v638_v63 }
 0x185   : > { %v626_v11 = vrot.slane %v625_v31, 1  ;;  %v666_v4 = vrot.slane %v665_v32, 1  ;;  %v635_v22 = vrot.slane %v634_v36, 1 }
 0x186   : > { %v675_v12 = vrot.slane %v674_v14, 1 }
 0x187   : > { %v627_v1 = vadd.f32 %v626_v11, %v625_v31  ;;  %v667_v18 = vmax.f32 %v665_v32, %v666_v4  ;;  %v636_v51 = vadd.f32 %v635_v22, %v634_v36 }
 0x188   : > { %v676_v34 = vmax.f32 %v674_v14, %v675_v12 }
 0x189   : > { %v639_v52 = vmul.f32 0.03125, %v627_v1  ;;  %v640_v8 = vmul.f32 0.03125, %v636_v51 }
 0x18a   : > { %v697_v25 = vcombine.low %v667_v18, %v676_v34 }
 0x18b   : > { %v684_v20 = vcombine.low %v639_v52, %v640_v8 }
 0x18c   : > { %v699_v40 = vrot.slane %v697_v25, 5 }
 0x18d   : > { %v685_v23 = vrot.slane %v684_v20, 7 }
 0x18e   : > { %v701_v55 = vsel %vm700_vm1, %v699_v40, %v698_v48  ;;  %vm1057_vm1 = vcmask 932864  }
 0x18f   : > { %v703_v61 = vsel %vm702_vm2, %v699_v40, %v701_v55  ;;  %v687_v37 = vsel %vm686_vm3, %v685_v23, %v683_v58  ;;  %vm1084_vm2 = vcmask 801792   ;;  %vm1111_vm3 = vcmask 670720  }
 0x190   : > { %705 = vst [vmem:[#allocation2 + $0x4] sm:$0xcc] %v703_v61  ;;  %v689_v6 = vsel %vm688_vm4, %v685_v23, %v687_v37 }
 0x191   : > { %691 = vst [vmem:[#allocation2 + $0x4] sm:$0x33] %v689_v6 }
 0x198   : > { %v3026_v17 = vld [vmem:[#allocation2 + $0x4] sm:$0xff] }
 0x199   : > { %v3028_v35 = vld [vmem:[#allocation2] sm:$0xff]  ;;  %1436 = vrot.lane.b32.xlu1 %v3026_v17, %s2459_s12  ;;  %v734_v63 = vld [vmem:[#allocation2 + $0x8] sm:$0xf]  ;;  %v3107_v56 = vcombine.high %v3026_v17, %v3026_v17 }
 0x19a   : > { %744 = vrot.lane.b32.xlu0 %v3028_v35, %s2466_s17  ;;  %v760_v0 = vld [vmem:[#allocation2 + $0x8] sm:$0xf]  ;;  %v3088_v11 = vcombine.high %v3028_v35, %v3028_v35 }
 0x19b   : > { %v1508_v52 = vld [vmem:[#allocation2 + $0x8] sm:$0xf] }
 0x19c   : > { %v787_v7 = vld [vmem:[#allocation2 + $0x8] sm:$0xf] }
 0x19d   : > { %1463 = vrot.lane.b32.xlu1 %v3026_v17, %s2460_s13  ;;  %v1535_v24 = vld [vmem:[#allocation2 + $0x8] sm:$0xf] }
 0x19e   : > { %748 = vrot.lane.b32.xlu0 %v734_v63, %s2466_s17  ;;  %v814_v29 = vld [vmem:[#allocation2 + $0x8] sm:$0xf] }
 0x19f   : > { %v1562_v31 = vld [vmem:[#allocation2 + $0x8] sm:$0xf] }
 0x1a0   : > { %v932_v32 = vld [vmem:[#allocation2 + $0x8] sm:$0xf] }
 0x1a1   : > { %1490 = vrot.lane.b32.xlu1 %v3026_v17, %s2461_s16  ;;  %v1707_v10 = vld [vmem:[#allocation2 + $0x8] sm:$0xf] }
 0x1a2   : > { %771 = vrot.lane.b32.xlu0 %v3028_v35, %s2467_s18  ;;  %v959_v59 = vld [vmem:[#allocation2 + $0x8] sm:$0xf] }
 0x1a3   : > { %v1734_v36 = vld [vmem:[#allocation2 + $0x8] sm:$0xf] }
 0x1a4   : > { %v986_v14 = vld [vmem:[#allocation2 + $0x8] sm:$0xf] }
 0x1a5   : > { %1519 = vrot.lane.b32.xlu1 %v3028_v35, %s2468_s21  ;;  %v1013_v4 = vld [vmem:[#allocation2 + $0x8] sm:$0xf] }
 0x1a6   : > { %775 = vrot.lane.b32.xlu0 %v760_v0, %s2467_s18  ;;  %v1131_v21 = vld [vmem:[#allocation2 + $0x8] sm:$0xf] }
 0x1a7   : > { %v1158_v22 = vld [vmem:[#allocation2 + $0x8] sm:$0xf] }
 0x1a8   : > { %v1185_v12 = vld [vmem:[#allocation2 + $0x8] sm:$0xf] }
 0x1a9   : > { %1523 = vrot.lane.b32.xlu1 %v1508_v52, %s2468_s21  ;;  %v1212_v16 = vld [vmem:[#allocation2 + $0x8] sm:$0xf] }
 0x1aa   : > { %798 = vrot.lane.b32.xlu0 %v3028_v35, %s2469_s7  ;;  %v1329_v61 = vld [vmem:[#allocation2 + $0x8] sm:$0xf] }
 0x1ab   : > { %v1356_v52 = vld [vmem:[#allocation2 + $0x8] sm:$0xf] }
 0x1ad   : > { %1546 = vrot.lane.b32.xlu1 %v3028_v35, %s2470_s27 }
 0x1ae   : > { %802 = vrot.lane.b32.xlu0 %v787_v7, %s2469_s7 }
 0x1b1   : > { %1550 = vrot.lane.b32.xlu1 %v1535_v24, %s2470_s27 }
 0x1b2   : > { %825 = vrot.lane.b32.xlu0 %v3028_v35, %s2471_s6 }
 0x1b5   : > { %1573 = vrot.lane.b32.xlu1 %v3028_v35, %s2472_s9 }
 0x1b6   : > { %829 = vrot.lane.b32.xlu0 %v814_v29, %s2471_s6 }
 0x1b9   : > { %1577 = vrot.lane.b32.xlu1 %v1562_v31, %s2472_s9 }
 0x1ba   : > { %852 = vrot.lane.b32.xlu0 %v3026_v17, %s2450_s28 }
 0x1bd   : > { %1600 = vrot.lane.b32.xlu1 %v3026_v17, %s2462_s19 }
 0x1be   : > { %879 = vrot.lane.b32.xlu0 %v3026_v17, %s2451_s5 }
 0x1c1   : > { %1627 = vrot.lane.b32.xlu1 %v3026_v17, %s2463_s22 }
 0x1c2   : > { %906 = vrot.lane.b32.xlu0 %v3026_v17, %s2452_s8 }
 0x1c5   : > { %1654 = vrot.lane.b32.xlu1 %v3026_v17, %s3678_s23  ;;  %s2476_s23 = smov 30  }
 0x1c6   : > { %943 = vrot.lane.b32.xlu0 %v3028_v35, %s2473_s10 }
 0x1c9   : > { %1681 = vrot.lane.b32.xlu1 %v3026_v17, %s3679_s25  ;;  %s2477_s25 = smov 18  }
 0x1ca   : > { %947 = vrot.lane.b32.xlu0 %v932_v32, %s2473_s10  ;;  %v1383_v32 = vld [vmem:[#allocation2 + $0x8] sm:$0xf] }
 0x1cd   : > { %1718 = vrot.lane.b32.xlu1 %v3028_v35, %s3680_s26 }
 0x1ce   : > { %970 = vrot.lane.b32.xlu0 %v3028_v35, %s2475_s29 }
 0x1d1   : > { %1722 = vrot.lane.b32.xlu1 %v1707_v10, %s3680_s26  ;;  %s2478_s26 = smov 2  }
 0x1d2   : > { %974 = vrot.lane.b32.xlu0 %v959_v59, %s2475_s29 }
 0x1d5   : > { %1745 = vrot.lane.b32.xlu1 %v3028_v35, %s2476_s23 }
 0x1d6   : > { %997 = vrot.lane.b32.xlu0 %v3028_v35, %s2477_s25 }
 0x1d9   : > { %1749 = vrot.lane.b32.xlu1 %v1734_v36, %s2476_s23 }
 0x1da   : > { %1001 = vrot.lane.b32.xlu0 %v986_v14, %s2477_s25 }
 0x1dd   : > { %746 = vrot.lane.b32.xlu1 %v3088_v11, %s2466_s17  ;;  %s2479_s17 = smov 49  }
 0x1de   : > { %1024 = vrot.lane.b32.xlu0 %v3028_v35, %s2478_s26 }
 0x1e1   : > { %773 = vrot.lane.b32.xlu1 %v3088_v11, %s2467_s18  ;;  %s2480_s18 = smov 33  }
 0x1e2   : > { %1028 = vrot.lane.b32.xlu0 %v1013_v4, %s2478_s26  ;;  %v2331_v4 = vld [vmem:[%s3655_s3 + $0x18] sm:$0xf] }
 0x1e5   : > { %800 = vrot.lane.b32.xlu1 %v3088_v11, %s2469_s7 }
 0x1e6   : > { %1051 = vrot.lane.b32.xlu0 %v3026_v17, %s2453_s11 }
 0x1e9   : > { %827 = vrot.lane.b32.xlu1 %v3088_v11, %s2471_s6 }
 0x1ea   : > { %1078 = vrot.lane.b32.xlu0 %v3026_v17, %s2454_s14 }
 0x1ed   : > { %854 = vrot.lane.b32.xlu1 %v3107_v56, %s2450_s28  ;;  %s2481_s28 = smov 17  }
 0x1ee   : > { %1105 = vrot.lane.b32.xlu0 %v3026_v17, %s2455_s20 }
 0x1f1   : > { %881 = vrot.lane.b32.xlu1 %v3107_v56, %s2451_s5  ;;  %s2482_s5 = smov 1  }
 0x1f2   : > { %1142 = vrot.lane.b32.xlu0 %v3028_v35, %s2479_s17 }
 0x1f5   : > { %908 = vrot.lane.b32.xlu1 %v3107_v56, %s2452_s8  ;;  %s3706_s8 = smov 97  }
 0x1f6   : > { %1146 = vrot.lane.b32.xlu0 %v1131_v21, %s2479_s17 }
 0x1f9   : > { %945 = vrot.lane.b32.xlu1 %v3088_v11, %s2473_s10  ;;  %s3724_s10 = smov 46  }
 0x1fa   : > { %1169 = vrot.lane.b32.xlu0 %v3028_v35, %s2480_s18 }
 0x1fd   : > { %972 = vrot.lane.b32.xlu1 %v3088_v11, %s2475_s29 }
 0x1fe   : > { %1173 = vrot.lane.b32.xlu0 %v1158_v22, %s2480_s18 }
 0x201   : > { %999 = vrot.lane.b32.xlu1 %v3088_v11, %s2477_s25  ;;  %s2485_s25 = smov 16  }
 0x202   : > { %1196 = vrot.lane.b32.xlu0 %v3028_v35, %s2481_s28 }
 0x205   : > { %1026 = vrot.lane.b32.xlu1 %v3088_v11, %s2478_s26  ;;  %s2489_s26 = smov 126  }
 0x206   : > { %1200 = vrot.lane.b32.xlu0 %v1185_v12, %s2481_s28  ;;  %v2327_v12 = vld [vmem:[%s3655_s3 + $0x68] sm:$0xf] }
 0x209   : > { %1053 = vrot.lane.b32.xlu1 %v3107_v56, %s2453_s11  ;;  %s3708_s11 = smov 81  }
 0x20a   : > { %1223 = vrot.lane.b32.xlu0 %v3028_v35, %s2482_s5 }
 0x20b   : > { %v3137_v1 = vpop.permute.xlu1 %1436 }
 0x20c   : > { %v3139_v18 = vpop.permute.xlu0 %744 }
 0x20d   : > { %1080 = vrot.lane.b32.xlu1 %v3107_v56, %s2454_s14  ;;  %s2483_s14 = smov 48  }
 0x20e   : > { %1227 = vrot.lane.b32.xlu0 %v1212_v16, %s2482_s5 }
 0x20f   : > { %v3143_v51 = vpop.permute.xlu1 %1463 }
 0x210   : > { %v3145_v34 = vpop.permute.xlu0 %748 }
 0x211   : > { %1107 = vrot.lane.b32.xlu1 %v3107_v56, %s2455_s20  ;;  %s2484_s20 = smov 32  }
 0x212   : > { %1249 = vrot.lane.b32.xlu0 %v3026_v17, %s2456_s24 }
 0x213   : > { %v3151_v8 = vpop.permute.xlu1 %1490 }
 0x214   : > { %v3153_v25 = vpop.permute.xlu0 %771 }
 0x215   : > { %1144 = vrot.lane.b32.xlu1 %v3088_v11, %s2479_s17 }
 0x216   : > { %1276 = vrot.lane.b32.xlu0 %v3026_v17, %s3706_s8 }
 0x217   : > { %v3159_v48 = vpop.permute.xlu1 %1519 }
 0x218   : > { %3707 = vst [vmem:[#allocation28_spill] sm:$0xff] %v3159_v48  ;;  %v3161_v20 = vpop.permute.xlu0 %775 }
 0x219   : > { %1171 = vrot.lane.b32.xlu1 %v3088_v11, %s2480_s18 }
 0x21a   : > { %1303 = vrot.lane.b32.xlu0 %v3026_v17, %s3708_s11 }
 0x21b   : > { %v3167_v40 = vpop.permute.xlu1 %1523 }
 0x21c   : > { %3709 = vst [vmem:[#allocation29_spill] sm:$0xff] %v3167_v40  ;;  %v3169_v58 = vpop.permute.xlu0 %798 }
 0x21d   : > { %1198 = vrot.lane.b32.xlu1 %v3088_v11, %s2481_s28 }
 0x21e   : > { %1340 = vrot.lane.b32.xlu0 %v3028_v35, %s2483_s14 }
 0x21f   : > { %v3174_v23 = vpop.permute.xlu1 %1546 }
 0x220   : > { %3710 = vst [vmem:[#allocation30_spill] sm:$0xff] %v3174_v23  ;;  %v3176_v55 = vpop.permute.xlu0 %802 }
 0x221   : > { %1225 = vrot.lane.b32.xlu1 %v3088_v11, %s2482_s5 }
 0x222   : > { %1344 = vrot.lane.b32.xlu0 %v1329_v61, %s2483_s14 }
 0x223   : > { %v3179_v37 = vpop.permute.xlu1 %1550 }
 0x224   : > { %3711 = vst [vmem:[#allocation31_spill] sm:$0xff] %v3179_v37  ;;  %v3181_v6 = vpop.permute.xlu0 %825 }
 0x225   : > { %1251 = vrot.lane.b32.xlu1 %v3107_v56, %s2456_s24  ;;  %s2491_s24 = smov 110  }
 0x226   : > { %1367 = vrot.lane.b32.xlu0 %v3028_v35, %s2484_s20 }
 0x227   : > { %v3186_v63 = vpop.permute.xlu1 %1573 }
 0x228   : > { %3712 = vst [vmem:[#allocation32_spill] sm:$0xff] %v3186_v63  ;;  %v3188_v0 = vpop.permute.xlu0 %829 }
 0x229   : > { %1278 = vrot.lane.b32.xlu1 %v3107_v56, %s3706_s8 }
 0x22a   : > { %1371 = vrot.lane.b32.xlu0 %v1356_v52, %s2484_s20 }
 0x22b   : > { %v3192_v7 = vpop.permute.xlu1 %1577 }
 0x22c   : > { %3713 = vst [vmem:[#allocation33_spill] sm:$0xff] %v3192_v7  ;;  %v3194_v24 = vpop.permute.xlu0 %852 }
 0x22d   : > { %1305 = vrot.lane.b32.xlu1 %v3107_v56, %s3708_s11 }
 0x22e   : > { %1394 = vrot.lane.b32.xlu0 %v3028_v35, %s2485_s25 }
 0x22f   : > { %v3199_v29 = vpop.permute.xlu1 %1600 }
 0x230   : > { %3714 = vst [vmem:[#allocation34_spill] sm:$0xff] %v3199_v29  ;;  %v3201_v31 = vpop.permute.xlu0 %879 }
 0x231   : > { %1342 = vrot.lane.b32.xlu1 %v3088_v11, %s2483_s14 }
 0x232   : > { %1398 = vrot.lane.b32.xlu0 %v1383_v32, %s2485_s25 }
 0x233   : > { %v3204_v10 = vpop.permute.xlu1 %1627 }
 0x234   : > { %3715 = vst [vmem:[#allocation35_spill] sm:$0xff] %v3204_v10  ;;  %v3206_v59 = vpop.permute.xlu0 %906  ;;  %v1906_v10 = vld [vmem:[#allocation2 + $0x8] sm:$0xf] }
 0x235   : > { %1369 = vrot.lane.b32.xlu1 %v3088_v11, %s2484_s20 }
 0x236   : > { %1438 = vrot.lane.b32.xlu0 %v3107_v56, %s2459_s12 }
 0x237   : > { %v3211_v36 = vpop.permute.xlu1 %1654 }
 0x238   : > { %3716 = vst [vmem:[#allocation36_spill] sm:$0xff] %v3211_v36  ;;  %v3213_v14 = vpop.permute.xlu0 %943 }
 0x239   : > { %1396 = vrot.lane.b32.xlu1 %v3088_v11, %s2485_s25 }
 0x23a   : > { %1465 = vrot.lane.b32.xlu0 %v3107_v56, %s2460_s13  ;;  %s2486_s13 = smov 14  }
 0x23b   : > { %v3221_v21 = vpop.permute.xlu1 %1681 }
 0x23c   : > { %3717 = vst [vmem:[#allocation37_spill] sm:$0xff] %v3221_v21  ;;  %v3223_v22 = vpop.permute.xlu0 %947  ;;  %v1761_v21 = vld [vmem:[#allocation2 + $0x8] sm:$0xf] }
 0x23d   : > { %1911 = vperm.xlu1 %2401, %v2331_v4  }
 0x23e   : > { %1492 = vrot.lane.b32.xlu0 %v3107_v56, %s2461_s16  ;;  %s2487_s16 = smov 45  }
 0x23f   : > { %v3230_v16 = vpop.permute.xlu1 %1718 }
 0x240   : > { %3718 = vst [vmem:[#allocation38_spill] sm:$0xff] %v3230_v16  ;;  %v3232_v61 = vpop.permute.xlu0 %970 }
 0x241   : > { %1793 = vperm.xlu1 %2401, %v2327_v12  }
 0x242   : > { %1521 = vrot.lane.b32.xlu0 %v3088_v11, %s2468_s21 }
 0x243   : > { %v3236_v52 = vpop.permute.xlu1 %1722 }
 0x244   : > { %3719 = vst [vmem:[#allocation39_spill] sm:$0xff] %v3236_v52  ;;  %v3238_v32 = vpop.permute.xlu0 %974 }
 0x245   : > { %1772 = vrot.lane.b32.xlu1 %v3028_v35, %s2486_s13 }
 0x246   : > { %1548 = vrot.lane.b32.xlu0 %v3088_v11, %s2470_s27 }
 0x247   : > { %v3244_v4 = vpop.permute.xlu1 %1745 }
 0x248   : > { %3720 = vst [vmem:[#allocation40_spill] sm:$0xff] %v3244_v4  ;;  %v3246_v16 = vpop.permute.xlu0 %997 }
 0x249   : > { %1776 = vrot.lane.b32.xlu1 %v1761_v21, %s2486_s13 }
 0x24a   : > { %1575 = vrot.lane.b32.xlu0 %v3088_v11, %s2472_s9  ;;  %s3723_s9 = smov 79  }
 0x24b   : > { %v3251_v12 = vpop.permute.xlu1 %1749 }
 0x24c   : > { %3721 = vst [vmem:[#allocation41_spill] sm:$0xff] %v3251_v12  ;;  %v3253_v52 = vpop.permute.xlu0 %1001 }
 0x24d   : > { %1917 = vrot.lane.b32.xlu1 %v3028_v35, %s2487_s16 }
 0x24e   : > { %1602 = vrot.lane.b32.xlu0 %v3107_v56, %s2462_s19  ;;  %s3722_s19 = smov 95  }
 0x24f   : > { %v747_v36 = vpop.permute.xlu1 %746 }
 0x250   : > { %v3259_v4 = vpop.permute.xlu0 %1024  ;;  %v751_v29 = vsel %vm750_vm5, %v3139_v18, %v747_v36  ;;  %v752_v21 = vsel %vm750_vm5, %v747_v36, %v3145_v34  ;;  %v2334_v34 = vld [vmem:[%s3655_s3 + $0x6c] sm:$0xf] }
 0x251   : > { %1921 = vrot.lane.b32.xlu1 %v1906_v10, %s2487_s16  ;;  %v755_v63 = vmul.f32 %v751_v29, %v2788_v41  ;;  %v756_v40 = vmul.f32 %v752_v21, %v2788_v41 }
 0x252   : > { %1629 = vrot.lane.b32.xlu0 %v3107_v56, %s2463_s22  ;;  %s2488_s22 = smov 29  }
 0x253   : > { %v774_v7 = vpop.permute.xlu1 %773 }
 0x254   : > { %v3266_v12 = vpop.permute.xlu0 %1028  ;;  %v778_v37 = vsel %vm777_vm6, %v3153_v25, %v774_v7  ;;  %v779_v23 = vsel %vm777_vm6, %v774_v7, %v3161_v20 }
 0x255   : > { %v782_v18 = vmul.f32 %v778_v37, %v2795_v54  ;;  %v783_v48 = vmul.f32 %v779_v23, %v2795_v54  ;;  %1946 = vrot.lane.b32.xlu1 %v3088_v11, %s2488_s22 }
 0x256   : > { %1656 = vrot.lane.b32.xlu0 %v3107_v56, %s3722_s19 }
 0x257   : > { %v784_v25 = vadd.f32 %v782_v18, %v755_v63  ;;  %v785_v20 = vadd.f32 %v783_v48, %v756_v40  ;;  %v801_v41 = vpop.permute.xlu1 %800 }
 0x258   : > { %v3281_v7 = vpop.permute.xlu0 %1051  ;;  %v805_v37 = vsel %vm804_vm7, %v3169_v58, %v801_v41  ;;  %v806_v54 = vsel %vm804_vm7, %v801_v41, %v3176_v55 }
 0x259   : > { %v809_v23 = vmul.f32 %v805_v37, %v2833_v9  ;;  %v810_v29 = vmul.f32 %v806_v54, %v2833_v9  ;;  %1992 = vperm.xlu1 %2401, %v2334_v34   ;;  %v2329_v9 = vld [vmem:[%s3655_s3 + $0xa0] sm:$0xf]  ;;  %v2326_v37 = vld [vmem:[%s3655_s3 + $0x4c] sm:$0xf] }
 0x25a   : > { %1683 = vrot.lane.b32.xlu0 %v3107_v56, %s3723_s9  ;;  %s2494_s9 = smov 109  }
 0x25b   : > { %v811_v10 = vadd.f32 %v809_v23, %v784_v25  ;;  %v812_v36 = vadd.f32 %v810_v29, %v785_v20  ;;  %v828_v48 = vpop.permute.xlu1 %827 }
 0x25c   : > { %v3289_v63 = vpop.permute.xlu0 %1078  ;;  %v832_v40 = vsel %vm831_vm8, %v3181_v6, %v828_v48  ;;  %v833_v58 = vsel %vm831_vm8, %v828_v48, %v3188_v0  ;;  %v2332_v48 = vld [vmem:[%s3655_s3 + $0x34] sm:$0xf]  ;;  %vm1148_vm8 = vcmask 400384  }
 0x25d   : > { %v836_v55 = vmul.f32 %v832_v40, %v2843_v30  ;;  %v837_v21 = vmul.f32 %v833_v58, %v2843_v30  ;;  %1801 = vrot.lane.b32.xlu1 %v3107_v56, %s2489_s26 }
 0x25e   : > { %1720 = vrot.lane.b32.xlu0 %v3088_v11, %s3724_s10  ;;  %s2496_s10 = smov 93  }
 0x25f   : > { %v838_v18 = vadd.f32 %v836_v55, %v811_v10  ;;  %v839_v6 = vadd.f32 %v837_v21, %v812_v36  ;;  %v855_v0 = vpop.permute.xlu1 %854 }
 0x260   : > { %v3302_v34 = vpop.permute.xlu0 %1105  ;;  %v859_v25 = vsel %vm858_vm9, %v3194_v24, %v855_v0  ;;  %v860_v30 = vsel %vm858_vm9, %v855_v0, %v2903_v2  ;;  %vm1175_vm9 = vcmask 269312  }
 0x261   : > { %v863_v20 = vmul.f32 %v859_v25, %v2861_v49  ;;  %v864_v41 = vmul.f32 %v860_v30, %v2861_v49  ;;  %1847 = vperm.xlu1 %2401, %v2329_v9  }
 0x262   : > { %1747 = vrot.lane.b32.xlu0 %v3088_v11, %s2476_s23  ;;  %s2490_s23 = smov 13  }
 0x263   : > { %v865_v54 = vadd.f32 %v863_v20, %v838_v18  ;;  %v866_v23 = vadd.f32 %v864_v41, %v839_v6  ;;  %v882_v24 = vpop.permute.xlu1 %881  ;;  %v2333_v6 = vld [vmem:[%s3655_s3 + $0x50] sm:$0xf]  ;;  %v2330_v20 = vld [vmem:[%s3655_s3 + $0xbc] sm:$0xf] }
 0x264   : > { %v3313_v29 = vpop.permute.xlu0 %1142  ;;  %v886_v2 = vsel %vm885_vm10, %v3201_v31, %v882_v24  ;;  %v887_v10 = vsel %vm885_vm10, %v882_v24, %v2907_v13  ;;  %v2335_v31 = vld [vmem:[%s3655_s3 + $0x88] sm:$0xf]  ;;  %vm1202_vm10 = vcmask 138240  }
 0x265   : > { %v890_v49 = vmul.f32 %v886_v2, %v2871_v3  ;;  %v891_v36 = vmul.f32 %v887_v10, %v2871_v3  ;;  %1973 = vrot.lane.b32.xlu1 %v3088_v11, %s2490_s23 }
 0x266   : > { %1766 = vperm.xlu0 %2402, %v2326_v37  }
 0x267   : > { %v892_v40 = vadd.f32 %v890_v49, %v865_v54  ;;  %v893_v13 = vadd.f32 %v891_v36, %v866_v23  ;;  %v909_v55 = vpop.permute.xlu1 %908 }
 0x268   : > { %v3327_v58 = vpop.permute.xlu0 %1146  ;;  %v913_v3 = vsel %vm912_vm11, %v3206_v59, %v909_v55  ;;  %v914_v21 = vsel %vm912_vm11, %v909_v55, %v2911_v19  ;;  %vm1255_vm11 = vcmask 924672  }
 0x269   : > { %v917_v9 = vmul.f32 %v913_v3, %v2879_v28  ;;  %v918_v18 = vmul.f32 %v914_v21, %v2879_v28  ;;  %2019 = vperm.xlu1 %2401, %v2335_v31   ;;  %v706_v31 = vlaneseq }
 0x26a   : > { %1938 = vperm.xlu0 %2402, %v2332_v48  }
 0x26b   : > { %v3336_v0 = vadd.f32 %v917_v9, %v892_v40  ;;  %v3338_v25 = vadd.f32 %v918_v18, %v893_v13  ;;  %v946_v59 = vpop.permute.xlu1 %945  ;;  %v2336_v13 = vld [vmem:[%s3655_s3 + $0xa4] sm:$0xf] }
 0x26c   : > { %v3340_v30 = vpop.permute.xlu0 %1169  ;;  %v950_v19 = vsel %vm949_vm12, %v3213_v14, %v946_v59  ;;  %v951_v28 = vsel %vm949_vm12, %v946_v59, %v3223_v22  ;;  %v2328_v22 = vld [vmem:[%s3655_s3 + $0x84] sm:$0xf]  ;;  %vm1309_vm12 = vcmask 662528  }
 0x26d   : > { %1828 = vrot.lane.b32.xlu1 %v3107_v56, %s2491_s24  ;;  %v954_v54 = vmul.f32 %v950_v19, %v2890_v62  ;;  %v955_v24 = vmul.f32 %v951_v28, %v2890_v62 }
 0x26e   : > { %1965 = vperm.xlu0 %2402, %v2333_v6  }
 0x26f   : > { %v973_v37 = vpop.permute.xlu1 %972 }
 0x270   : > { %v3349_v41 = vpop.permute.xlu0 %1173  ;;  %v977_v23 = vsel %vm976_vm13, %v3232_v61, %v973_v37  ;;  %v978_v14 = vsel %vm976_vm13, %v973_v37, %v3238_v32  ;;  %vm1346_vm13 = vcmask 392192  }
 0x271   : > { %v981_v2 = vmul.f32 %v977_v23, %v2897_v50  ;;  %v982_v10 = vmul.f32 %v978_v14, %v2897_v50  ;;  %1874 = vperm.xlu1 %2401, %v2330_v20  }
 0x272   : > { %1774 = vrot.lane.b32.xlu0 %v3088_v11, %s2486_s13  ;;  %s2492_s13 = smov 125  }
 0x273   : > { %v983_v49 = vadd.f32 %v981_v2, %v954_v54  ;;  %v984_v36 = vadd.f32 %v982_v10, %v955_v24  ;;  %v1000_v32 = vpop.permute.xlu1 %999 }
 0x274   : > { %v3362_v61 = vpop.permute.xlu0 %1196  ;;  %v1004_v62 = vsel %vm1003_vm14, %v3246_v16, %v1000_v32  ;;  %v1005_v48 = vsel %vm1003_vm14, %v1000_v32, %v3253_v52 }
 0x275   : > { %v1008_v50 = vmul.f32 %v1004_v62, %v2899_v53  ;;  %v1009_v40 = vmul.f32 %v1005_v48, %v2899_v53  ;;  %2000 = vrot.lane.b32.xlu1 %v3107_v56, %s2492_s13  ;;  %v707_v53 = vand.u32 127, %v706_v31 }
 0x276   : > { %1820 = vperm.xlu0 %2402, %v2328_v22  }
 0x277   : > { %v1010_v55 = vadd.f32 %v1008_v50, %v983_v49  ;;  %v1011_v3 = vadd.f32 %v1009_v40, %v984_v36  ;;  %v1027_v52 = vpop.permute.xlu1 %1026  ;;  %v708_v37 = vadd.s32 128, %v707_v53  ;;  %v3394_v24 = vand.u32 15, %v707_v53  ;;  %v2014_v36 = vld [vmem:[#allocation2 + $0xc] sm:$0xf] }
 0x278   : > { %v3373_v16 = vpop.permute.xlu0 %1200  ;;  %v1031_v21 = vsel %vm1030_vm15, %v3259_v4, %v1027_v52  ;;  %v1032_v9 = vsel %vm1030_vm15, %v1027_v52, %v3266_v12 }
 0x279   : > { %v1035_v18 = vmul.f32 %v1031_v21, %v2901_v60  ;;  %v1036_v6 = vmul.f32 %v1032_v9, %v2901_v60  ;;  %2046 = vperm.xlu1 %2401, %v2336_v13   ;;  %v3398_v10 = vand.u32 15, %v708_v37  ;;  %vm921_vm4 = vcmp.ge.s32.totalorder %v3394_v24, 3 }
 0x27a   : > { %1919 = vrot.lane.b32.xlu0 %v3088_v11, %s2487_s16  ;;  %s2493_s16 = smov 94   ;;  %vm1120_vm6 = vcmp.ge.s32.totalorder %v3394_v24, 2  ;;  %v927_v52 = vsel %vm921_vm4, %v3336_v0, 0.0  ;;  %vm1318_vm14 = vcmp.ge.s32.totalorder %v3394_v24, 1  ;;  %vm1469_vm4 = vcmask 785408  }
 0x27b   : > { %v1037_v59 = vadd.f32 %v1035_v18, %v1010_v55  ;;  %v1038_v19 = vadd.f32 %v1036_v6, %v1011_v3  ;;  %v1054_v20 = vpop.permute.xlu1 %1053  ;;  %vm922_vm5 = vcmp.ge.s32.totalorder %v3398_v10, 3  ;;  %vm1121_vm7 = vcmp.ge.s32.totalorder %v3398_v10, 2 }
 0x27c   : > { %v3382_v28 = vpop.permute.xlu0 %1223  ;;  %v1058_v4 = vsel %vm1057_vm1, %v3281_v7, %v1054_v20  ;;  %v1059_v12 = vsel %vm1057_vm1, %v1054_v20, %v2915_v38  ;;  %vm1319_vm15 = vcmp.ge.s32.totalorder %v3398_v10, 1  ;;  %vm1373_vm1 = vcmask 261120  }
 0x27d   : > { %v1062_v54 = vmul.f32 %v1058_v4, %v2905_v5  ;;  %v1063_v23 = vmul.f32 %v1059_v12, %v2905_v5  ;;  %1855 = vrot.lane.b32.xlu1 %v3107_v56, %s2493_s16  ;;  %v1933_v5 = vld [vmem:[#allocation2 + $0x8] sm:$0xf] }
 0x27e   : > { %1944 = vrot.lane.b32.xlu0 %v3028_v35, %s2488_s22 }
 0x27f   : > { %v1064_v60 = vadd.f32 %v1062_v54, %v1037_v59  ;;  %v1065_v11 = vadd.f32 %v1063_v23, %v1038_v19  ;;  %v1081_v7 = vpop.permute.xlu1 %1080  ;;  %v1869_v59 = vld [vmem:[#allocation2 + $0xc] sm:$0xf] }
 0x280   : > { %v3392_v14 = vpop.permute.xlu0 %1227  ;;  %v1085_v38 = vsel %vm1084_vm2, %v3289_v63, %v1081_v7  ;;  %v1086_v2 = vsel %vm1084_vm2, %v1081_v7, %v2919_v42  ;;  %vm1400_vm2 = vcmask 130048  }
 0x281   : > { %v1089_v22 = vmul.f32 %v1085_v38, %v2909_v15  ;;  %v1090_v49 = vmul.f32 %v1086_v2, %v2909_v15  ;;  %2025 = vrot.lane.b32.xlu1 %v3026_v17, %s2494_s9 }
 0x282   : > { %1948 = vrot.lane.b32.xlu0 %v1933_v5, %s2488_s22  ;;  %s2495_s22 = smov 78  }
 0x283   : > { %v1091_v32 = vadd.f32 %v1089_v22, %v1064_v60  ;;  %v1092_v62 = vadd.f32 %v1090_v49, %v1065_v11  ;;  %v1108_v42 = vpop.permute.xlu1 %1107  ;;  %v1815_v49 = vld [vmem:[#allocation2 + $0xc] sm:$0xf] }
 0x284   : > { %v3405_v63 = vpop.permute.xlu0 %1249  ;;  %v1112_v48 = vsel %vm1111_vm3, %v3302_v34, %v1108_v42  ;;  %v1113_v50 = vsel %vm1111_vm3, %v1108_v42, %v2923_v44  ;;  %v1788_v34 = vld [vmem:[#allocation2 + $0xc] sm:$0xf]  ;;  %vm1442_vm3 = vcmask 916480  }
 0x285   : > { %v1116_v15 = vmul.f32 %v1112_v48, %v2913_v33  ;;  %v1117_v40 = vmul.f32 %v1113_v50, %v2913_v33  ;;  %2029 = vrot.lane.b32.xlu1 %v2014_v36, %s2494_s9  ;;  %v928_v33 = vsel %vm922_vm5, %v3338_v25, 0.0  ;;  %v2068_v36 = vld [vmem:[#allocation2 + $0xc] sm:$0xf]  ;;  %vm1496_vm5 = vcmask 654336  }
 0x286   : > { %1799 = vrot.lane.b32.xlu0 %v3026_v17, %s2489_s26 }
 0x287   : > { %v1118_v44 = vadd.f32 %v1116_v15, %v1091_v32  ;;  %v1119_v13 = vadd.f32 %v1117_v40, %v1092_v62  ;;  %v1145_v3 = vpop.permute.xlu1 %1144 }
 0x288   : > { %v3418_v55 = vpop.permute.xlu0 %1276  ;;  %v1149_v53 = vsel %vm1148_vm8, %v3313_v29, %v1145_v3  ;;  %v1150_v0 = vsel %vm1148_vm8, %v1145_v3, %v3327_v58  ;;  %vm1579_vm8 = vcmask 121856  }
 0x289   : > { %v1126_v21 = vsel %vm1120_vm6, %v1118_v44, 0.0  ;;  %v1127_v9 = vsel %vm1121_vm7, %v1119_v13, 0.0  ;;  %1880 = vrot.lane.b32.xlu1 %v3026_v17, %s2495_s22  ;;  %v1153_v20 = vmul.f32 %v1149_v53, %v2917_v39  ;;  %v1154_v12 = vmul.f32 %v1150_v0, %v2917_v39  ;;  %v1960_v39 = vld [vmem:[#allocation2 + $0x8] sm:$0xf]  ;;  %v3725_v0 = vld [vmem:[#allocation3_spill] sm:$0xff] }
 0x28a   : > { %1803 = vrot.lane.b32.xlu0 %v1788_v34, %s2489_s26  ;;  %v3427_v18 = vadd.f32 %v1126_v21, %v927_v52  ;;  %v3429_v6 = vadd.f32 %v1127_v9, %v928_v33  ;;  %s2497_s26 = smov 77   ;;  %vm1525_vm6 = vcmask 384000   ;;  %vm1552_vm7 = vcmask 252928  }
 0x28b   : > { %v1172_v19 = vpop.permute.xlu1 %1171 }
 0x28c   : > { %v3433_v25 = vpop.permute.xlu0 %1303  ;;  %v1176_v29 = vsel %vm1175_vm9, %v3340_v30, %v1172_v19  ;;  %v1177_v4 = vsel %vm1175_vm9, %v1172_v19, %v3349_v41  ;;  %vm1606_vm9 = vcmask 1039360  }
 0x28d   : > { %v1180_v37 = vmul.f32 %v1176_v29, %v2921_v43  ;;  %v1181_v54 = vmul.f32 %v1177_v4, %v2921_v43  ;;  %1884 = vrot.lane.b32.xlu1 %v1869_v59, %s2495_s22 }
 0x28e   : > { %1971 = vrot.lane.b32.xlu0 %v3028_v35, %s2490_s23 }
 0x28f   : > { %v1182_v58 = vadd.f32 %v1180_v37, %v1153_v20  ;;  %v1183_v23 = vadd.f32 %v1181_v54, %v1154_v12  ;;  %v1199_v30 = vpop.permute.xlu1 %1198 }
 0x290   : > { %v3446_v60 = vpop.permute.xlu0 %1340  ;;  %v1203_v11 = vsel %vm1202_vm10, %v3362_v61, %v1199_v30  ;;  %v1204_v41 = vsel %vm1202_vm10, %v1199_v30, %v3373_v16  ;;  %v1842_v30 = vld [vmem:[#allocation2 + $0xc] sm:$0xf]  ;;  %vm1633_vm10 = vcmask 908288  }
 0x291   : > { %v1207_v7 = vmul.f32 %v1203_v11, %v2925_v57  ;;  %v1208_v43 = vmul.f32 %v1204_v41, %v2925_v57  ;;  %2054 = vrot.lane.b32.xlu1 %v3107_v56, %s2496_s10 }
 0x292   : > { %1975 = vrot.lane.b32.xlu0 %v1960_v39, %s2490_s23 }
 0x293   : > { %v1209_v35 = vadd.f32 %v1207_v7, %v1182_v58  ;;  %v1210_v38 = vadd.f32 %v1208_v43, %v1183_v23  ;;  %v1226_v5 = vpop.permute.xlu1 %1225 }
 0x294   : > { %v1345_v2 = vpop.permute.xlu0 %1344  ;;  %v1229_v61 = vsel %vm290_vm0, %v3382_v28, %v1226_v5  ;;  %v1230_v16 = vsel %vm290_vm0, %v1226_v5, %v3392_v14  ;;  %vm1282_vm0 = vcmask 793600  }
 0x295   : > { %v1233_v22 = vmul.f32 %v1229_v61, %v2929_v45  ;;  %v1234_v57 = vmul.f32 %v1230_v16, %v2929_v45  ;;  %2079 = vrot.lane.b32.xlu1 %v3026_v17, %s2497_s26 }
 0x296   : > { %1826 = vrot.lane.b32.xlu0 %v3026_v17, %s2491_s24 }
 0x297   : > { %v1235_v32 = vadd.f32 %v1233_v22, %v1209_v35  ;;  %v1236_v62 = vadd.f32 %v1234_v57, %v1210_v38  ;;  %v1252_v42 = vpop.permute.xlu1 %1251  ;;  %v3728_v38 = vld [vmem:[#allocation9_spill] sm:$0xff] }
 0x298   : > { %v1368_v28 = vpop.permute.xlu0 %1367  ;;  %v1256_v14 = vsel %vm1255_vm11, %v3405_v63, %v1252_v42  ;;  %v1257_v48 = vsel %vm1255_vm11, %v1252_v42, %v2927_v26  ;;  %vm1660_vm11 = vcmask 777216  }
 0x299   : > { %v1260_v45 = vmul.f32 %v1256_v14, %v2933_v46  ;;  %v1261_v50 = vmul.f32 %v1257_v48, %v2933_v46  ;;  %2083 = vrot.lane.b32.xlu1 %v2068_v36, %s2497_s26  ;;  %v1987_v46 = vld [vmem:[#allocation2 + $0xc] sm:$0xf]  ;;  %v2337_v14 = vld [vmem:[%s3655_s3 + $0xc0] sm:$0xf] }
 0x29a   : > { %1830 = vrot.lane.b32.xlu0 %v1815_v49, %s2491_s24  ;;  %v3729_v36 = vld [vmem:[#allocation14_spill] sm:$0xff]  ;;  %v3731_v48 = vld [vmem:[#allocation13_spill] sm:$0xff] }
 0x29b   : > { %v1262_v15 = vadd.f32 %v1260_v45, %v1235_v32  ;;  %v1263_v40 = vadd.f32 %v1261_v50, %v1236_v62  ;;  %v1279_v44 = vpop.permute.xlu1 %1278  ;;  %v3730_v62 = vld [vmem:[#allocation11_spill] sm:$0xff]  ;;  %v1420_v45 = vmul.f32 %v3731_v48, %v3026_v17 }
 0x29c   : > { %v1372_v34 = vpop.permute.xlu0 %1371  ;;  %v1283_v13 = vsel %vm1282_vm0, %v3418_v55, %v1279_v44  ;;  %v1284_v3 = vsel %vm1282_vm0, %v1279_v44, %v2931_v27  ;;  %v3726_v55 = vld [vmem:[#allocation5_spill] sm:$0xff]  ;;  %vm1687_vm0 = vcmask 646144  }
 0x29d   : > { %v1287_v63 = vmul.f32 %v1283_v13, %v2937_v47  ;;  %v1288_v26 = vmul.f32 %v1284_v3, %v2937_v47 }
 0x29e   : > { %1998 = vrot.lane.b32.xlu0 %v3026_v17, %s2492_s13 }
 0x29f   : > { %v1289_v52 = vadd.f32 %v1287_v63, %v1262_v15  ;;  %v1290_v33 = vadd.f32 %v1288_v26, %v1263_v40  ;;  %v1306_v9 = vpop.permute.xlu1 %1305  ;;  %v3733_v63 = vld [vmem:[#allocation16_spill] sm:$0xff] }
 0x2a0   : > { %v1395_v21 = vpop.permute.xlu0 %1394  ;;  %v1310_v53 = vsel %vm1309_vm12, %v3433_v25, %v1306_v9  ;;  %v1311_v59 = vsel %vm1309_vm12, %v1306_v9, %v3725_v0  ;;  %v3735_v9 = vld [vmem:[#allocation6_spill] sm:$0xff]  ;;  %vm1696_vm12 = vcmp.lt.s32.totalorder %v3394_v24, 15 }
 0x2a1   : > { %v1314_v19 = vmul.f32 %v1310_v53, %v3726_v55  ;;  %v1315_v27 = vmul.f32 %v1311_v59, %v3726_v55 }
 0x2a2   : > { %2002 = vrot.lane.b32.xlu0 %v1987_v46, %s2492_s13 }
 0x2a3   : > { %v1316_v47 = vadd.f32 %v1314_v19, %v1289_v52  ;;  %v1317_v20 = vadd.f32 %v1315_v27, %v1290_v33  ;;  %v1343_v4 = vpop.permute.xlu1 %1342  ;;  %v3734_v33 = vld [vmem:[#allocation18_spill] sm:$0xff]  ;;  %v3736_v27 = vld [vmem:[#allocation8_spill] sm:$0xff] }
 0x2a4   : > { %v1399_v29 = vpop.permute.xlu0 %1398  ;;  %v1347_v12 = vsel %vm1346_vm13, %v3446_v60, %v1343_v4  ;;  %v1348_v25 = vsel %vm1346_vm13, %v1343_v4, %v1345_v2  ;;  %v3727_v60 = vld [vmem:[#allocation7_spill] sm:$0xff]  ;;  %v3737_v4 = vld [vmem:[#allocation28_spill] sm:$0xff]  ;;  %vm1697_vm13 = vcmp.lt.s32.totalorder %v3398_v10, 15 }
 0x2a5   : > { %v1324_v37 = vsel %vm1318_vm14, %v1316_v47, 0.0  ;;  %v1325_v54 = vsel %vm1319_vm15, %v1317_v20, 0.0  ;;  %v1351_v43 = vmul.f32 %v1347_v12, %v3727_v60  ;;  %v1352_v35 = vmul.f32 %v1348_v25, %v3727_v60  ;;  %v3738_v12 = vld [vmem:[#allocation29_spill] sm:$0xff] }
 0x2a6   : > { %1853 = vrot.lane.b32.xlu0 %v3026_v17, %s2493_s16  ;;  %v3488_v58 = vadd.f32 %v1324_v37, %v3427_v18  ;;  %v3491_v23 = vadd.f32 %v1325_v54, %v3429_v6  ;;  %vm1724_vm14 = vcmask 375808   ;;  %vm1751_vm15 = vcmask 244736  }
 0x2a7   : > { %v1370_v41 = vpop.permute.xlu1 %1369 }
 0x2a8   : > { %v1439_v11 = vpop.permute.xlu0 %1438  ;;  %v1374_v39 = vsel %vm1373_vm1, %v1368_v28, %v1370_v41  ;;  %v1375_v7 = vsel %vm1373_vm1, %v1370_v41, %v1372_v34  ;;  %v3732_v34 = vld [vmem:[#allocation4_spill] sm:$0xff]  ;;  %vm1778_vm1 = vcmask 113664  }
 0x2a9   : > { %v1378_v2 = vmul.f32 %v1374_v39, %v3728_v38  ;;  %v1379_v5 = vmul.f32 %v1375_v7, %v3728_v38  ;;  %v1443_v49 = vsel %vm1442_vm3, %v3137_v1, %v1439_v11  ;;  %v1444_v32 = vsel %vm1442_vm3, %v1439_v11, %v3729_v36  ;;  %v3739_v11 = vld [vmem:[#allocation10_spill] sm:$0xff] }
 0x2aa   : > { %1857 = vrot.lane.b32.xlu0 %v1842_v30, %s2493_s16  ;;  %v1421_v1 = vmul.f32 %v3107_v56, %v3731_v48  ;;  %v1447_v44 = vmul.f32 %v1443_v49, %v3732_v34  ;;  %v1448_v13 = vmul.f32 %v1444_v32, %v3732_v34  ;;  %v3740_v7 = vld [vmem:[#allocation30_spill] sm:$0xff]  ;;  %v3743_v32 = vld [vmem:[#allocation32_spill] sm:$0xff]  ;;  %vm1950_vm3 = vcmask 236544  }
 0x2ab   : > { %v1380_v18 = vadd.f32 %v1378_v2, %v1351_v43  ;;  %v1381_v6 = vadd.f32 %v1379_v5, %v1352_v35  ;;  %v1397_v16 = vpop.permute.xlu1 %1396  ;;  %v3741_v43 = vld [vmem:[#allocation31_spill] sm:$0xff]  ;;  %v3747_v34 = vld [vmem:[#allocation20_spill] sm:$0xff] }
 0x2ac   : > { %v1466_v61 = vpop.permute.xlu0 %1465  ;;  %v1401_v22 = vsel %vm1400_vm2, %v1395_v21, %v1397_v16  ;;  %v1402_v57 = vsel %vm1400_vm2, %v1397_v16, %v1399_v29  ;;  %v2439_v16 = vld [vmem:[#allocation2 + $0x4] sm:$0xff]  ;;  %vm1923_vm2 = vcmask 367616  }
 0x2ad   : > { %v1405_v28 = vmul.f32 %v1401_v22, %v3730_v62  ;;  %v1406_v42 = vmul.f32 %v1402_v57, %v3730_v62  ;;  %v1470_v3 = vsel %vm1469_vm4, %v3143_v51, %v1466_v61  ;;  %v1471_v26 = vsel %vm1469_vm4, %v1466_v61, %v3733_v63  ;;  %v2041_v22 = vld [vmem:[#allocation2 + $0xc] sm:$0xf] }
 0x2ae   : > { %2027 = vrot.lane.b32.xlu0 %v3107_v56, %s2494_s9  ;;  %v1474_v53 = vmul.f32 %v1470_v3, %v3735_v9  ;;  %v1475_v0 = vmul.f32 %v1471_v26, %v3735_v9  ;;  %v3748_v3 = vld [vmem:[#allocation17_spill] sm:$0xff]  ;;  %v3750_v9 = vld [vmem:[#allocation22_spill] sm:$0xff]  ;;  %vm1977_vm4 = vcmask 105472  }
 0x2af   : > { %v1407_v50 = vadd.f32 %v1405_v28, %v1380_v18  ;;  %v1408_v15 = vadd.f32 %v1406_v42, %v1381_v6  ;;  %v3742_v18 = vld [vmem:[#allocation12_spill] sm:$0xff]  ;;  %v3744_v28 = vld [vmem:[#allocation33_spill] sm:$0xff] }
 0x2b0   : > { %v1493_v40 = vpop.permute.xlu0 %1492 }
 0x2b1   : > { %v1422_v46 = vadd.f32 %v1420_v45, %v1407_v50  ;;  %v1423_v52 = vadd.f32 %v1421_v1, %v1408_v15  ;;  %v1497_v17 = vsel %vm1496_vm5, %v3151_v8, %v1493_v40  ;;  %v1498_v21 = vsel %vm1496_vm5, %v1493_v40, %v3734_v33  ;;  %v3746_v15 = vld [vmem:[#allocation34_spill] sm:$0xff]  ;;  %v3749_v33 = vld [vmem:[#allocation35_spill] sm:$0xff] }
 0x2b2   : > { %2073 = vperm.xlu0 %2402, %v2337_v14   ;;  %v1501_v51 = vmul.f32 %v1497_v17, %v3736_v27  ;;  %v1502_v47 = vmul.f32 %v1498_v21, %v3736_v27  ;;  %vm1805_vm5 = vcmask 1031168  }
 0x2b3   : > { %v1449_v59 = vadd.f32 %v1447_v44, %v1422_v46  ;;  %v1450_v55 = vadd.f32 %v1448_v13, %v1423_v52 }
 0x2b4   : > { %v1522_v19 = vpop.permute.xlu0 %1521 }
 0x2b5   : > { %v1476_v20 = vadd.f32 %v1474_v53, %v1449_v59  ;;  %v1477_v29 = vadd.f32 %v1475_v0, %v1450_v55  ;;  %v1526_v8 = vsel %vm1525_vm6, %v3737_v4, %v1522_v19  ;;  %v1527_v25 = vsel %vm1525_vm6, %v1522_v19, %v3738_v12  ;;  %v3751_v59 = vld [vmem:[#allocation19_spill] sm:$0xff] }
 0x2b6   : > { %1882 = vrot.lane.b32.xlu0 %v3107_v56, %s2495_s22  ;;  %v1530_v41 = vmul.f32 %v1526_v8, %v3739_v11  ;;  %v1531_v39 = vmul.f32 %v1527_v25, %v3739_v11  ;;  %v3754_v8 = vld [vmem:[#allocation21_spill] sm:$0xff]  ;;  %vm1832_vm6 = vcmask 900096  }
 0x2b7   : > { %v1503_v37 = vadd.f32 %v1501_v51, %v1476_v20  ;;  %v1504_v54 = vadd.f32 %v1502_v47, %v1477_v29  ;;  %v3752_v20 = vld [vmem:[#allocation36_spill] sm:$0xff] }
 0x2b8   : > { %v1549_v30 = vpop.permute.xlu0 %1548  ;;  %v3531_v38 = vpop.permute.xlu1 %1911 }
 0x2b9   : > { %v1553_v60 = vsel %vm1552_vm7, %v3740_v7, %v1549_v30  ;;  %v1554_v35 = vsel %vm1552_vm7, %v1549_v30, %v3741_v43  ;;  %v1505_v2 = vadd.f32 %v1503_v37, %v3488_v58  ;;  %v1506_v5 = vadd.f32 %v1504_v54, %v3491_v23  ;;  %v3745_v23 = vld [vmem:[#allocation15_spill] sm:$0xff]  ;;  %v3756_v7 = vld [vmem:[#allocation26_spill] sm:$0xff] }
 0x2ba   : > { %v1557_v6 = vmul.f32 %v1553_v60, %v3742_v18  ;;  %v1558_v61 = vmul.f32 %v1554_v35, %v3742_v18  ;;  %2052 = vrot.lane.b32.xlu0 %v2439_v16, %s2496_s10  ;;  %v3757_v43 = vld [vmem:[#allocation23_spill] sm:$0xff]  ;;  %vm1859_vm7 = vcmask 769024  }
 0x2bc   : > { %v1559_v57 = vadd.f32 %v1557_v6, %v1530_v41  ;;  %v1560_v49 = vadd.f32 %v1558_v61, %v1531_v39  ;;  %v1576_v36 = vpop.permute.xlu0 %1575  ;;  %v3542_v58 = vpop.permute.xlu1 %1793  ;;  %v3755_v41 = vld [vmem:[#allocation37_spill] sm:$0xff] }
 0x2bd   : > { %v1580_v62 = vsel %vm1579_vm8, %v3743_v32, %v1576_v36  ;;  %v1581_v42 = vsel %vm1579_vm8, %v1576_v36, %v3744_v28  ;;  %vm1886_vm8 = vcmask 637952  }
 0x2be   : > { %v1584_v14 = vmul.f32 %v1580_v62, %v3745_v23  ;;  %v1585_v48 = vmul.f32 %v1581_v42, %v3745_v23  ;;  %2056 = vrot.lane.b32.xlu0 %v2041_v22, %s2496_s10  ;;  %v3758_v62 = vld [vmem:[#allocation38_spill] sm:$0xff]  ;;  %v3759_v42 = vld [vmem:[#allocation39_spill] sm:$0xff] }
 0x2c0   : > { %v1586_v45 = vadd.f32 %v1584_v14, %v1559_v57  ;;  %v1587_v1 = vadd.f32 %v1585_v48, %v1560_v49  ;;  %v1603_v50 = vpop.permute.xlu0 %1602  ;;  %v3549_v13 = vpop.permute.xlu1 %1772  ;;  %v3760_v48 = vld [vmem:[#allocation40_spill] sm:$0xff] }
 0x2c1   : > { %v1607_v40 = vsel %vm1606_vm9, %v3746_v15, %v1603_v50  ;;  %v1608_v44 = vsel %vm1606_vm9, %v1603_v50, %v3747_v34  ;;  %v3762_v15 = vld [vmem:[#allocation25_spill] sm:$0xff]  ;;  %vm2004_vm9 = vcmask 1022976  }
 0x2c2   : > { %v1611_v63 = vmul.f32 %v1607_v40, %v3748_v3  ;;  %v1612_v26 = vmul.f32 %v1608_v44, %v3748_v3  ;;  %2081 = vrot.lane.b32.xlu0 %v3107_v56, %s2497_s26  ;;  %v3753_v56 = vld [vmem:[#allocation24_spill] sm:$0xff]  ;;  %v3763_v44 = vld [vmem:[#allocation27_spill] sm:$0xff] }
 0x2c4   : > { %v1613_v46 = vadd.f32 %v1611_v63, %v1586_v45  ;;  %v1614_v52 = vadd.f32 %v1612_v26, %v1587_v1  ;;  %v1630_v17 = vpop.permute.xlu0 %1629  ;;  %v1777_v0 = vpop.permute.xlu1 %1776  ;;  %v3761_v1 = vld [vmem:[#allocation41_spill] sm:$0xff] }
 0x2c5   : > { %v1634_v21 = vsel %vm1633_vm10, %v3749_v33, %v1630_v17  ;;  %v1635_v53 = vsel %vm1633_vm10, %v1630_v17, %v3750_v9  ;;  %vm2031_vm10 = vcmask 891904  }
 0x2c6   : > { %v1638_v55 = vmul.f32 %v1634_v21, %v3751_v59  ;;  %v1639_v19 = vmul.f32 %v1635_v53, %v3751_v59 }
 0x2c8   : > { %v1640_v27 = vadd.f32 %v1638_v55, %v1613_v46  ;;  %v1641_v51 = vadd.f32 %v1639_v19, %v1614_v52  ;;  %v1657_v47 = vpop.permute.xlu0 %1656  ;;  %v1918_v37 = vpop.permute.xlu1 %1917 }
 0x2c9   : > { %v1661_v29 = vsel %vm1660_vm11, %v3752_v20, %v1657_v47  ;;  %v1662_v4 = vsel %vm1660_vm11, %v1657_v47, %v3753_v56  ;;  %vm1895_vm11 = vcmp.lt.s32.totalorder %v3394_v24, 14 }
 0x2ca   : > { %v1665_v12 = vmul.f32 %v1661_v29, %v3754_v8  ;;  %v1666_v25 = vmul.f32 %v1662_v4, %v3754_v8 }
 0x2cc   : > { %v1667_v54 = vadd.f32 %v1665_v12, %v1640_v27  ;;  %v1668_v30 = vadd.f32 %v1666_v25, %v1641_v51  ;;  %v1684_v11 = vpop.permute.xlu0 %1683  ;;  %v1922_v22 = vpop.permute.xlu1 %1921 }
 0x2cd   : > { %v1688_v39 = vsel %vm1687_vm0, %v3755_v41, %v1684_v11  ;;  %v1689_v60 = vsel %vm1687_vm0, %v1684_v11, %v3756_v7  ;;  %vm1896_vm0 = vcmp.lt.s32.totalorder %v3398_v10, 14 }
 0x2ce   : > { %v1692_v35 = vmul.f32 %v1688_v39, %v3757_v43  ;;  %v1693_v18 = vmul.f32 %v1689_v60, %v3757_v43 }
 0x2d0   : > { %v1694_v6 = vadd.f32 %v1692_v35, %v1667_v54  ;;  %v1695_v61 = vadd.f32 %v1693_v18, %v1668_v30  ;;  %v1721_v16 = vpop.permute.xlu0 %1720  ;;  %v1947_v63 = vpop.permute.xlu1 %1946 }
 0x2d1   : > { %v1725_v28 = vsel %vm1724_vm14, %v3758_v62, %v1721_v16  ;;  %v1726_v23 = vsel %vm1724_vm14, %v1721_v16, %v3759_v42  ;;  %vm2094_vm14 = vcmp.lt.s32.totalorder %v3394_v24, 13 }
 0x2d2   : > { %v1702_v57 = vsel %vm1696_vm12, %v1694_v6, 0.0  ;;  %v1703_v49 = vsel %vm1697_vm13, %v1695_v61, 0.0  ;;  %v1729_v40 = vmul.f32 %v1725_v28, %v3762_v15  ;;  %v1730_v34 = vmul.f32 %v1726_v23, %v3762_v15 }
 0x2d3   : > { %v3569_v36 = vadd.f32 %v1702_v57, %v1505_v2  ;;  %v3571_v32 = vadd.f32 %v1703_v49, %v1506_v5  ;;  %vm2058_vm12 = vcmask 760832   ;;  %vm2085_vm13 = vcmask 629760  }
 0x2d4   : > { %v1748_v14 = vpop.permute.xlu0 %1747  ;;  %v3581_v46 = vpop.permute.xlu1 %1992 }
 0x2d5   : > { %v1752_v45 = vsel %vm1751_vm15, %v3760_v48, %v1748_v14  ;;  %v1753_v50 = vsel %vm1751_vm15, %v1748_v14, %v3761_v1  ;;  %vm2095_vm15 = vcmp.lt.s32.totalorder %v3398_v10, 13  ;;  %v2143_v10 = vshrl.u32 %v706_v31, 7  ;;  %v2121_v31 = vld [vmem:[%s2992_s30 + $0x8] sm:$0xff] }
 0x2d6   : > { %v1756_v3 = vmul.f32 %v1752_v45, %v3763_v44  ;;  %v1757_v2 = vmul.f32 %v1753_v50, %v3763_v44 }
 0x2d8   : > { %v1758_v5 = vadd.f32 %v1756_v3, %v1729_v40  ;;  %v1759_v26 = vadd.f32 %v1757_v2, %v1730_v34  ;;  %v1802_v17 = vpop.permute.xlu1 %1801 }
 0x2dc   : > { %v3583_v21 = vpop.permute.xlu1 %1847 }
 0x2e0   : > { %v1974_v19 = vpop.permute.xlu1 %1973 }
 0x2e1   : > { %v1767_v52 = vpop.permute.xlu0 %1766 }
 0x2e4   : > { %v3586_v56 = vpop.permute.xlu1 %2019 }
 0x2e5   : > { %v1939_v33 = vpop.permute.xlu0 %1938 }
 0x2e8   : > { %v1829_v30 = vpop.permute.xlu1 %1828 }
 0x2e9   : > { %v1966_v9 = vpop.permute.xlu0 %1965 }
 0x2ec   : > { %v1875_v43 = vpop.permute.xlu1 %1874 }
 0x2ed   : > { %v1775_v53 = vpop.permute.xlu0 %1774 }
 0x2ee   : > { %v1779_v59 = vsel %vm1778_vm1, %v3549_v13, %v1775_v53  ;;  %v1780_v55 = vsel %vm1778_vm1, %v1775_v53, %v1777_v0 }
 0x2ef   : > { %v1783_v27 = vmul.f32 %v1779_v59, %v1767_v52  ;;  %v1784_v51 = vmul.f32 %v1780_v55, %v1767_v52 }
 0x2f0   : > { %v2001_v61 = vpop.permute.xlu1 %2000 }
 0x2f1   : > { %v1785_v47 = vadd.f32 %v1783_v27, %v1758_v5  ;;  %v1786_v20 = vadd.f32 %v1784_v51, %v1759_v26  ;;  %v1821_v29 = vpop.permute.xlu0 %1820 }
 0x2f4   : > { %v3590_v62 = vpop.permute.xlu1 %2046 }
 0x2f5   : > { %v1920_v4 = vpop.permute.xlu0 %1919 }
 0x2f6   : > { %v1924_v8 = vsel %vm1923_vm2, %v1918_v37, %v1920_v4  ;;  %v1925_v13 = vsel %vm1923_vm2, %v1920_v4, %v1922_v22 }
 0x2f7   : > { %v1928_v12 = vmul.f32 %v1924_v8, %v3531_v38  ;;  %v1929_v7 = vmul.f32 %v1925_v13, %v3531_v38 }
 0x2f8   : > { %v1856_v50 = vpop.permute.xlu1 %1855 }
 0x2f9   : > { %v1945_v25 = vpop.permute.xlu0 %1944 }
 0x2fa   : > { %v1951_v54 = vsel %vm1950_vm3, %v1945_v25, %v1947_v63 }
 0x2fb   : > { %v1955_v11 = vmul.f32 %v1951_v54, %v1939_v33 }
 0x2fc   : > { %v2026_v26 = vpop.permute.xlu1 %2025 }
 0x2fd   : > { %v1957_v0 = vadd.f32 %v1955_v11, %v1928_v12  ;;  %v1949_v41 = vpop.permute.xlu0 %1948 }
 0x2fe   : > { %v1952_v39 = vsel %vm1950_vm3, %v1947_v63, %v1949_v41 }
 0x2ff   : > { %v1956_v60 = vmul.f32 %v1952_v39, %v1939_v33 }
 0x300   : > { %v2030_v53 = vpop.permute.xlu1 %2029 }
 0x301   : > { %v1958_v35 = vadd.f32 %v1956_v60, %v1929_v7  ;;  %v1800_v18 = vpop.permute.xlu0 %1799 }
 0x302   : > { %v1806_v49 = vsel %vm1805_vm5, %v1800_v18, %v1802_v17 }
 0x303   : > { %v1810_v38 = vmul.f32 %v1806_v49, %v3542_v58 }
 0x304   : > { %v1881_v59 = vpop.permute.xlu1 %1880 }
 0x305   : > { %v1804_v6 = vpop.permute.xlu0 %1803  ;;  %v1812_v15 = vadd.f32 %v1810_v38, %v1785_v47 }
 0x306   : > { %v1807_v14 = vsel %vm1805_vm5, %v1802_v17, %v1804_v6 }
 0x307   : > { %v1811_v40 = vmul.f32 %v1807_v14, %v3542_v58 }
 0x308   : > { %v1885_v27 = vpop.permute.xlu1 %1884 }
 0x309   : > { %v1972_v37 = vpop.permute.xlu0 %1971  ;;  %v1813_v63 = vadd.f32 %v1811_v40, %v1786_v20 }
 0x30a   : > { %v1978_v16 = vsel %vm1977_vm4, %v1972_v37, %v1974_v19 }
 0x30b   : > { %v1982_v57 = vmul.f32 %v1978_v16, %v1966_v9 }
 0x30c   : > { %v2055_v20 = vpop.permute.xlu1 %2054 }
 0x30d   : > { %v3592_v22 = vadd.f32 %v1982_v57, %v1957_v0  ;;  %v1976_v28 = vpop.permute.xlu0 %1975 }
 0x30e   : > { %v1979_v42 = vsel %vm1977_vm4, %v1974_v19, %v1976_v28 }
 0x30f   : > { %v1983_v23 = vmul.f32 %v1979_v42, %v1966_v9 }
 0x310   : > { %v2080_v18 = vpop.permute.xlu1 %2079 }
 0x311   : > { %v3595_v48 = vadd.f32 %v1983_v23, %v1958_v35  ;;  %v1827_v45 = vpop.permute.xlu0 %1826 }
 0x312   : > { %v1833_v1 = vsel %vm1832_vm6, %v1827_v45, %v1829_v30 }
 0x313   : > { %v1837_v34 = vmul.f32 %v1833_v1, %v1821_v29 }
 0x315   : > { %v1839_v44 = vadd.f32 %v1837_v34, %v1812_v15  ;;  %v1831_v3 = vpop.permute.xlu0 %1830 }
 0x316   : > { %v1834_v2 = vsel %vm1832_vm6, %v1829_v30, %v1831_v3 }
 0x317   : > { %v1838_v5 = vmul.f32 %v1834_v2, %v1821_v29 }
 0x319   : > { %v1840_v52 = vadd.f32 %v1838_v5, %v1813_v63  ;;  %v1999_v33 = vpop.permute.xlu0 %1998 }
 0x31a   : > { %v2005_v0 = vsel %vm2004_vm9, %v1999_v33, %v2001_v61 }
 0x31b   : > { %v2009_v6 = vmul.f32 %v2005_v0, %v3581_v46 }
 0x31d   : > { %v2003_v9 = vpop.permute.xlu0 %2002  ;;  %v2011_v14 = vadd.f32 %v2009_v6, %v3592_v22  ;;  %v2125_v6 = vld [vmem:[%s2992_s30 + $0x28] sm:$0xff] }
 0x31e   : > { %v2006_v41 = vsel %vm2004_vm9, %v2001_v61, %v2003_v9 }
 0x31f   : > { %v2010_v37 = vmul.f32 %v2006_v41, %v3581_v46 }
 0x321   : > { %v1854_v17 = vpop.permute.xlu0 %1853  ;;  %v2012_v45 = vadd.f32 %v2010_v37, %v3595_v48 }
 0x322   : > { %v1860_v51 = vsel %vm1859_vm7, %v1854_v17, %v1856_v50 }
 0x323   : > { %v1864_v4 = vmul.f32 %v1860_v51, %v3583_v21 }
 0x325   : > { %v1858_v55 = vpop.permute.xlu0 %1857  ;;  %v1866_v54 = vadd.f32 %v1864_v4, %v1839_v44 }
 0x326   : > { %v1861_v47 = vsel %vm1859_vm7, %v1856_v50, %v1858_v55  ;;  %v2084_v50 = vpop.permute.xlu1 %2083  ;;  %v2498_v55 = vmov 1966171168  }
 0x327   : > { %v1865_v8 = vmul.f32 %v1861_v47, %v3583_v21 }
 0x329   : > { %v2028_v19 = vpop.permute.xlu0 %2027  ;;  %v1867_v30 = vadd.f32 %v1865_v8, %v1840_v52 }
 0x32a   : > { %v2032_v60 = vsel %vm2031_vm10, %v2026_v26, %v2028_v19  ;;  %v2033_v35 = vsel %vm2031_vm10, %v2028_v19, %v2030_v53  ;;  %v2140_v19 = vunpack.c.l.s4 %v2498_v55 }
 0x32b   : > { %v2036_v28 = vmul.f32 %v2032_v60, %v3586_v56  ;;  %v2037_v42 = vmul.f32 %v2033_v35, %v3586_v56  ;;  %v2128_v60 = vld [vmem:[%s2992_s30 + $0x40] sm:$0xff]  ;;  %v2123_v35 = vld [vmem:[%s2992_s30 + $0x18] sm:$0xff] }
 0x32d   : > { %v2074_v58 = vpop.permute.xlu0 %2073  ;;  %v2039_v15 = vadd.f32 %v2037_v42, %v2012_v45  ;;  %v2131_v45 = vld [vmem:[%s2992_s30 + $0x58] sm:$0xff] }
 0x331   : > { %v1883_v29 = vpop.permute.xlu0 %1882 }
 0x332   : > { %v1887_v12 = vsel %vm1886_vm8, %v1881_v59, %v1883_v29  ;;  %v1888_v25 = vsel %vm1886_vm8, %v1883_v29, %v1885_v27  ;;  %v2141_v27 = vunpack.c.0.s8 %v2140_v19 }
 0x333   : > { %v1891_v11 = vmul.f32 %v1887_v12, %v1875_v43  ;;  %v1892_v13 = vmul.f32 %v1888_v25, %v1875_v43  ;;  %v2163_v12 = vsub.s32 0, %v2143_v10  ;;  %v2167_v25 = vsub.s32 1, %v2143_v10 }
 0x334   : > { %v2144_v8 = vsub.s32 %v2141_v27, %v2143_v10 }
 0x335   : > { %v1893_v39 = vadd.f32 %v1891_v11, %v1866_v54  ;;  %v1894_v7 = vadd.f32 %v1892_v13, %v1867_v30  ;;  %v2053_v21 = vpop.permute.xlu0 %2052 }
 0x336   : > { %v2059_v49 = vsel %vm2058_vm12, %v2053_v21, %v2055_v20  ;;  %v2120_v21 = vld [vmem:[%s2992_s30] sm:$0xff] }
 0x337   : > { %v1901_v43 = vsel %vm1895_vm11, %v1893_v39, 0.0  ;;  %v1902_v16 = vsel %vm1896_vm0, %v1894_v7, 0.0  ;;  %v2063_v46 = vmul.f32 %v2059_v49, %v3590_v62  ;;  %v2122_v39 = vld [vmem:[%s2992_s30 + $0x10] sm:$0xff]  ;;  %v2129_v7 = vld [vmem:[%s2992_s30 + $0x48] sm:$0xff]  ;;  %v2127_v49 = vld [vmem:[%s2992_s30 + $0x38] sm:$0xff] }
 0x338   : > { %v1903_v61 = vadd.f32 %v1901_v43, %v3569_v36  ;;  %v1904_v57 = vadd.f32 %v1902_v16, %v3571_v32  ;;  %v2038_v36 = vadd.f32 %v2036_v28, %v2011_v14  ;;  %v2130_v28 = vld [vmem:[%s2992_s30 + $0x50] sm:$0xff] }
 0x339   : > { %v2057_v38 = vpop.permute.xlu0 %2056 }
 0x33a   : > { %v2060_v23 = vsel %vm2058_vm12, %v2055_v20, %v2057_v38  ;;  %v2065_v44 = vadd.f32 %v2063_v46, %v2038_v36  ;;  %v2132_v46 = vld [vmem:[%s2992_s30 + $0x60] sm:$0xff] }
 0x33b   : > { %v2064_v1 = vmul.f32 %v2060_v23, %v3590_v62 }
 0x33d   : > { %v2082_v32 = vpop.permute.xlu0 %2081  ;;  %v2066_v3 = vadd.f32 %v2064_v1, %v2039_v15  ;;  %v2133_v1 = vld [vmem:[%s2992_s30 + $0x68] sm:$0xff] }
 0x33e   : > { %v2086_v40 = vsel %vm2085_vm13, %v2080_v18, %v2082_v32  ;;  %v2087_v34 = vsel %vm2085_vm13, %v2082_v32, %v2084_v50  ;;  %v2124_v18 = vld [vmem:[%s2992_s30 + $0x20] sm:$0xff] }
 0x33f   : > { %v2090_v56 = vmul.f32 %v2086_v40, %v2074_v58  ;;  %v2091_v2 = vmul.f32 %v2087_v34, %v2074_v58  ;;  %v2134_v40 = vld [vmem:[%s2992_s30 + $0x70] sm:$0xff]  ;;  %v2135_v34 = vld [vmem:[%s2992_s30 + $0x78] sm:$0xff] }
 0x341   : > { %v2092_v22 = vadd.f32 %v2090_v56, %v2065_v44  ;;  %v2093_v48 = vadd.f32 %v2091_v2, %v2066_v3 }
 0x343   : > { %v2100_v63 = vsel %vm2094_vm14, %v2092_v22, 0.0  ;;  %v2101_v5 = vsel %vm2095_vm15, %v2093_v48, 0.0 }
 0x344   : > { %v2102_v26 = vadd.f32 %v2100_v63, %v1903_v61  ;;  %v2103_v62 = vadd.f32 %v2101_v5, %v1904_v57  ;;  %v2126_v57 = vld [vmem:[%s2992_s30 + $0x30] sm:$0xff] }
 0x346   : > { %v2106_v52 = vrot.slane %v2102_v26, 2  ;;  %v2107_v33 = vrot.slane %v2103_v62, 2 }
 0x348   : > { %v2110_v9 = vadd.f32 %v2106_v52, %v2102_v26  ;;  %v2111_v53 = vadd.f32 %v2107_v33, %v2103_v62 }
 0x34a   : > { %v2112_v17 = vmul.f32 0.5, %v2110_v9  ;;  %v2113_v59 = vmul.f32 0.5, %v2111_v53 }
 0x34c   : > { %2421 = vtanh.f32 %v2112_v17 }
 0x34d   : > { %2423 = vtanh.f32 %v2113_v59 }
 0x359   : > { %v2422_v24 = vpop.eup %2421 }
 0x35a   : > { %v2424_v51 = vpop.eup %2423  ;;  %v2116_v47 = vadd.f32 1.0, %v2422_v24 }
 0x35b   : > { %v2117_v58 = vadd.f32 1.0, %v2424_v51 }
 0x35c   : > { %v2118_v4 = vmul.f32 0.5, %v2116_v47 }
 0x35d   : > { %v2119_v20 = vmul.f32 0.5, %v2117_v58 }
 0x35f   : > { %v2138_v29 = vcombine.low %v2118_v4, %v2119_v20 }
 0x361   : > { %v2145_v54 = vrot.slane %v2138_v29, %v2144_v8 }
 0x363   : > { %v2146_v30 = vcombine.high %v2145_v54, %v2145_v54  ;;  %v2153_v11 = vrot.slane %v2145_v54, %v2144_v8 }
 0x365   : > { %v2160_v13 = vrot.slane %v2146_v30, %v2144_v8  ;;  %v2164_v0 = vrot.slane %v2153_v11, %v2163_v12  ;;  %v2168_v41 = vrot.slane %v2153_v11, %v2167_v25 }
 0x367   : > { %v2172_v37 = vrot.slane %v2160_v13, %v2163_v12  ;;  %v2176_v43 = vrot.slane %v2160_v13, %v2167_v25  ;;  %v2181_v16 = vmul.f32 %v2164_v0, %v2120_v21  ;;  %v2182_v61 = vmul.f32 %v2168_v41, %v2121_v31 }
 0x368   : > { %v2183_v42 = vmul.f32 %v2164_v0, %v2122_v39  ;;  %v2184_v38 = vmul.f32 %v2168_v41, %v2123_v35  ;;  %v2185_v23 = vmul.f32 %v2164_v0, %v2124_v18  ;;  %v2186_v14 = vmul.f32 %v2168_v41, %v2125_v6 }
 0x369   : > { %v2187_v50 = vmul.f32 %v2164_v0, %v2126_v57  ;;  %v2188_v36 = vmul.f32 %v2168_v41, %v2127_v49  ;;  %v2189_v15 = vmul.f32 %v2172_v37, %v2128_v60  ;;  %v2190_v32 = vmul.f32 %v2176_v43, %v2129_v7  ;;  %2197 = vst [vmem:[%s2992_s30] sm:$0xff] %v2181_v16 }
 0x36a   : > { %2198 = vst [vmem:[%s2992_s30 + $0x8] sm:$0xff] %v2182_v61  ;;  %v2191_v44 = vmul.f32 %v2172_v37, %v2130_v28  ;;  %v2192_v3 = vmul.f32 %v2176_v43, %v2131_v45  ;;  %v2193_v56 = vmul.f32 %v2172_v37, %v2132_v46  ;;  %v2194_v2 = vmul.f32 %v2176_v43, %v2133_v1 }
 0x36b   : > { %2199 = vst [vmem:[%s2992_s30 + $0x10] sm:$0xff] %v2183_v42  ;;  %2200 = vst [vmem:[%s2992_s30 + $0x18] sm:$0xff] %v2184_v38  ;;  %v2195_v22 = vmul.f32 %v2172_v37, %v2134_v40  ;;  %v2196_v48 = vmul.f32 %v2176_v43, %v2135_v34 }
 0x36c   : > { %2201 = vst [vmem:[%s2992_s30 + $0x20] sm:$0xff] %v2185_v23  ;;  %2202 = vst [vmem:[%s2992_s30 + $0x28] sm:$0xff] %v2186_v14 }
 0x36d   : > { %2203 = vst [vmem:[%s2992_s30 + $0x30] sm:$0xff] %v2187_v50  ;;  %2204 = vst [vmem:[%s2992_s30 + $0x38] sm:$0xff] %v2188_v36 }
 0x36e   : > { %2205 = vst [vmem:[%s2992_s30 + $0x40] sm:$0xff] %v2189_v15  ;;  %2206 = vst [vmem:[%s2992_s30 + $0x48] sm:$0xff] %v2190_v32 }
 0x36f   : > { %2207 = vst [vmem:[%s2992_s30 + $0x50] sm:$0xff] %v2191_v44  ;;  %2208 = vst [vmem:[%s2992_s30 + $0x58] sm:$0xff] %v2192_v3 }
 0x370   : > { %2209 = vst [vmem:[%s2992_s30 + $0x60] sm:$0xff] %v2193_v56  ;;  %2210 = vst [vmem:[%s2992_s30 + $0x68] sm:$0xff] %v2194_v2 }
 0x371   : > { %2211 = vst [vmem:[%s2992_s30 + $0x70] sm:$0xff] %v2195_v22  ;;  %2212 = vst [vmem:[%s2992_s30 + $0x78] sm:$0xff] %v2196_v48 }
 0x372 PF: > { %s14_s15 = sadd.s32 1, %s2446_s15  }
 0x373   : > { %p11_p4 = scmp.ge.s32.totalorder %s14_s15, 4  }
 0x375   :  { %13 = sbr.rel (!%p11_p4) target bundleno = 1 (0x1), region = 116 }

</bundles_post_ra>
